<compile_context>
chip_gen: v5e
topology: v5e:2x2
jax: 0.10.0
libtpu: 0.0.40
codegen_flags: <defaults>
</compile_context>

<pallas_src>
import jax
import jax.numpy as jnp
from jax import lax
from jax.experimental import pallas as pl
from jax.experimental.pallas import tpu as pltpu  # noqa: F401  (TPU backend)

# ----------------------------- config (small) ------------------------------
VOCAB = 32
EMBED_DIM = 32
HIDDEN_DIM = 32
ENTITY_DIM = 32          # must equal HIDDEN_DIM (as in the PyTorch module)
MAX_ENT_LENGTH = 8
MAX_ENTITIES = 7         # -> M1 = 8 entity slots (incl. "new entity" slot 0)
SEQ = 8
BATCH = 2

M1 = MAX_ENTITIES + 1
GATES = 4 * HIDDEN_DIM            # 128 : fused LSTM gate width (i, f, g, o)
WBIG_N = 384                      # padded width of the fused h projection
C_CTX = GATES                     # 128 : E_context_op
C_FGT = C_CTX + ENTITY_DIM        # 160 : E_forget_op
C_INP = C_FGT + ENTITY_DIM        # 192 : E_input_op
C_HEAD = 256                      # aligned 128-lane output-head tile
HEAD_W = 128
HEAD_X = 0                        # out_x lanes      [ 0, 32)
HEAD_LEN = VOCAB                  # out_e_len lanes  [32, 40)
HEAD_R = VOCAB + MAX_ENT_LENGTH   # out_e_t lanes    [40, 42)
AUX_W = 128
A_NOISE = 0                       # noise lanes      [ 0, 32)
A_OH = ENTITY_DIM                 # one-hot lanes    [32, 40)
A_EM = ENTITY_DIM + M1            # e_mask lane      [40, 41)
EPS = 1e-20
TINY = 1e-30                      # guards rsqrt(0); no-op in f32 otherwise


# --------------------------- fused Pallas kernel ---------------------------

def _entity_nlm_kernel(xpre_ref, aux_ref, h0_ref, c0_ref,
                       wbig_ref, bbig_ref, wctx_ref, mean_ref, defctx_ref,
                       slab_ref, scores_ref, hout_ref):
    T = xpre_ref.shape[0]
    B = h0_ref.shape[0]
    H = HIDDEN_DIM
    D = ENTITY_DIM

    # -------- one-time entity-cache / LSTM-state initialization --------
    mean = mean_ref[...]                                            # (1, D)
    e0 = mean / (jnp.sqrt(jnp.sum(mean * mean, axis=1, keepdims=True)) + EPS)
    slot0 = (lax.broadcasted_iota(jnp.int32, (B, M1), 1) == 0
             ).astype(jnp.float32)
    E = slot0[:, :, None] * e0[:, None, :]                          # (B,M1,D)
    nc = jnp.broadcast_to(defctx_ref[...], (B, D))                  # null ctx
    look = slot0                                                    # lookup
    h = h0_ref[...]
    c = c0_ref[...]
    # seed the carried h @ W_hh pre-gates (W_hh lives in cols [0, 4H) of W_big)
    hh_pre = jnp.dot(h, wbig_ref[...],
                     preferred_element_type=jnp.float32)[:, :GATES]

    # -------- whole recurrence inside this single kernel invocation --------
    for t in range(T):      # T static -> fully unrolled, no per-step launches
        # LSTM cell: x-gates precomputed in the wrapper, h-gates carried
        gates = xpre_ref[t] + hh_pre
        i_g = jax.nn.sigmoid(gates[:, 0:H])
        f_g = jax.nn.sigmoid(gates[:, H:2 * H])
        g_g = jnp.tanh(gates[:, 2 * H:3 * H])
        o_g = jax.nn.sigmoid(gates[:, 3 * H:4 * H])
        c = f_g * c + i_g * g_g
        h = o_g * jnp.tanh(c)

        # packed per-step aux inputs: [noise | one-hot(e_idx+1) | e_mask]
        aux = aux_ref[t]
        noise = aux[:, A_NOISE:A_NOISE + D]
        oh = aux[:, A_OH:A_OH + M1]
        e_mask = aux[:, A_EM:A_EM + 1]

        # single fused h projection (one MXU matmul per step)
        hp_all = (jnp.dot(h, wbig_ref[...],
                          preferred_element_type=jnp.float32) + bbig_ref[...])
        hh_pre = hp_all[:, 0:GATES]                  # reused at step t + 1
        proj_ctx = hp_all[:, C_CTX:C_CTX + D]
        proj_f = hp_all[:, C_FGT:C_FGT + D]
        proj_i = hp_all[:, C_INP:C_INP + D]
        head_h = hp_all[:, C_HEAD:C_HEAD + HEAD_W]   # aligned 128-lane tile

        # new-entity bookkeeping (slot 0 is pre-seen; e_idx = -1 maps there)
        seen = jnp.sum(look * oh, axis=1, keepdims=True)
        new_mask = (1.0 - seen) * e_mask
        look = jnp.maximum(look, oh)
        # TODO(synk): PyTorch raises EntityOverflow when n_entities exceeds
        # max_entities; a host-side exception has no traceable Pallas
        # equivalent, so overflow is silently ignored here.

        # _add_embeddings: fresh normalized embedding for brand-new entities
        z = mean + noise
        z = z * lax.rsqrt(jnp.sum(z * z, axis=1, keepdims=True) + TINY)
        E = E + (oh * new_mask)[:, :, None] * z[:, None, :]

        # _update_embeddings + _normalize_E (rows with e_t == 1)
        mask_oh = oh * e_mask
        curr = jnp.sum(E * oh[:, :, None], axis=1)
        f = jax.nn.sigmoid(jnp.sum(curr * proj_f, axis=1, keepdims=True))
        E = (E * (1.0 - mask_oh[:, :, None] * f[:, None, :])
             + mask_oh[:, :, None] * (f * proj_i)[:, None, :])
        new_curr = jnp.sum(E * oh[:, :, None], axis=1)
        rnorm = lax.rsqrt(jnp.sum(new_curr * new_curr, axis=1,
                                  keepdims=True) + TINY)
        inv = jnp.where(mask_oh > 0.5, rnorm, 1.0)
        E = E * inv[:, :, None]          # == E / (norm + 1e-20) in f32

        curr_e = jnp.sum(E * oh[:, :, None], axis=1)
        nc = jnp.where(e_mask > 0.5, curr_e, nc)

        # entity-index scores; break_tok_idx is None so e_dists == 0 and the
        # distance penalty exp(e_dists * lambda_dist) is identically 1.0.
        scores = jnp.sum(E * proj_ctx[:, None, :], axis=2) - 1.0
        scores = jnp.where(look > 0.5, scores, -jnp.inf)

        # fused context head: [X_op@W_out | L_e] vs [X_null_op@W_out | L_e]
        # (two K=32 matmuls; replaces 3 matmuls + a post-matmul where)
        ctx_head = (jnp.dot(curr_e * e_mask, wctx_ref[0],
                            preferred_element_type=jnp.float32)
                    + jnp.dot(nc * (1.0 - e_mask), wctx_ref[1],
                              preferred_element_type=jnp.float32))

        # lane-dense packed output row: [out_x | out_e_len | out_e_t | 0...]
        slab_ref[t] = head_h + ctx_head
        scores_ref[t] = scores

    hout_ref[...] = h                    # written once, after the loop


# ------------------------------- parameters --------------------------------

def init_params(key):
    ks = jax.random.split(key, 16)

    def u(k, shape, scale=0.1):
        return (jax.random.uniform(k, shape, jnp.float32) * 2.0 - 1.0) * scale

    H, D, E, V, L = HIDDEN_DIM, ENTITY_DIM, EMBED_DIM, VOCAB, MAX_ENT_LENGTH
    p = {}
    p['embed'] = u(ks[0], (V, E), 1.0)
    # fused LSTM weights, PyTorch gate order (i, f, g, o) along the last dim
    p['lstm_w_ih'] = u(ks[1], (E, 4 * H))
    W_hh = u(ks[2], (H, 4 * H))
    p['lstm_b'] = u(ks[3], (1, 4 * H))            # b_ih + b_hh combined

    W_ctx = u(ks[4], (H, D))        # E_context_op (bias=False)
    W_fgt = u(ks[5], (H, D))        # E_forget_op  (bias=False)
    W_inp = u(ks[6], (H, D))        # E_input_op   (bias=False)
    W_R = u(ks[7], (H, 2))          # R_op         (bias=False)
    W_L = u(ks[8], (H + D, L))      # L_op
    b_L = u(ks[9], (L,))
    W_X = u(ks[10], (D, H))         # X_op         (bias=False)
    W_Xn = u(ks[11], (D, H))        # X_null_op    (bias=False)
    W_out = u(ks[12], (H, V))       # out_layer
    b_out = u(ks[13], (V,))

    # one fused h-projection weight (W_hh folded in; output head is aligned)
    W_big = jnp.zeros((H, WBIG_N), jnp.float32)
    W_big = W_big.at[:, 0:4 * H].set(W_hh)
    W_big = W_big.at[:, C_CTX:C_CTX + D].set(W_ctx)
    W_big = W_big.at[:, C_FGT:C_FGT + D].set(W_fgt)
    W_big = W_big.at[:, C_INP:C_INP + D].set(W_inp)
    W_big = W_big.at[:, C_HEAD + HEAD_X:C_HEAD + HEAD_X + V].set(W_out)
    W_big = W_big.at[:, C_HEAD + HEAD_LEN:C_HEAD + HEAD_LEN + L].set(W_L[:H])
    W_big = W_big.at[:, C_HEAD + HEAD_R:C_HEAD + HEAD_R + 2].set(W_R)
    b_big = jnp.zeros((WBIG_N,), jnp.float32)
    b_big = b_big.at[C_HEAD + HEAD_X:C_HEAD + HEAD_X + V].set(b_out)
    b_big = b_big.at[C_HEAD + HEAD_LEN:C_HEAD + HEAD_LEN + L].set(b_L)
    p['W_big'] = W_big
    p['b_big'] = b_big.reshape(1, WBIG_N)

    # stacked context-head weights: row 0 -> entity branch, row 1 -> null
    W_ctx2 = jnp.zeros((2, D, HEAD_W), jnp.float32)
    W_ctx2 = W_ctx2.at[0, :, HEAD_X:HEAD_X + V].set(W_X @ W_out)
    W_ctx2 = W_ctx2.at[0, :, HEAD_LEN:HEAD_LEN + L].set(W_L[H:])
    W_ctx2 = W_ctx2.at[1, :, HEAD_X:HEAD_X + V].set(W_Xn @ W_out)
    W_ctx2 = W_ctx2.at[1, :, HEAD_LEN:HEAD_LEN + L].set(W_L[H:])
    p['W_ctx2'] = W_ctx2

    # lambda_dist exists in the module but multiplies e_dists which stays 0
    # when break_tok_idx is None, so it never reaches the kernel.
    p['lambda_dist'] = jnp.full((1, 1), 1e-6, jnp.float32)
    p['entity_init_mean'] = jax.random.uniform(ks[14], (1, D), jnp.float32)
    p['default_context'] = jax.random.uniform(ks[15], (1, D), jnp.float32)
    return p


# ------------------------------ forward pass -------------------------------

def entity_nlm_forward(p, xs, h0, c0, e_ts, e_idxs, e_lens, key):
    # break_tok_idx is None -> final_tok is all-False at every step
    del e_lens  # length annotations are not used by the reference forward
    seq_len, B = xs.shape
    T = seq_len - 1
    H, D, V, L = HIDDEN_DIM, ENTITY_DIM, VOCAB, MAX_ENT_LENGTH

    # hoisted input-gate matmul: one (T*B, E) x (E, 4H) matmul for all steps
    emb_seq = p['embed'][xs[:T]].astype(jnp.float32)               # (T, B, E)
    xpre = (jnp.dot(emb_seq.reshape(T * B, EMBED_DIM), p['lstm_w_ih'])
            + p['lstm_b']).reshape(T, B, GATES)

    # pack the per-step aux inputs into one lane-dense (T, B, 128) slab
    noise_seq = jax.random.normal(key, (T, B, D), jnp.float32) * 1e-4
    oh_seq = jax.nn.one_hot(e_idxs[:T] + 1, M1, dtype=jnp.float32)  # (T,B,M1)
    em_seq = (e_ts[:T] == 1).astype(jnp.float32)[..., None]         # (T,B,1)
    pad = jnp.zeros((T, B, AUX_W - (D + M1 + 1)), jnp.float32)
    aux = jnp.concatenate([noise_seq, oh_seq, em_seq, pad], axis=-1)

    slab, out_e_idx, h_last = pl.pallas_call(
        _entity_nlm_kernel,
        out_shape=(jax.ShapeDtypeStruct((T, B, HEAD_W), jnp.float32),
                   jax.ShapeDtypeStruct((T, B, M1), jnp.float32),
                   jax.ShapeDtypeStruct((B, H), jnp.float32)),
    )(xpre, aux, h0[0], c0[0],
      p['W_big'], p['b_big'], p['W_ctx2'],
      p['entity_init_mean'], p['default_context'])

    out_x = slab[:, :, HEAD_X:HEAD_X + V]
    out_e_len = slab[:, :, HEAD_LEN:HEAD_LEN + L]
    out_e_t = slab[:, :, HEAD_R:HEAD_R + 2]
    return h_last[None], (out_e_t, out_e_idx, out_e_len, out_x)


forward = jax.jit(entity_nlm_forward)


# --------------------------------- main -------------------------------------
if __name__ == "__main__":
    key = jax.random.PRNGKey(0)
    k1, k2, k3, k4, k5 = jax.random.split(key, 5)

    params = init_params(k1)

    xs = jax.random.randint(k2, (SEQ, BATCH), 0, VOCAB, dtype=jnp.int32)
    e_ts = jax.random.randint(k3, (SEQ, BATCH), 0, 2, dtype=jnp.int32)
    e_idxs = jnp.where(
        e_ts == 1,
        jax.random.randint(k4, (SEQ, BATCH), 0, 3, dtype=jnp.int32),
        jnp.int32(-1))
    e_lens = jnp.ones((SEQ, BATCH), jnp.int32)

    h0 = jnp.zeros((1, BATCH, HIDDEN_DIM), jnp.float32)
    c0 = jnp.zeros((1, BATCH, HIDDEN_DIM), jnp.float32)

    h_out, (out_e_ts, out_e_idxs, out_e_lens, out_xs) = forward(
        params, xs, h0, c0, e_ts, e_idxs, e_lens, k5)
    jax.block_until_ready((h_out, out_e_ts, out_e_idxs, out_e_lens, out_xs))

    assert h_out.shape == (1, BATCH, HIDDEN_DIM)
    assert out_e_ts.shape == (SEQ - 1, BATCH, 2)
    assert out_e_idxs.shape == (SEQ - 1, BATCH, MAX_ENTITIES + 1)
    assert out_e_lens.shape == (SEQ - 1, BATCH, MAX_ENT_LENGTH)
    assert out_xs.shape == (SEQ - 1, BATCH, VOCAB)
    assert bool(jnp.all(jnp.isfinite(out_xs)))
    assert bool(jnp.all(jnp.isfinite(out_e_lens)))
    print("KERNEL_OK")
</pallas_src>

<mosaic_0001>
module attributes {stable_mosaic.version = 11 : i64} {
  func.func @_entity_nlm_kernel(%arg0: memref<7x2x128xf32, #tpu.memory_space<vmem>>, %arg1: memref<7x2x128xf32, #tpu.memory_space<vmem>>, %arg2: memref<2x32xf32, #tpu.memory_space<vmem>>, %arg3: memref<2x32xf32, #tpu.memory_space<vmem>>, %arg4: memref<32x384xf32, #tpu.memory_space<vmem>>, %arg5: memref<1x384xf32, #tpu.memory_space<vmem>>, %arg6: memref<2x32x128xf32, #tpu.memory_space<vmem>>, %arg7: memref<1x32xf32, #tpu.memory_space<vmem>>, %arg8: memref<1x32xf32, #tpu.memory_space<vmem>>, %arg9: memref<7x2x128xf32, #tpu.memory_space<vmem>>, %arg10: memref<7x2x8xf32, #tpu.memory_space<vmem>>, %arg11: memref<2x32xf32, #tpu.memory_space<vmem>>) attributes {dimension_semantics = [], scalar_prefetch = 0 : i64, scratch_operands = 0 : i64, tpu.core_type = #tpu.core_type<tc>} {
    %c0 = arith.constant 0 : index
    %c0_0 = arith.constant 0 : index
    %0 = vector.load %arg7[%c0, %c0_0] : memref<1x32xf32, #tpu.memory_space<vmem>>, vector<1x32xf32>
    %1 = arith.mulf %0, %0 : vector<1x32xf32>
    %cst = arith.constant dense<0.000000e+00> : vector<1xf32>
    %2 = vector.multi_reduction <add>, %1, %cst [1] : vector<1x32xf32> to vector<1xf32>
    %3 = vector.shape_cast %2 : vector<1xf32> to vector<1x1xf32>
    %4 = math.sqrt %3 : vector<1x1xf32>
    %cst_1 = arith.constant 9.99999968E-21 : f32
    %5 = vector.broadcast %cst_1 : f32 to vector<1x1xf32>
    %6 = arith.addf %4, %5 : vector<1x1xf32>
    %7 = vector.broadcast %6 : vector<1x1xf32> to vector<1x32xf32>
    %8 = arith.divf %0, %7 : vector<1x32xf32>
    %9 = tpu.iota {dimensions = array<i32: 1>} : vector<2x8xi32>
    %c0_i32 = arith.constant 0 : i32
    %10 = vector.broadcast %c0_i32 : i32 to vector<2x8xi32>
    %11 = arith.cmpi eq, %9, %10 : vector<2x8xi32>
    %12 = arith.extui %11 : vector<2x8xi1> to vector<2x8xi32>
    %13 = arith.sitofp %12 : vector<2x8xi32> to vector<2x8xf32>
    %14 = vector.shape_cast %13 : vector<2x8xf32> to vector<2x8x1xf32>
    %15 = vector.shape_cast %8 : vector<1x32xf32> to vector<1x1x32xf32>
    %16 = vector.broadcast %14 : vector<2x8x1xf32> to vector<2x8x32xf32>
    %17 = vector.broadcast %15 : vector<1x1x32xf32> to vector<2x8x32xf32>
    %18 = arith.mulf %16, %17 : vector<2x8x32xf32>
    %c0_2 = arith.constant 0 : index
    %c0_3 = arith.constant 0 : index
    %19 = vector.load %arg8[%c0_2, %c0_3] : memref<1x32xf32, #tpu.memory_space<vmem>>, vector<1x32xf32>
    %20 = vector.shape_cast %19 : vector<1x32xf32> to vector<1x32xf32>
    %21 = vector.broadcast %20 : vector<1x32xf32> to vector<2x32xf32>
    %c0_4 = arith.constant 0 : index
    %c0_5 = arith.constant 0 : index
    %22 = vector.load %arg2[%c0_4, %c0_5] : memref<2x32xf32, #tpu.memory_space<vmem>>, vector<2x32xf32>
    %c0_6 = arith.constant 0 : index
    %c0_7 = arith.constant 0 : index
    %23 = vector.load %arg3[%c0_6, %c0_7] : memref<2x32xf32, #tpu.memory_space<vmem>>, vector<2x32xf32>
    %c0_8 = arith.constant 0 : index
    %c0_9 = arith.constant 0 : index
    %24 = vector.load %arg4[%c0_8, %c0_9] : memref<32x384xf32, #tpu.memory_space<vmem>>, vector<32x384xf32>
    %cst_10 = arith.constant dense<0.000000e+00> : vector<2x384xf32>
    %25 = tpu.matmul %22, %24, %cst_10 {dimension_numbers = #tpu.dot_dimension_numbers<[1], [0], [0], [1], [0, 0, 1, 1], [], []>} : vector<2x32xf32>, vector<32x384xf32>, vector<2x384xf32> -> vector<2x384xf32>
    %26 = vector.extract_strided_slice %25 {offsets = [0, 0], sizes = [2, 128], strides = [1, 1]} : vector<2x384xf32> to vector<2x128xf32>
    %c0_11 = arith.constant 0 : index
    %c0_12 = arith.constant 0 : index
    %c0_13 = arith.constant 0 : index
    %27 = vector.load %arg0[%c0_11, %c0_12, %c0_13] : memref<7x2x128xf32, #tpu.memory_space<vmem>>, vector<1x2x128xf32>
    %28 = vector.shape_cast %27 : vector<1x2x128xf32> to vector<2x128xf32>
    %29 = arith.addf %28, %26 : vector<2x128xf32>
    %30 = vector.extract_strided_slice %29 {offsets = [0, 0], sizes = [2, 32], strides = [1, 1]} : vector<2x128xf32> to vector<2x32xf32>
    %31 = arith.negf %30 : vector<2x32xf32>
    %32 = math.exp %31 : vector<2x32xf32>
    %cst_14 = arith.constant 1.000000e+00 : f32
    %33 = vector.broadcast %cst_14 : f32 to vector<2x32xf32>
    %34 = arith.addf %33, %32 : vector<2x32xf32>
    %35 = arith.divf %33, %34 : vector<2x32xf32>
    %36 = vector.extract_strided_slice %29 {offsets = [0, 32], sizes = [2, 32], strides = [1, 1]} : vector<2x128xf32> to vector<2x32xf32>
    %37 = arith.negf %36 : vector<2x32xf32>
    %38 = math.exp %37 : vector<2x32xf32>
    %cst_15 = arith.constant 1.000000e+00 : f32
    %39 = vector.broadcast %cst_15 : f32 to vector<2x32xf32>
    %40 = arith.addf %39, %38 : vector<2x32xf32>
    %41 = arith.divf %39, %40 : vector<2x32xf32>
    %42 = vector.extract_strided_slice %29 {offsets = [0, 64], sizes = [2, 32], strides = [1, 1]} : vector<2x128xf32> to vector<2x32xf32>
    %43 = math.tanh %42 : vector<2x32xf32>
    %44 = vector.extract_strided_slice %29 {offsets = [0, 96], sizes = [2, 32], strides = [1, 1]} : vector<2x128xf32> to vector<2x32xf32>
    %45 = arith.negf %44 : vector<2x32xf32>
    %46 = math.exp %45 : vector<2x32xf32>
    %cst_16 = arith.constant 1.000000e+00 : f32
    %47 = vector.broadcast %cst_16 : f32 to vector<2x32xf32>
    %48 = arith.addf %47, %46 : vector<2x32xf32>
    %49 = arith.divf %47, %48 : vector<2x32xf32>
    %50 = arith.mulf %41, %23 : vector<2x32xf32>
    %51 = arith.mulf %35, %43 : vector<2x32xf32>
    %52 = arith.addf %50, %51 : vector<2x32xf32>
    %53 = math.tanh %52 : vector<2x32xf32>
    %54 = arith.mulf %49, %53 : vector<2x32xf32>
    %c0_17 = arith.constant 0 : index
    %c0_18 = arith.constant 0 : index
    %c0_19 = arith.constant 0 : index
    %55 = vector.load %arg1[%c0_17, %c0_18, %c0_19] : memref<7x2x128xf32, #tpu.memory_space<vmem>>, vector<1x2x128xf32>
    %56 = vector.shape_cast %55 : vector<1x2x128xf32> to vector<2x128xf32>
    %57 = vector.extract_strided_slice %56 {offsets = [0, 0], sizes = [2, 32], strides = [1, 1]} : vector<2x128xf32> to vector<2x32xf32>
    %58 = vector.extract_strided_slice %56 {offsets = [0, 32], sizes = [2, 8], strides = [1, 1]} : vector<2x128xf32> to vector<2x8xf32>
    %59 = vector.extract_strided_slice %56 {offsets = [0, 40], sizes = [2, 1], strides = [1, 1]} : vector<2x128xf32> to vector<2x1xf32>
    %c0_20 = arith.constant 0 : index
    %c0_21 = arith.constant 0 : index
    %60 = vector.load %arg4[%c0_20, %c0_21] : memref<32x384xf32, #tpu.memory_space<vmem>>, vector<32x384xf32>
    %cst_22 = arith.constant dense<0.000000e+00> : vector<2x384xf32>
    %61 = tpu.matmul %54, %60, %cst_22 {dimension_numbers = #tpu.dot_dimension_numbers<[1], [0], [0], [1], [0, 0, 1, 1], [], []>} : vector<2x32xf32>, vector<32x384xf32>, vector<2x384xf32> -> vector<2x384xf32>
    %c0_23 = arith.constant 0 : index
    %c0_24 = arith.constant 0 : index
    %62 = vector.load %arg5[%c0_23, %c0_24] : memref<1x384xf32, #tpu.memory_space<vmem>>, vector<1x384xf32>
    %63 = vector.broadcast %62 : vector<1x384xf32> to vector<2x384xf32>
    %64 = arith.addf %61, %63 : vector<2x384xf32>
    %65 = vector.extract_strided_slice %64 {offsets = [0, 0], sizes = [2, 128], strides = [1, 1]} : vector<2x384xf32> to vector<2x128xf32>
    %66 = vector.extract_strided_slice %64 {offsets = [0, 128], sizes = [2, 32], strides = [1, 1]} : vector<2x384xf32> to vector<2x32xf32>
    %67 = vector.extract_strided_slice %64 {offsets = [0, 160], sizes = [2, 32], strides = [1, 1]} : vector<2x384xf32> to vector<2x32xf32>
    %68 = vector.extract_strided_slice %64 {offsets = [0, 192], sizes = [2, 32], strides = [1, 1]} : vector<2x384xf32> to vector<2x32xf32>
    %69 = vector.extract_strided_slice %64 {offsets = [0, 256], sizes = [2, 128], strides = [1, 1]} : vector<2x384xf32> to vector<2x128xf32>
    %70 = arith.mulf %13, %58 : vector<2x8xf32>
    %cst_25 = arith.constant dense<0.000000e+00> : vector<2xf32>
    %71 = vector.multi_reduction <add>, %70, %cst_25 [1] : vector<2x8xf32> to vector<2xf32>
    %72 = vector.shape_cast %71 : vector<2xf32> to vector<2x1xf32>
    %cst_26 = arith.constant 1.000000e+00 : f32
    %73 = vector.broadcast %cst_26 : f32 to vector<2x1xf32>
    %74 = arith.subf %73, %72 : vector<2x1xf32>
    %75 = arith.mulf %74, %59 : vector<2x1xf32>
    %76 = arith.maximumf %13, %58 : vector<2x8xf32>
    %77 = vector.broadcast %0 : vector<1x32xf32> to vector<2x32xf32>
    %78 = arith.addf %77, %57 : vector<2x32xf32>
    %79 = arith.mulf %78, %78 : vector<2x32xf32>
    %cst_27 = arith.constant dense<0.000000e+00> : vector<2xf32>
    %80 = vector.multi_reduction <add>, %79, %cst_27 [1] : vector<2x32xf32> to vector<2xf32>
    %81 = vector.shape_cast %80 : vector<2xf32> to vector<2x1xf32>
    %cst_28 = arith.constant 1.000000e-30 : f32
    %82 = vector.broadcast %cst_28 : f32 to vector<2x1xf32>
    %83 = arith.addf %81, %82 : vector<2x1xf32>
    %84 = math.rsqrt %83 : vector<2x1xf32>
    %85 = vector.broadcast %84 : vector<2x1xf32> to vector<2x32xf32>
    %86 = arith.mulf %78, %85 : vector<2x32xf32>
    %87 = vector.broadcast %75 : vector<2x1xf32> to vector<2x8xf32>
    %88 = arith.mulf %58, %87 : vector<2x8xf32>
    %89 = vector.shape_cast %88 : vector<2x8xf32> to vector<2x8x1xf32>
    %90 = vector.shape_cast %86 : vector<2x32xf32> to vector<2x1x32xf32>
    %91 = vector.broadcast %89 : vector<2x8x1xf32> to vector<2x8x32xf32>
    %92 = vector.broadcast %90 : vector<2x1x32xf32> to vector<2x8x32xf32>
    %93 = arith.mulf %91, %92 : vector<2x8x32xf32>
    %94 = arith.addf %18, %93 : vector<2x8x32xf32>
    %95 = vector.broadcast %59 : vector<2x1xf32> to vector<2x8xf32>
    %96 = arith.mulf %58, %95 : vector<2x8xf32>
    %97 = vector.shape_cast %58 : vector<2x8xf32> to vector<2x8x1xf32>
    %98 = vector.broadcast %97 : vector<2x8x1xf32> to vector<2x8x32xf32>
    %99 = arith.mulf %94, %98 : vector<2x8x32xf32>
    %cst_29 = arith.constant dense<0.000000e+00> : vector<2x32xf32>
    %100 = vector.multi_reduction <add>, %99, %cst_29 [1] : vector<2x8x32xf32> to vector<2x32xf32>
    %101 = arith.mulf %100, %67 : vector<2x32xf32>
    %cst_30 = arith.constant dense<0.000000e+00> : vector<2xf32>
    %102 = vector.multi_reduction <add>, %101, %cst_30 [1] : vector<2x32xf32> to vector<2xf32>
    %103 = vector.shape_cast %102 : vector<2xf32> to vector<2x1xf32>
    %104 = arith.negf %103 : vector<2x1xf32>
    %105 = math.exp %104 : vector<2x1xf32>
    %cst_31 = arith.constant 1.000000e+00 : f32
    %106 = vector.broadcast %cst_31 : f32 to vector<2x1xf32>
    %107 = arith.addf %106, %105 : vector<2x1xf32>
    %108 = arith.divf %106, %107 : vector<2x1xf32>
    %109 = vector.shape_cast %96 : vector<2x8xf32> to vector<2x8x1xf32>
    %110 = vector.shape_cast %108 : vector<2x1xf32> to vector<2x1x1xf32>
    %111 = vector.broadcast %110 : vector<2x1x1xf32> to vector<2x8x1xf32>
    %112 = arith.mulf %109, %111 : vector<2x8x1xf32>
    %cst_32 = arith.constant 1.000000e+00 : f32
    %113 = vector.broadcast %cst_32 : f32 to vector<2x8x1xf32>
    %114 = arith.subf %113, %112 : vector<2x8x1xf32>
    %115 = vector.broadcast %114 : vector<2x8x1xf32> to vector<2x8x32xf32>
    %116 = arith.mulf %94, %115 : vector<2x8x32xf32>
    %117 = vector.shape_cast %96 : vector<2x8xf32> to vector<2x8x1xf32>
    %118 = vector.broadcast %108 : vector<2x1xf32> to vector<2x32xf32>
    %119 = arith.mulf %118, %68 : vector<2x32xf32>
    %120 = vector.shape_cast %119 : vector<2x32xf32> to vector<2x1x32xf32>
    %121 = vector.broadcast %117 : vector<2x8x1xf32> to vector<2x8x32xf32>
    %122 = vector.broadcast %120 : vector<2x1x32xf32> to vector<2x8x32xf32>
    %123 = arith.mulf %121, %122 : vector<2x8x32xf32>
    %124 = arith.addf %116, %123 : vector<2x8x32xf32>
    %125 = vector.shape_cast %58 : vector<2x8xf32> to vector<2x8x1xf32>
    %126 = vector.broadcast %125 : vector<2x8x1xf32> to vector<2x8x32xf32>
    %127 = arith.mulf %124, %126 : vector<2x8x32xf32>
    %cst_33 = arith.constant dense<0.000000e+00> : vector<2x32xf32>
    %128 = vector.multi_reduction <add>, %127, %cst_33 [1] : vector<2x8x32xf32> to vector<2x32xf32>
    %129 = arith.mulf %128, %128 : vector<2x32xf32>
    %cst_34 = arith.constant dense<0.000000e+00> : vector<2xf32>
    %130 = vector.multi_reduction <add>, %129, %cst_34 [1] : vector<2x32xf32> to vector<2xf32>
    %131 = vector.shape_cast %130 : vector<2xf32> to vector<2x1xf32>
    %cst_35 = arith.constant 1.000000e-30 : f32
    %132 = vector.broadcast %cst_35 : f32 to vector<2x1xf32>
    %133 = arith.addf %131, %132 : vector<2x1xf32>
    %134 = math.rsqrt %133 : vector<2x1xf32>
    %cst_36 = arith.constant 5.000000e-01 : f32
    %135 = vector.broadcast %cst_36 : f32 to vector<2x8xf32>
    %136 = arith.cmpf ogt, %96, %135 : vector<2x8xf32>
    %cst_37 = arith.constant 1.000000e+00 : f32
    %137 = vector.shape_cast %134 : vector<2x1xf32> to vector<2x1xf32>
    %138 = vector.broadcast %137 : vector<2x1xf32> to vector<2x8xf32>
    %139 = vector.broadcast %cst_37 : f32 to vector<2x8xf32>
    %140 = arith.select %136, %138, %139 : vector<2x8xi1>, vector<2x8xf32>
    %141 = vector.shape_cast %140 : vector<2x8xf32> to vector<2x8x1xf32>
    %142 = vector.broadcast %141 : vector<2x8x1xf32> to vector<2x8x32xf32>
    %143 = arith.mulf %124, %142 : vector<2x8x32xf32>
    %144 = vector.shape_cast %58 : vector<2x8xf32> to vector<2x8x1xf32>
    %145 = vector.broadcast %144 : vector<2x8x1xf32> to vector<2x8x32xf32>
    %146 = arith.mulf %143, %145 : vector<2x8x32xf32>
    %cst_38 = arith.constant dense<0.000000e+00> : vector<2x32xf32>
    %147 = vector.multi_reduction <add>, %146, %cst_38 [1] : vector<2x8x32xf32> to vector<2x32xf32>
    %cst_39 = arith.constant 5.000000e-01 : f32
    %148 = vector.broadcast %cst_39 : f32 to vector<2x1xf32>
    %149 = arith.cmpf ogt, %59, %148 : vector<2x1xf32>
    %150 = vector.shape_cast %149 : vector<2x1xi1> to vector<2x1xi1>
    %151 = vector.broadcast %150 : vector<2x1xi1> to vector<2x32xi1>
    %152 = arith.select %151, %147, %21 : vector<2x32xi1>, vector<2x32xf32>
    %153 = vector.shape_cast %66 : vector<2x32xf32> to vector<2x1x32xf32>
    %154 = vector.broadcast %153 : vector<2x1x32xf32> to vector<2x8x32xf32>
    %155 = arith.mulf %143, %154 : vector<2x8x32xf32>
    %cst_40 = arith.constant dense<0.000000e+00> : vector<2x8xf32>
    %156 = vector.multi_reduction <add>, %155, %cst_40 [2] : vector<2x8x32xf32> to vector<2x8xf32>
    %cst_41 = arith.constant 1.000000e+00 : f32
    %157 = vector.broadcast %cst_41 : f32 to vector<2x8xf32>
    %158 = arith.subf %156, %157 : vector<2x8xf32>
    %cst_42 = arith.constant 5.000000e-01 : f32
    %159 = vector.broadcast %cst_42 : f32 to vector<2x8xf32>
    %160 = arith.cmpf ogt, %76, %159 : vector<2x8xf32>
    %cst_43 = arith.constant 0xFF800000 : f32
    %161 = vector.broadcast %cst_43 : f32 to vector<2x8xf32>
    %162 = arith.select %160, %158, %161 : vector<2x8xi1>, vector<2x8xf32>
    %163 = vector.broadcast %59 : vector<2x1xf32> to vector<2x32xf32>
    %164 = arith.mulf %147, %163 : vector<2x32xf32>
    %c0_44 = arith.constant 0 : index
    %c0_45 = arith.constant 0 : index
    %c0_46 = arith.constant 0 : index
    %165 = vector.load %arg6[%c0_44, %c0_45, %c0_46] : memref<2x32x128xf32, #tpu.memory_space<vmem>>, vector<1x32x128xf32>
    %166 = vector.shape_cast %165 : vector<1x32x128xf32> to vector<32x128xf32>
    %cst_47 = arith.constant dense<0.000000e+00> : vector<2x128xf32>
    %167 = tpu.matmul %164, %166, %cst_47 {dimension_numbers = #tpu.dot_dimension_numbers<[1], [0], [0], [1], [0, 0, 1, 1], [], []>} : vector<2x32xf32>, vector<32x128xf32>, vector<2x128xf32> -> vector<2x128xf32>
    %cst_48 = arith.constant 1.000000e+00 : f32
    %168 = vector.broadcast %cst_48 : f32 to vector<2x1xf32>
    %169 = arith.subf %168, %59 : vector<2x1xf32>
    %170 = vector.broadcast %169 : vector<2x1xf32> to vector<2x32xf32>
    %171 = arith.mulf %152, %170 : vector<2x32xf32>
    %c1 = arith.constant 1 : index
    %c0_49 = arith.constant 0 : index
    %c0_50 = arith.constant 0 : index
    %172 = vector.load %arg6[%c1, %c0_49, %c0_50] : memref<2x32x128xf32, #tpu.memory_space<vmem>>, vector<1x32x128xf32>
    %173 = vector.shape_cast %172 : vector<1x32x128xf32> to vector<32x128xf32>
    %cst_51 = arith.constant dense<0.000000e+00> : vector<2x128xf32>
    %174 = tpu.matmul %171, %173, %cst_51 {dimension_numbers = #tpu.dot_dimension_numbers<[1], [0], [0], [1], [0, 0, 1, 1], [], []>} : vector<2x32xf32>, vector<32x128xf32>, vector<2x128xf32> -> vector<2x128xf32>
    %175 = arith.addf %167, %174 : vector<2x128xf32>
    %176 = arith.addf %69, %175 : vector<2x128xf32>
    %c0_52 = arith.constant 0 : index
    %c0_53 = arith.constant 0 : index
    %c0_54 = arith.constant 0 : index
    %177 = vector.load %arg9[%c0_52, %c0_53, %c0_54] : memref<7x2x128xf32, #tpu.memory_space<vmem>>, vector<1x2x128xf32>
    %178 = vector.shape_cast %177 : vector<1x2x128xf32> to vector<2x128xf32>
    %179 = vector.shape_cast %176 : vector<2x128xf32> to vector<1x2x128xf32>
    tpu.vector_store %arg9[%c0_52, %c0_53, %c0_54], %179 {strides = array<i32>} : memref<7x2x128xf32, #tpu.memory_space<vmem>>, vector<1x2x128xf32>,
    %c0_55 = arith.constant 0 : index
    %c0_56 = arith.constant 0 : index
    %c0_57 = arith.constant 0 : index
    %180 = vector.load %arg10[%c0_55, %c0_56, %c0_57] : memref<7x2x8xf32, #tpu.memory_space<vmem>>, vector<1x2x8xf32>
    %181 = vector.shape_cast %180 : vector<1x2x8xf32> to vector<2x8xf32>
    %182 = vector.shape_cast %162 : vector<2x8xf32> to vector<1x2x8xf32>
    tpu.vector_store %arg10[%c0_55, %c0_56, %c0_57], %182 {strides = array<i32>} : memref<7x2x8xf32, #tpu.memory_space<vmem>>, vector<1x2x8xf32>,
    %c1_58 = arith.constant 1 : index
    %c0_59 = arith.constant 0 : index
    %c0_60 = arith.constant 0 : index
    %183 = vector.load %arg0[%c1_58, %c0_59, %c0_60] : memref<7x2x128xf32, #tpu.memory_space<vmem>>, vector<1x2x128xf32>
    %184 = vector.shape_cast %183 : vector<1x2x128xf32> to vector<2x128xf32>
    %185 = arith.addf %184, %65 : vector<2x128xf32>
    %186 = vector.extract_strided_slice %185 {offsets = [0, 0], sizes = [2, 32], strides = [1, 1]} : vector<2x128xf32> to vector<2x32xf32>
    %187 = arith.negf %186 : vector<2x32xf32>
    %188 = math.exp %187 : vector<2x32xf32>
    %cst_61 = arith.constant 1.000000e+00 : f32
    %189 = vector.broadcast %cst_61 : f32 to vector<2x32xf32>
    %190 = arith.addf %189, %188 : vector<2x32xf32>
    %191 = arith.divf %189, %190 : vector<2x32xf32>
    %192 = vector.extract_strided_slice %185 {offsets = [0, 32], sizes = [2, 32], strides = [1, 1]} : vector<2x128xf32> to vector<2x32xf32>
    %193 = arith.negf %192 : vector<2x32xf32>
    %194 = math.exp %193 : vector<2x32xf32>
    %cst_62 = arith.constant 1.000000e+00 : f32
    %195 = vector.broadcast %cst_62 : f32 to vector<2x32xf32>
    %196 = arith.addf %195, %194 : vector<2x32xf32>
    %197 = arith.divf %195, %196 : vector<2x32xf32>
    %198 = vector.extract_strided_slice %185 {offsets = [0, 64], sizes = [2, 32], strides = [1, 1]} : vector<2x128xf32> to vector<2x32xf32>
    %199 = math.tanh %198 : vector<2x32xf32>
    %200 = vector.extract_strided_slice %185 {offsets = [0, 96], sizes = [2, 32], strides = [1, 1]} : vector<2x128xf32> to vector<2x32xf32>
    %201 = arith.negf %200 : vector<2x32xf32>
    %202 = math.exp %201 : vector<2x32xf32>
    %cst_63 = arith.constant 1.000000e+00 : f32
    %203 = vector.broadcast %cst_63 : f32 to vector<2x32xf32>
    %204 = arith.addf %203, %202 : vector<2x32xf32>
    %205 = arith.divf %203, %204 : vector<2x32xf32>
    %206 = arith.mulf %197, %52 : vector<2x32xf32>
    %207 = arith.mulf %191, %199 : vector<2x32xf32>
    %208 = arith.addf %206, %207 : vector<2x32xf32>
    %209 = math.tanh %208 : vector<2x32xf32>
    %210 = arith.mulf %205, %209 : vector<2x32xf32>
    %c1_64 = arith.constant 1 : index
    %c0_65 = arith.constant 0 : index
    %c0_66 = arith.constant 0 : index
    %211 = vector.load %arg1[%c1_64, %c0_65, %c0_66] : memref<7x2x128xf32, #tpu.memory_space<vmem>>, vector<1x2x128xf32>
    %212 = vector.shape_cast %211 : vector<1x2x128xf32> to vector<2x128xf32>
    %213 = vector.extract_strided_slice %212 {offsets = [0, 0], sizes = [2, 32], strides = [1, 1]} : vector<2x128xf32> to vector<2x32xf32>
    %214 = vector.extract_strided_slice %212 {offsets = [0, 32], sizes = [2, 8], strides = [1, 1]} : vector<2x128xf32> to vector<2x8xf32>
    %215 = vector.extract_strided_slice %212 {offsets = [0, 40], sizes = [2, 1], strides = [1, 1]} : vector<2x128xf32> to vector<2x1xf32>
    %c0_67 = arith.constant 0 : index
    %c0_68 = arith.constant 0 : index
    %216 = vector.load %arg4[%c0_67, %c0_68] : memref<32x384xf32, #tpu.memory_space<vmem>>, vector<32x384xf32>
    %cst_69 = arith.constant dense<0.000000e+00> : vector<2x384xf32>
    %217 = tpu.matmul %210, %216, %cst_69 {dimension_numbers = #tpu.dot_dimension_numbers<[1], [0], [0], [1], [0, 0, 1, 1], [], []>} : vector<2x32xf32>, vector<32x384xf32>, vector<2x384xf32> -> vector<2x384xf32>
    %c0_70 = arith.constant 0 : index
    %c0_71 = arith.constant 0 : index
    %218 = vector.load %arg5[%c0_70, %c0_71] : memref<1x384xf32, #tpu.memory_space<vmem>>, vector<1x384xf32>
    %219 = vector.broadcast %218 : vector<1x384xf32> to vector<2x384xf32>
    %220 = arith.addf %217, %219 : vector<2x384xf32>
    %221 = vector.extract_strided_slice %220 {offsets = [0, 0], sizes = [2, 128], strides = [1, 1]} : vector<2x384xf32> to vector<2x128xf32>
    %222 = vector.extract_strided_slice %220 {offsets = [0, 128], sizes = [2, 32], strides = [1, 1]} : vector<2x384xf32> to vector<2x32xf32>
    %223 = vector.extract_strided_slice %220 {offsets = [0, 160], sizes = [2, 32], strides = [1, 1]} : vector<2x384xf32> to vector<2x32xf32>
    %224 = vector.extract_strided_slice %220 {offsets = [0, 192], sizes = [2, 32], strides = [1, 1]} : vector<2x384xf32> to vector<2x32xf32>
    %225 = vector.extract_strided_slice %220 {offsets = [0, 256], sizes = [2, 128], strides = [1, 1]} : vector<2x384xf32> to vector<2x128xf32>
    %226 = arith.mulf %76, %214 : vector<2x8xf32>
    %cst_72 = arith.constant dense<0.000000e+00> : vector<2xf32>
    %227 = vector.multi_reduction <add>, %226, %cst_72 [1] : vector<2x8xf32> to vector<2xf32>
    %228 = vector.shape_cast %227 : vector<2xf32> to vector<2x1xf32>
    %cst_73 = arith.constant 1.000000e+00 : f32
    %229 = vector.broadcast %cst_73 : f32 to vector<2x1xf32>
    %230 = arith.subf %229, %228 : vector<2x1xf32>
    %231 = arith.mulf %230, %215 : vector<2x1xf32>
    %232 = arith.maximumf %76, %214 : vector<2x8xf32>
    %233 = vector.broadcast %0 : vector<1x32xf32> to vector<2x32xf32>
    %234 = arith.addf %233, %213 : vector<2x32xf32>
    %235 = arith.mulf %234, %234 : vector<2x32xf32>
    %cst_74 = arith.constant dense<0.000000e+00> : vector<2xf32>
    %236 = vector.multi_reduction <add>, %235, %cst_74 [1] : vector<2x32xf32> to vector<2xf32>
    %237 = vector.shape_cast %236 : vector<2xf32> to vector<2x1xf32>
    %cst_75 = arith.constant 1.000000e-30 : f32
    %238 = vector.broadcast %cst_75 : f32 to vector<2x1xf32>
    %239 = arith.addf %237, %238 : vector<2x1xf32>
    %240 = math.rsqrt %239 : vector<2x1xf32>
    %241 = vector.broadcast %240 : vector<2x1xf32> to vector<2x32xf32>
    %242 = arith.mulf %234, %241 : vector<2x32xf32>
    %243 = vector.broadcast %231 : vector<2x1xf32> to vector<2x8xf32>
    %244 = arith.mulf %214, %243 : vector<2x8xf32>
    %245 = vector.shape_cast %244 : vector<2x8xf32> to vector<2x8x1xf32>
    %246 = vector.shape_cast %242 : vector<2x32xf32> to vector<2x1x32xf32>
    %247 = vector.broadcast %245 : vector<2x8x1xf32> to vector<2x8x32xf32>
    %248 = vector.broadcast %246 : vector<2x1x32xf32> to vector<2x8x32xf32>
    %249 = arith.mulf %247, %248 : vector<2x8x32xf32>
    %250 = arith.addf %143, %249 : vector<2x8x32xf32>
    %251 = vector.broadcast %215 : vector<2x1xf32> to vector<2x8xf32>
    %252 = arith.mulf %214, %251 : vector<2x8xf32>
    %253 = vector.shape_cast %214 : vector<2x8xf32> to vector<2x8x1xf32>
    %254 = vector.broadcast %253 : vector<2x8x1xf32> to vector<2x8x32xf32>
    %255 = arith.mulf %250, %254 : vector<2x8x32xf32>
    %cst_76 = arith.constant dense<0.000000e+00> : vector<2x32xf32>
    %256 = vector.multi_reduction <add>, %255, %cst_76 [1] : vector<2x8x32xf32> to vector<2x32xf32>
    %257 = arith.mulf %256, %223 : vector<2x32xf32>
    %cst_77 = arith.constant dense<0.000000e+00> : vector<2xf32>
    %258 = vector.multi_reduction <add>, %257, %cst_77 [1] : vector<2x32xf32> to vector<2xf32>
    %259 = vector.shape_cast %258 : vector<2xf32> to vector<2x1xf32>
    %260 = arith.negf %259 : vector<2x1xf32>
    %261 = math.exp %260 : vector<2x1xf32>
    %cst_78 = arith.constant 1.000000e+00 : f32
    %262 = vector.broadcast %cst_78 : f32 to vector<2x1xf32>
    %263 = arith.addf %262, %261 : vector<2x1xf32>
    %264 = arith.divf %262, %263 : vector<2x1xf32>
    %265 = vector.shape_cast %252 : vector<2x8xf32> to vector<2x8x1xf32>
    %266 = vector.shape_cast %264 : vector<2x1xf32> to vector<2x1x1xf32>
    %267 = vector.broadcast %266 : vector<2x1x1xf32> to vector<2x8x1xf32>
    %268 = arith.mulf %265, %267 : vector<2x8x1xf32>
    %cst_79 = arith.constant 1.000000e+00 : f32
    %269 = vector.broadcast %cst_79 : f32 to vector<2x8x1xf32>
    %270 = arith.subf %269, %268 : vector<2x8x1xf32>
    %271 = vector.broadcast %270 : vector<2x8x1xf32> to vector<2x8x32xf32>
    %272 = arith.mulf %250, %271 : vector<2x8x32xf32>
    %273 = vector.shape_cast %252 : vector<2x8xf32> to vector<2x8x1xf32>
    %274 = vector.broadcast %264 : vector<2x1xf32> to vector<2x32xf32>
    %275 = arith.mulf %274, %224 : vector<2x32xf32>
    %276 = vector.shape_cast %275 : vector<2x32xf32> to vector<2x1x32xf32>
    %277 = vector.broadcast %273 : vector<2x8x1xf32> to vector<2x8x32xf32>
    %278 = vector.broadcast %276 : vector<2x1x32xf32> to vector<2x8x32xf32>
    %279 = arith.mulf %277, %278 : vector<2x8x32xf32>
    %280 = arith.addf %272, %279 : vector<2x8x32xf32>
    %281 = vector.shape_cast %214 : vector<2x8xf32> to vector<2x8x1xf32>
    %282 = vector.broadcast %281 : vector<2x8x1xf32> to vector<2x8x32xf32>
    %283 = arith.mulf %280, %282 : vector<2x8x32xf32>
    %cst_80 = arith.constant dense<0.000000e+00> : vector<2x32xf32>
    %284 = vector.multi_reduction <add>, %283, %cst_80 [1] : vector<2x8x32xf32> to vector<2x32xf32>
    %285 = arith.mulf %284, %284 : vector<2x32xf32>
    %cst_81 = arith.constant dense<0.000000e+00> : vector<2xf32>
    %286 = vector.multi_reduction <add>, %285, %cst_81 [1] : vector<2x32xf32> to vector<2xf32>
    %287 = vector.shape_cast %286 : vector<2xf32> to vector<2x1xf32>
    %cst_82 = arith.constant 1.000000e-30 : f32
    %288 = vector.broadcast %cst_82 : f32 to vector<2x1xf32>
    %289 = arith.addf %287, %288 : vector<2x1xf32>
    %290 = math.rsqrt %289 : vector<2x1xf32>
    %cst_83 = arith.constant 5.000000e-01 : f32
    %291 = vector.broadcast %cst_83 : f32 to vector<2x8xf32>
    %292 = arith.cmpf ogt, %252, %291 : vector<2x8xf32>
    %cst_84 = arith.constant 1.000000e+00 : f32
    %293 = vector.shape_cast %290 : vector<2x1xf32> to vector<2x1xf32>
    %294 = vector.broadcast %293 : vector<2x1xf32> to vector<2x8xf32>
    %295 = vector.broadcast %cst_84 : f32 to vector<2x8xf32>
    %296 = arith.select %292, %294, %295 : vector<2x8xi1>, vector<2x8xf32>
    %297 = vector.shape_cast %296 : vector<2x8xf32> to vector<2x8x1xf32>
    %298 = vector.broadcast %297 : vector<2x8x1xf32> to vector<2x8x32xf32>
    %299 = arith.mulf %280, %298 : vector<2x8x32xf32>
    %300 = vector.shape_cast %214 : vector<2x8xf32> to vector<2x8x1xf32>
    %301 = vector.broadcast %300 : vector<2x8x1xf32> to vector<2x8x32xf32>
    %302 = arith.mulf %299, %301 : vector<2x8x32xf32>
    %cst_85 = arith.constant dense<0.000000e+00> : vector<2x32xf32>
    %303 = vector.multi_reduction <add>, %302, %cst_85 [1] : vector<2x8x32xf32> to vector<2x32xf32>
    %cst_86 = arith.constant 5.000000e-01 : f32
    %304 = vector.broadcast %cst_86 : f32 to vector<2x1xf32>
    %305 = arith.cmpf ogt, %215, %304 : vector<2x1xf32>
    %306 = vector.shape_cast %305 : vector<2x1xi1> to vector<2x1xi1>
    %307 = vector.broadcast %306 : vector<2x1xi1> to vector<2x32xi1>
    %308 = arith.select %307, %303, %152 : vector<2x32xi1>, vector<2x32xf32>
    %309 = vector.shape_cast %222 : vector<2x32xf32> to vector<2x1x32xf32>
    %310 = vector.broadcast %309 : vector<2x1x32xf32> to vector<2x8x32xf32>
    %311 = arith.mulf %299, %310 : vector<2x8x32xf32>
    %cst_87 = arith.constant dense<0.000000e+00> : vector<2x8xf32>
    %312 = vector.multi_reduction <add>, %311, %cst_87 [2] : vector<2x8x32xf32> to vector<2x8xf32>
    %cst_88 = arith.constant 1.000000e+00 : f32
    %313 = vector.broadcast %cst_88 : f32 to vector<2x8xf32>
    %314 = arith.subf %312, %313 : vector<2x8xf32>
    %cst_89 = arith.constant 5.000000e-01 : f32
    %315 = vector.broadcast %cst_89 : f32 to vector<2x8xf32>
    %316 = arith.cmpf ogt, %232, %315 : vector<2x8xf32>
    %cst_90 = arith.constant 0xFF800000 : f32
    %317 = vector.broadcast %cst_90 : f32 to vector<2x8xf32>
    %318 = arith.select %316, %314, %317 : vector<2x8xi1>, vector<2x8xf32>
    %319 = vector.broadcast %215 : vector<2x1xf32> to vector<2x32xf32>
    %320 = arith.mulf %303, %319 : vector<2x32xf32>
    %c0_91 = arith.constant 0 : index
    %c0_92 = arith.constant 0 : index
    %c0_93 = arith.constant 0 : index
    %321 = vector.load %arg6[%c0_91, %c0_92, %c0_93] : memref<2x32x128xf32, #tpu.memory_space<vmem>>, vector<1x32x128xf32>
    %322 = vector.shape_cast %321 : vector<1x32x128xf32> to vector<32x128xf32>
    %cst_94 = arith.constant dense<0.000000e+00> : vector<2x128xf32>
    %323 = tpu.matmul %320, %322, %cst_94 {dimension_numbers = #tpu.dot_dimension_numbers<[1], [0], [0], [1], [0, 0, 1, 1], [], []>} : vector<2x32xf32>, vector<32x128xf32>, vector<2x128xf32> -> vector<2x128xf32>
    %cst_95 = arith.constant 1.000000e+00 : f32
    %324 = vector.broadcast %cst_95 : f32 to vector<2x1xf32>
    %325 = arith.subf %324, %215 : vector<2x1xf32>
    %326 = vector.broadcast %325 : vector<2x1xf32> to vector<2x32xf32>
    %327 = arith.mulf %308, %326 : vector<2x32xf32>
    %c1_96 = arith.constant 1 : index
    %c0_97 = arith.constant 0 : index
    %c0_98 = arith.constant 0 : index
    %328 = vector.load %arg6[%c1_96, %c0_97, %c0_98] : memref<2x32x128xf32, #tpu.memory_space<vmem>>, vector<1x32x128xf32>
    %329 = vector.shape_cast %328 : vector<1x32x128xf32> to vector<32x128xf32>
    %cst_99 = arith.constant dense<0.000000e+00> : vector<2x128xf32>
    %330 = tpu.matmul %327, %329, %cst_99 {dimension_numbers = #tpu.dot_dimension_numbers<[1], [0], [0], [1], [0, 0, 1, 1], [], []>} : vector<2x32xf32>, vector<32x128xf32>, vector<2x128xf32> -> vector<2x128xf32>
    %331 = arith.addf %323, %330 : vector<2x128xf32>
    %332 = arith.addf %225, %331 : vector<2x128xf32>
    %c1_100 = arith.constant 1 : index
    %c0_101 = arith.constant 0 : index
    %c0_102 = arith.constant 0 : index
    %333 = vector.load %arg9[%c1_100, %c0_101, %c0_102] : memref<7x2x128xf32, #tpu.memory_space<vmem>>, vector<1x2x128xf32>
    %334 = vector.shape_cast %333 : vector<1x2x128xf32> to vector<2x128xf32>
    %335 = vector.shape_cast %332 : vector<2x128xf32> to vector<1x2x128xf32>
    tpu.vector_store %arg9[%c1_100, %c0_101, %c0_102], %335 {strides = array<i32>} : memref<7x2x128xf32, #tpu.memory_space<vmem>>, vector<1x2x128xf32>,
    %c1_103 = arith.constant 1 : index
    %c0_104 = arith.constant 0 : index
    %c0_105 = arith.constant 0 : index
    %336 = vector.load %arg10[%c1_103, %c0_104, %c0_105] : memref<7x2x8xf32, #tpu.memory_space<vmem>>, vector<1x2x8xf32>
    %337 = vector.shape_cast %336 : vector<1x2x8xf32> to vector<2x8xf32>
    %338 = vector.shape_cast %318 : vector<2x8xf32> to vector<1x2x8xf32>
    tpu.vector_store %arg10[%c1_103, %c0_104, %c0_105], %338 {strides = array<i32>} : memref<7x2x8xf32, #tpu.memory_space<vmem>>, vector<1x2x8xf32>,
    %c2 = arith.constant 2 : index
    %c0_106 = arith.constant 0 : index
    %c0_107 = arith.constant 0 : index
    %339 = vector.load %arg0[%c2, %c0_106, %c0_107] : memref<7x2x128xf32, #tpu.memory_space<vmem>>, vector<1x2x128xf32>
    %340 = vector.shape_cast %339 : vector<1x2x128xf32> to vector<2x128xf32>
    %341 = arith.addf %340, %221 : vector<2x128xf32>
    %342 = vector.extract_strided_slice %341 {offsets = [0, 0], sizes = [2, 32], strides = [1, 1]} : vector<2x128xf32> to vector<2x32xf32>
    %343 = arith.negf %342 : vector<2x32xf32>
    %344 = math.exp %343 : vector<2x32xf32>
    %cst_108 = arith.constant 1.000000e+00 : f32
    %345 = vector.broadcast %cst_108 : f32 to vector<2x32xf32>
    %346 = arith.addf %345, %344 : vector<2x32xf32>
    %347 = arith.divf %345, %346 : vector<2x32xf32>
    %348 = vector.extract_strided_slice %341 {offsets = [0, 32], sizes = [2, 32], strides = [1, 1]} : vector<2x128xf32> to vector<2x32xf32>
    %349 = arith.negf %348 : vector<2x32xf32>
    %350 = math.exp %349 : vector<2x32xf32>
    %cst_109 = arith.constant 1.000000e+00 : f32
    %351 = vector.broadcast %cst_109 : f32 to vector<2x32xf32>
    %352 = arith.addf %351, %350 : vector<2x32xf32>
    %353 = arith.divf %351, %352 : vector<2x32xf32>
    %354 = vector.extract_strided_slice %341 {offsets = [0, 64], sizes = [2, 32], strides = [1, 1]} : vector<2x128xf32> to vector<2x32xf32>
    %355 = math.tanh %354 : vector<2x32xf32>
    %356 = vector.extract_strided_slice %341 {offsets = [0, 96], sizes = [2, 32], strides = [1, 1]} : vector<2x128xf32> to vector<2x32xf32>
    %357 = arith.negf %356 : vector<2x32xf32>
    %358 = math.exp %357 : vector<2x32xf32>
    %cst_110 = arith.constant 1.000000e+00 : f32
    %359 = vector.broadcast %cst_110 : f32 to vector<2x32xf32>
    %360 = arith.addf %359, %358 : vector<2x32xf32>
    %361 = arith.divf %359, %360 : vector<2x32xf32>
    %362 = arith.mulf %353, %208 : vector<2x32xf32>
    %363 = arith.mulf %347, %355 : vector<2x32xf32>
    %364 = arith.addf %362, %363 : vector<2x32xf32>
    %365 = math.tanh %364 : vector<2x32xf32>
    %366 = arith.mulf %361, %365 : vector<2x32xf32>
    %c2_111 = arith.constant 2 : index
    %c0_112 = arith.constant 0 : index
    %c0_113 = arith.constant 0 : index
    %367 = vector.load %arg1[%c2_111, %c0_112, %c0_113] : memref<7x2x128xf32, #tpu.memory_space<vmem>>, vector<1x2x128xf32>
    %368 = vector.shape_cast %367 : vector<1x2x128xf32> to vector<2x128xf32>
    %369 = vector.extract_strided_slice %368 {offsets = [0, 0], sizes = [2, 32], strides = [1, 1]} : vector<2x128xf32> to vector<2x32xf32>
    %370 = vector.extract_strided_slice %368 {offsets = [0, 32], sizes = [2, 8], strides = [1, 1]} : vector<2x128xf32> to vector<2x8xf32>
    %371 = vector.extract_strided_slice %368 {offsets = [0, 40], sizes = [2, 1], strides = [1, 1]} : vector<2x128xf32> to vector<2x1xf32>
    %c0_114 = arith.constant 0 : index
    %c0_115 = arith.constant 0 : index
    %372 = vector.load %arg4[%c0_114, %c0_115] : memref<32x384xf32, #tpu.memory_space<vmem>>, vector<32x384xf32>
    %cst_116 = arith.constant dense<0.000000e+00> : vector<2x384xf32>
    %373 = tpu.matmul %366, %372, %cst_116 {dimension_numbers = #tpu.dot_dimension_numbers<[1], [0], [0], [1], [0, 0, 1, 1], [], []>} : vector<2x32xf32>, vector<32x384xf32>, vector<2x384xf32> -> vector<2x384xf32>
    %c0_117 = arith.constant 0 : index
    %c0_118 = arith.constant 0 : index
    %374 = vector.load %arg5[%c0_117, %c0_118] : memref<1x384xf32, #tpu.memory_space<vmem>>, vector<1x384xf32>
    %375 = vector.broadcast %374 : vector<1x384xf32> to vector<2x384xf32>
    %376 = arith.addf %373, %375 : vector<2x384xf32>
    %377 = vector.extract_strided_slice %376 {offsets = [0, 0], sizes = [2, 128], strides = [1, 1]} : vector<2x384xf32> to vector<2x128xf32>
    %378 = vector.extract_strided_slice %376 {offsets = [0, 128], sizes = [2, 32], strides = [1, 1]} : vector<2x384xf32> to vector<2x32xf32>
    %379 = vector.extract_strided_slice %376 {offsets = [0, 160], sizes = [2, 32], strides = [1, 1]} : vector<2x384xf32> to vector<2x32xf32>
    %380 = vector.extract_strided_slice %376 {offsets = [0, 192], sizes = [2, 32], strides = [1, 1]} : vector<2x384xf32> to vector<2x32xf32>
    %381 = vector.extract_strided_slice %376 {offsets = [0, 256], sizes = [2, 128], strides = [1, 1]} : vector<2x384xf32> to vector<2x128xf32>
    %382 = arith.mulf %232, %370 : vector<2x8xf32>
    %cst_119 = arith.constant dense<0.000000e+00> : vector<2xf32>
    %383 = vector.multi_reduction <add>, %382, %cst_119 [1] : vector<2x8xf32> to vector<2xf32>
    %384 = vector.shape_cast %383 : vector<2xf32> to vector<2x1xf32>
    %cst_120 = arith.constant 1.000000e+00 : f32
    %385 = vector.broadcast %cst_120 : f32 to vector<2x1xf32>
    %386 = arith.subf %385, %384 : vector<2x1xf32>
    %387 = arith.mulf %386, %371 : vector<2x1xf32>
    %388 = arith.maximumf %232, %370 : vector<2x8xf32>
    %389 = vector.broadcast %0 : vector<1x32xf32> to vector<2x32xf32>
    %390 = arith.addf %389, %369 : vector<2x32xf32>
    %391 = arith.mulf %390, %390 : vector<2x32xf32>
    %cst_121 = arith.constant dense<0.000000e+00> : vector<2xf32>
    %392 = vector.multi_reduction <add>, %391, %cst_121 [1] : vector<2x32xf32> to vector<2xf32>
    %393 = vector.shape_cast %392 : vector<2xf32> to vector<2x1xf32>
    %cst_122 = arith.constant 1.000000e-30 : f32
    %394 = vector.broadcast %cst_122 : f32 to vector<2x1xf32>
    %395 = arith.addf %393, %394 : vector<2x1xf32>
    %396 = math.rsqrt %395 : vector<2x1xf32>
    %397 = vector.broadcast %396 : vector<2x1xf32> to vector<2x32xf32>
    %398 = arith.mulf %390, %397 : vector<2x32xf32>
    %399 = vector.broadcast %387 : vector<2x1xf32> to vector<2x8xf32>
    %400 = arith.mulf %370, %399 : vector<2x8xf32>
    %401 = vector.shape_cast %400 : vector<2x8xf32> to vector<2x8x1xf32>
    %402 = vector.shape_cast %398 : vector<2x32xf32> to vector<2x1x32xf32>
    %403 = vector.broadcast %401 : vector<2x8x1xf32> to vector<2x8x32xf32>
    %404 = vector.broadcast %402 : vector<2x1x32xf32> to vector<2x8x32xf32>
    %405 = arith.mulf %403, %404 : vector<2x8x32xf32>
    %406 = arith.addf %299, %405 : vector<2x8x32xf32>
    %407 = vector.broadcast %371 : vector<2x1xf32> to vector<2x8xf32>
    %408 = arith.mulf %370, %407 : vector<2x8xf32>
    %409 = vector.shape_cast %370 : vector<2x8xf32> to vector<2x8x1xf32>
    %410 = vector.broadcast %409 : vector<2x8x1xf32> to vector<2x8x32xf32>
    %411 = arith.mulf %406, %410 : vector<2x8x32xf32>
    %cst_123 = arith.constant dense<0.000000e+00> : vector<2x32xf32>
    %412 = vector.multi_reduction <add>, %411, %cst_123 [1] : vector<2x8x32xf32> to vector<2x32xf32>
    %413 = arith.mulf %412, %379 : vector<2x32xf32>
    %cst_124 = arith.constant dense<0.000000e+00> : vector<2xf32>
    %414 = vector.multi_reduction <add>, %413, %cst_124 [1] : vector<2x32xf32> to vector<2xf32>
    %415 = vector.shape_cast %414 : vector<2xf32> to vector<2x1xf32>
    %416 = arith.negf %415 : vector<2x1xf32>
    %417 = math.exp %416 : vector<2x1xf32>
    %cst_125 = arith.constant 1.000000e+00 : f32
    %418 = vector.broadcast %cst_125 : f32 to vector<2x1xf32>
    %419 = arith.addf %418, %417 : vector<2x1xf32>
    %420 = arith.divf %418, %419 : vector<2x1xf32>
    %421 = vector.shape_cast %408 : vector<2x8xf32> to vector<2x8x1xf32>
    %422 = vector.shape_cast %420 : vector<2x1xf32> to vector<2x1x1xf32>
    %423 = vector.broadcast %422 : vector<2x1x1xf32> to vector<2x8x1xf32>
    %424 = arith.mulf %421, %423 : vector<2x8x1xf32>
    %cst_126 = arith.constant 1.000000e+00 : f32
    %425 = vector.broadcast %cst_126 : f32 to vector<2x8x1xf32>
    %426 = arith.subf %425, %424 : vector<2x8x1xf32>
    %427 = vector.broadcast %426 : vector<2x8x1xf32> to vector<2x8x32xf32>
    %428 = arith.mulf %406, %427 : vector<2x8x32xf32>
    %429 = vector.shape_cast %408 : vector<2x8xf32> to vector<2x8x1xf32>
    %430 = vector.broadcast %420 : vector<2x1xf32> to vector<2x32xf32>
    %431 = arith.mulf %430, %380 : vector<2x32xf32>
    %432 = vector.shape_cast %431 : vector<2x32xf32> to vector<2x1x32xf32>
    %433 = vector.broadcast %429 : vector<2x8x1xf32> to vector<2x8x32xf32>
    %434 = vector.broadcast %432 : vector<2x1x32xf32> to vector<2x8x32xf32>
    %435 = arith.mulf %433, %434 : vector<2x8x32xf32>
    %436 = arith.addf %428, %435 : vector<2x8x32xf32>
    %437 = vector.shape_cast %370 : vector<2x8xf32> to vector<2x8x1xf32>
    %438 = vector.broadcast %437 : vector<2x8x1xf32> to vector<2x8x32xf32>
    %439 = arith.mulf %436, %438 : vector<2x8x32xf32>
    %cst_127 = arith.constant dense<0.000000e+00> : vector<2x32xf32>
    %440 = vector.multi_reduction <add>, %439, %cst_127 [1] : vector<2x8x32xf32> to vector<2x32xf32>
    %441 = arith.mulf %440, %440 : vector<2x32xf32>
    %cst_128 = arith.constant dense<0.000000e+00> : vector<2xf32>
    %442 = vector.multi_reduction <add>, %441, %cst_128 [1] : vector<2x32xf32> to vector<2xf32>
    %443 = vector.shape_cast %442 : vector<2xf32> to vector<2x1xf32>
    %cst_129 = arith.constant 1.000000e-30 : f32
    %444 = vector.broadcast %cst_129 : f32 to vector<2x1xf32>
    %445 = arith.addf %443, %444 : vector<2x1xf32>
    %446 = math.rsqrt %445 : vector<2x1xf32>
    %cst_130 = arith.constant 5.000000e-01 : f32
    %447 = vector.broadcast %cst_130 : f32 to vector<2x8xf32>
    %448 = arith.cmpf ogt, %408, %447 : vector<2x8xf32>
    %cst_131 = arith.constant 1.000000e+00 : f32
    %449 = vector.shape_cast %446 : vector<2x1xf32> to vector<2x1xf32>
    %450 = vector.broadcast %449 : vector<2x1xf32> to vector<2x8xf32>
    %451 = vector.broadcast %cst_131 : f32 to vector<2x8xf32>
    %452 = arith.select %448, %450, %451 : vector<2x8xi1>, vector<2x8xf32>
    %453 = vector.shape_cast %452 : vector<2x8xf32> to vector<2x8x1xf32>
    %454 = vector.broadcast %453 : vector<2x8x1xf32> to vector<2x8x32xf32>
    %455 = arith.mulf %436, %454 : vector<2x8x32xf32>
    %456 = vector.shape_cast %370 : vector<2x8xf32> to vector<2x8x1xf32>
    %457 = vector.broadcast %456 : vector<2x8x1xf32> to vector<2x8x32xf32>
    %458 = arith.mulf %455, %457 : vector<2x8x32xf32>
    %cst_132 = arith.constant dense<0.000000e+00> : vector<2x32xf32>
    %459 = vector.multi_reduction <add>, %458, %cst_132 [1] : vector<2x8x32xf32> to vector<2x32xf32>
    %cst_133 = arith.constant 5.000000e-01 : f32
    %460 = vector.broadcast %cst_133 : f32 to vector<2x1xf32>
    %461 = arith.cmpf ogt, %371, %460 : vector<2x1xf32>
    %462 = vector.shape_cast %461 : vector<2x1xi1> to vector<2x1xi1>
    %463 = vector.broadcast %462 : vector<2x1xi1> to vector<2x32xi1>
    %464 = arith.select %463, %459, %308 : vector<2x32xi1>, vector<2x32xf32>
    %465 = vector.shape_cast %378 : vector<2x32xf32> to vector<2x1x32xf32>
    %466 = vector.broadcast %465 : vector<2x1x32xf32> to vector<2x8x32xf32>
    %467 = arith.mulf %455, %466 : vector<2x8x32xf32>
    %cst_134 = arith.constant dense<0.000000e+00> : vector<2x8xf32>
    %468 = vector.multi_reduction <add>, %467, %cst_134 [2] : vector<2x8x32xf32> to vector<2x8xf32>
    %cst_135 = arith.constant 1.000000e+00 : f32
    %469 = vector.broadcast %cst_135 : f32 to vector<2x8xf32>
    %470 = arith.subf %468, %469 : vector<2x8xf32>
    %cst_136 = arith.constant 5.000000e-01 : f32
    %471 = vector.broadcast %cst_136 : f32 to vector<2x8xf32>
    %472 = arith.cmpf ogt, %388, %471 : vector<2x8xf32>
    %cst_137 = arith.constant 0xFF800000 : f32
    %473 = vector.broadcast %cst_137 : f32 to vector<2x8xf32>
    %474 = arith.select %472, %470, %473 : vector<2x8xi1>, vector<2x8xf32>
    %475 = vector.broadcast %371 : vector<2x1xf32> to vector<2x32xf32>
    %476 = arith.mulf %459, %475 : vector<2x32xf32>
    %c0_138 = arith.constant 0 : index
    %c0_139 = arith.constant 0 : index
    %c0_140 = arith.constant 0 : index
    %477 = vector.load %arg6[%c0_138, %c0_139, %c0_140] : memref<2x32x128xf32, #tpu.memory_space<vmem>>, vector<1x32x128xf32>
    %478 = vector.shape_cast %477 : vector<1x32x128xf32> to vector<32x128xf32>
    %cst_141 = arith.constant dense<0.000000e+00> : vector<2x128xf32>
    %479 = tpu.matmul %476, %478, %cst_141 {dimension_numbers = #tpu.dot_dimension_numbers<[1], [0], [0], [1], [0, 0, 1, 1], [], []>} : vector<2x32xf32>, vector<32x128xf32>, vector<2x128xf32> -> vector<2x128xf32>
    %cst_142 = arith.constant 1.000000e+00 : f32
    %480 = vector.broadcast %cst_142 : f32 to vector<2x1xf32>
    %481 = arith.subf %480, %371 : vector<2x1xf32>
    %482 = vector.broadcast %481 : vector<2x1xf32> to vector<2x32xf32>
    %483 = arith.mulf %464, %482 : vector<2x32xf32>
    %c1_143 = arith.constant 1 : index
    %c0_144 = arith.constant 0 : index
    %c0_145 = arith.constant 0 : index
    %484 = vector.load %arg6[%c1_143, %c0_144, %c0_145] : memref<2x32x128xf32, #tpu.memory_space<vmem>>, vector<1x32x128xf32>
    %485 = vector.shape_cast %484 : vector<1x32x128xf32> to vector<32x128xf32>
    %cst_146 = arith.constant dense<0.000000e+00> : vector<2x128xf32>
    %486 = tpu.matmul %483, %485, %cst_146 {dimension_numbers = #tpu.dot_dimension_numbers<[1], [0], [0], [1], [0, 0, 1, 1], [], []>} : vector<2x32xf32>, vector<32x128xf32>, vector<2x128xf32> -> vector<2x128xf32>
    %487 = arith.addf %479, %486 : vector<2x128xf32>
    %488 = arith.addf %381, %487 : vector<2x128xf32>
    %c2_147 = arith.constant 2 : index
    %c0_148 = arith.constant 0 : index
    %c0_149 = arith.constant 0 : index
    %489 = vector.load %arg9[%c2_147, %c0_148, %c0_149] : memref<7x2x128xf32, #tpu.memory_space<vmem>>, vector<1x2x128xf32>
    %490 = vector.shape_cast %489 : vector<1x2x128xf32> to vector<2x128xf32>
    %491 = vector.shape_cast %488 : vector<2x128xf32> to vector<1x2x128xf32>
    tpu.vector_store %arg9[%c2_147, %c0_148, %c0_149], %491 {strides = array<i32>} : memref<7x2x128xf32, #tpu.memory_space<vmem>>, vector<1x2x128xf32>,
    %c2_150 = arith.constant 2 : index
    %c0_151 = arith.constant 0 : index
    %c0_152 = arith.constant 0 : index
    %492 = vector.load %arg10[%c2_150, %c0_151, %c0_152] : memref<7x2x8xf32, #tpu.memory_space<vmem>>, vector<1x2x8xf32>
    %493 = vector.shape_cast %492 : vector<1x2x8xf32> to vector<2x8xf32>
    %494 = vector.shape_cast %474 : vector<2x8xf32> to vector<1x2x8xf32>
    tpu.vector_store %arg10[%c2_150, %c0_151, %c0_152], %494 {strides = array<i32>} : memref<7x2x8xf32, #tpu.memory_space<vmem>>, vector<1x2x8xf32>,
    %c3 = arith.constant 3 : index
    %c0_153 = arith.constant 0 : index
    %c0_154 = arith.constant 0 : index
    %495 = vector.load %arg0[%c3, %c0_153, %c0_154] : memref<7x2x128xf32, #tpu.memory_space<vmem>>, vector<1x2x128xf32>
    %496 = vector.shape_cast %495 : vector<1x2x128xf32> to vector<2x128xf32>
    %497 = arith.addf %496, %377 : vector<2x128xf32>
    %498 = vector.extract_strided_slice %497 {offsets = [0, 0], sizes = [2, 32], strides = [1, 1]} : vector<2x128xf32> to vector<2x32xf32>
    %499 = arith.negf %498 : vector<2x32xf32>
    %500 = math.exp %499 : vector<2x32xf32>
    %cst_155 = arith.constant 1.000000e+00 : f32
    %501 = vector.broadcast %cst_155 : f32 to vector<2x32xf32>
    %502 = arith.addf %501, %500 : vector<2x32xf32>
    %503 = arith.divf %501, %502 : vector<2x32xf32>
    %504 = vector.extract_strided_slice %497 {offsets = [0, 32], sizes = [2, 32], strides = [1, 1]} : vector<2x128xf32> to vector<2x32xf32>
    %505 = arith.negf %504 : vector<2x32xf32>
    %506 = math.exp %505 : vector<2x32xf32>
    %cst_156 = arith.constant 1.000000e+00 : f32
    %507 = vector.broadcast %cst_156 : f32 to vector<2x32xf32>
    %508 = arith.addf %507, %506 : vector<2x32xf32>
    %509 = arith.divf %507, %508 : vector<2x32xf32>
    %510 = vector.extract_strided_slice %497 {offsets = [0, 64], sizes = [2, 32], strides = [1, 1]} : vector<2x128xf32> to vector<2x32xf32>
    %511 = math.tanh %510 : vector<2x32xf32>
    %512 = vector.extract_strided_slice %497 {offsets = [0, 96], sizes = [2, 32], strides = [1, 1]} : vector<2x128xf32> to vector<2x32xf32>
    %513 = arith.negf %512 : vector<2x32xf32>
    %514 = math.exp %513 : vector<2x32xf32>
    %cst_157 = arith.constant 1.000000e+00 : f32
    %515 = vector.broadcast %cst_157 : f32 to vector<2x32xf32>
    %516 = arith.addf %515, %514 : vector<2x32xf32>
    %517 = arith.divf %515, %516 : vector<2x32xf32>
    %518 = arith.mulf %509, %364 : vector<2x32xf32>
    %519 = arith.mulf %503, %511 : vector<2x32xf32>
    %520 = arith.addf %518, %519 : vector<2x32xf32>
    %521 = math.tanh %520 : vector<2x32xf32>
    %522 = arith.mulf %517, %521 : vector<2x32xf32>
    %c3_158 = arith.constant 3 : index
    %c0_159 = arith.constant 0 : index
    %c0_160 = arith.constant 0 : index
    %523 = vector.load %arg1[%c3_158, %c0_159, %c0_160] : memref<7x2x128xf32, #tpu.memory_space<vmem>>, vector<1x2x128xf32>
    %524 = vector.shape_cast %523 : vector<1x2x128xf32> to vector<2x128xf32>
    %525 = vector.extract_strided_slice %524 {offsets = [0, 0], sizes = [2, 32], strides = [1, 1]} : vector<2x128xf32> to vector<2x32xf32>
    %526 = vector.extract_strided_slice %524 {offsets = [0, 32], sizes = [2, 8], strides = [1, 1]} : vector<2x128xf32> to vector<2x8xf32>
    %527 = vector.extract_strided_slice %524 {offsets = [0, 40], sizes = [2, 1], strides = [1, 1]} : vector<2x128xf32> to vector<2x1xf32>
    %c0_161 = arith.constant 0 : index
    %c0_162 = arith.constant 0 : index
    %528 = vector.load %arg4[%c0_161, %c0_162] : memref<32x384xf32, #tpu.memory_space<vmem>>, vector<32x384xf32>
    %cst_163 = arith.constant dense<0.000000e+00> : vector<2x384xf32>
    %529 = tpu.matmul %522, %528, %cst_163 {dimension_numbers = #tpu.dot_dimension_numbers<[1], [0], [0], [1], [0, 0, 1, 1], [], []>} : vector<2x32xf32>, vector<32x384xf32>, vector<2x384xf32> -> vector<2x384xf32>
    %c0_164 = arith.constant 0 : index
    %c0_165 = arith.constant 0 : index
    %530 = vector.load %arg5[%c0_164, %c0_165] : memref<1x384xf32, #tpu.memory_space<vmem>>, vector<1x384xf32>
    %531 = vector.broadcast %530 : vector<1x384xf32> to vector<2x384xf32>
    %532 = arith.addf %529, %531 : vector<2x384xf32>
    %533 = vector.extract_strided_slice %532 {offsets = [0, 0], sizes = [2, 128], strides = [1, 1]} : vector<2x384xf32> to vector<2x128xf32>
    %534 = vector.extract_strided_slice %532 {offsets = [0, 128], sizes = [2, 32], strides = [1, 1]} : vector<2x384xf32> to vector<2x32xf32>
    %535 = vector.extract_strided_slice %532 {offsets = [0, 160], sizes = [2, 32], strides = [1, 1]} : vector<2x384xf32> to vector<2x32xf32>
    %536 = vector.extract_strided_slice %532 {offsets = [0, 192], sizes = [2, 32], strides = [1, 1]} : vector<2x384xf32> to vector<2x32xf32>
    %537 = vector.extract_strided_slice %532 {offsets = [0, 256], sizes = [2, 128], strides = [1, 1]} : vector<2x384xf32> to vector<2x128xf32>
    %538 = arith.mulf %388, %526 : vector<2x8xf32>
    %cst_166 = arith.constant dense<0.000000e+00> : vector<2xf32>
    %539 = vector.multi_reduction <add>, %538, %cst_166 [1] : vector<2x8xf32> to vector<2xf32>
    %540 = vector.shape_cast %539 : vector<2xf32> to vector<2x1xf32>
    %cst_167 = arith.constant 1.000000e+00 : f32
    %541 = vector.broadcast %cst_167 : f32 to vector<2x1xf32>
    %542 = arith.subf %541, %540 : vector<2x1xf32>
    %543 = arith.mulf %542, %527 : vector<2x1xf32>
    %544 = arith.maximumf %388, %526 : vector<2x8xf32>
    %545 = vector.broadcast %0 : vector<1x32xf32> to vector<2x32xf32>
    %546 = arith.addf %545, %525 : vector<2x32xf32>
    %547 = arith.mulf %546, %546 : vector<2x32xf32>
    %cst_168 = arith.constant dense<0.000000e+00> : vector<2xf32>
    %548 = vector.multi_reduction <add>, %547, %cst_168 [1] : vector<2x32xf32> to vector<2xf32>
    %549 = vector.shape_cast %548 : vector<2xf32> to vector<2x1xf32>
    %cst_169 = arith.constant 1.000000e-30 : f32
    %550 = vector.broadcast %cst_169 : f32 to vector<2x1xf32>
    %551 = arith.addf %549, %550 : vector<2x1xf32>
    %552 = math.rsqrt %551 : vector<2x1xf32>
    %553 = vector.broadcast %552 : vector<2x1xf32> to vector<2x32xf32>
    %554 = arith.mulf %546, %553 : vector<2x32xf32>
    %555 = vector.broadcast %543 : vector<2x1xf32> to vector<2x8xf32>
    %556 = arith.mulf %526, %555 : vector<2x8xf32>
    %557 = vector.shape_cast %556 : vector<2x8xf32> to vector<2x8x1xf32>
    %558 = vector.shape_cast %554 : vector<2x32xf32> to vector<2x1x32xf32>
    %559 = vector.broadcast %557 : vector<2x8x1xf32> to vector<2x8x32xf32>
    %560 = vector.broadcast %558 : vector<2x1x32xf32> to vector<2x8x32xf32>
    %561 = arith.mulf %559, %560 : vector<2x8x32xf32>
    %562 = arith.addf %455, %561 : vector<2x8x32xf32>
    %563 = vector.broadcast %527 : vector<2x1xf32> to vector<2x8xf32>
    %564 = arith.mulf %526, %563 : vector<2x8xf32>
    %565 = vector.shape_cast %526 : vector<2x8xf32> to vector<2x8x1xf32>
    %566 = vector.broadcast %565 : vector<2x8x1xf32> to vector<2x8x32xf32>
    %567 = arith.mulf %562, %566 : vector<2x8x32xf32>
    %cst_170 = arith.constant dense<0.000000e+00> : vector<2x32xf32>
    %568 = vector.multi_reduction <add>, %567, %cst_170 [1] : vector<2x8x32xf32> to vector<2x32xf32>
    %569 = arith.mulf %568, %535 : vector<2x32xf32>
    %cst_171 = arith.constant dense<0.000000e+00> : vector<2xf32>
    %570 = vector.multi_reduction <add>, %569, %cst_171 [1] : vector<2x32xf32> to vector<2xf32>
    %571 = vector.shape_cast %570 : vector<2xf32> to vector<2x1xf32>
    %572 = arith.negf %571 : vector<2x1xf32>
    %573 = math.exp %572 : vector<2x1xf32>
    %cst_172 = arith.constant 1.000000e+00 : f32
    %574 = vector.broadcast %cst_172 : f32 to vector<2x1xf32>
    %575 = arith.addf %574, %573 : vector<2x1xf32>
    %576 = arith.divf %574, %575 : vector<2x1xf32>
    %577 = vector.shape_cast %564 : vector<2x8xf32> to vector<2x8x1xf32>
    %578 = vector.shape_cast %576 : vector<2x1xf32> to vector<2x1x1xf32>
    %579 = vector.broadcast %578 : vector<2x1x1xf32> to vector<2x8x1xf32>
    %580 = arith.mulf %577, %579 : vector<2x8x1xf32>
    %cst_173 = arith.constant 1.000000e+00 : f32
    %581 = vector.broadcast %cst_173 : f32 to vector<2x8x1xf32>
    %582 = arith.subf %581, %580 : vector<2x8x1xf32>
    %583 = vector.broadcast %582 : vector<2x8x1xf32> to vector<2x8x32xf32>
    %584 = arith.mulf %562, %583 : vector<2x8x32xf32>
    %585 = vector.shape_cast %564 : vector<2x8xf32> to vector<2x8x1xf32>
    %586 = vector.broadcast %576 : vector<2x1xf32> to vector<2x32xf32>
    %587 = arith.mulf %586, %536 : vector<2x32xf32>
    %588 = vector.shape_cast %587 : vector<2x32xf32> to vector<2x1x32xf32>
    %589 = vector.broadcast %585 : vector<2x8x1xf32> to vector<2x8x32xf32>
    %590 = vector.broadcast %588 : vector<2x1x32xf32> to vector<2x8x32xf32>
    %591 = arith.mulf %589, %590 : vector<2x8x32xf32>
    %592 = arith.addf %584, %591 : vector<2x8x32xf32>
    %593 = vector.shape_cast %526 : vector<2x8xf32> to vector<2x8x1xf32>
    %594 = vector.broadcast %593 : vector<2x8x1xf32> to vector<2x8x32xf32>
    %595 = arith.mulf %592, %594 : vector<2x8x32xf32>
    %cst_174 = arith.constant dense<0.000000e+00> : vector<2x32xf32>
    %596 = vector.multi_reduction <add>, %595, %cst_174 [1] : vector<2x8x32xf32> to vector<2x32xf32>
    %597 = arith.mulf %596, %596 : vector<2x32xf32>
    %cst_175 = arith.constant dense<0.000000e+00> : vector<2xf32>
    %598 = vector.multi_reduction <add>, %597, %cst_175 [1] : vector<2x32xf32> to vector<2xf32>
    %599 = vector.shape_cast %598 : vector<2xf32> to vector<2x1xf32>
    %cst_176 = arith.constant 1.000000e-30 : f32
    %600 = vector.broadcast %cst_176 : f32 to vector<2x1xf32>
    %601 = arith.addf %599, %600 : vector<2x1xf32>
    %602 = math.rsqrt %601 : vector<2x1xf32>
    %cst_177 = arith.constant 5.000000e-01 : f32
    %603 = vector.broadcast %cst_177 : f32 to vector<2x8xf32>
    %604 = arith.cmpf ogt, %564, %603 : vector<2x8xf32>
    %cst_178 = arith.constant 1.000000e+00 : f32
    %605 = vector.shape_cast %602 : vector<2x1xf32> to vector<2x1xf32>
    %606 = vector.broadcast %605 : vector<2x1xf32> to vector<2x8xf32>
    %607 = vector.broadcast %cst_178 : f32 to vector<2x8xf32>
    %608 = arith.select %604, %606, %607 : vector<2x8xi1>, vector<2x8xf32>
    %609 = vector.shape_cast %608 : vector<2x8xf32> to vector<2x8x1xf32>
    %610 = vector.broadcast %609 : vector<2x8x1xf32> to vector<2x8x32xf32>
    %611 = arith.mulf %592, %610 : vector<2x8x32xf32>
    %612 = vector.shape_cast %526 : vector<2x8xf32> to vector<2x8x1xf32>
    %613 = vector.broadcast %612 : vector<2x8x1xf32> to vector<2x8x32xf32>
    %614 = arith.mulf %611, %613 : vector<2x8x32xf32>
    %cst_179 = arith.constant dense<0.000000e+00> : vector<2x32xf32>
    %615 = vector.multi_reduction <add>, %614, %cst_179 [1] : vector<2x8x32xf32> to vector<2x32xf32>
    %cst_180 = arith.constant 5.000000e-01 : f32
    %616 = vector.broadcast %cst_180 : f32 to vector<2x1xf32>
    %617 = arith.cmpf ogt, %527, %616 : vector<2x1xf32>
    %618 = vector.shape_cast %617 : vector<2x1xi1> to vector<2x1xi1>
    %619 = vector.broadcast %618 : vector<2x1xi1> to vector<2x32xi1>
    %620 = arith.select %619, %615, %464 : vector<2x32xi1>, vector<2x32xf32>
    %621 = vector.shape_cast %534 : vector<2x32xf32> to vector<2x1x32xf32>
    %622 = vector.broadcast %621 : vector<2x1x32xf32> to vector<2x8x32xf32>
    %623 = arith.mulf %611, %622 : vector<2x8x32xf32>
    %cst_181 = arith.constant dense<0.000000e+00> : vector<2x8xf32>
    %624 = vector.multi_reduction <add>, %623, %cst_181 [2] : vector<2x8x32xf32> to vector<2x8xf32>
    %cst_182 = arith.constant 1.000000e+00 : f32
    %625 = vector.broadcast %cst_182 : f32 to vector<2x8xf32>
    %626 = arith.subf %624, %625 : vector<2x8xf32>
    %cst_183 = arith.constant 5.000000e-01 : f32
    %627 = vector.broadcast %cst_183 : f32 to vector<2x8xf32>
    %628 = arith.cmpf ogt, %544, %627 : vector<2x8xf32>
    %cst_184 = arith.constant 0xFF800000 : f32
    %629 = vector.broadcast %cst_184 : f32 to vector<2x8xf32>
    %630 = arith.select %628, %626, %629 : vector<2x8xi1>, vector<2x8xf32>
    %631 = vector.broadcast %527 : vector<2x1xf32> to vector<2x32xf32>
    %632 = arith.mulf %615, %631 : vector<2x32xf32>
    %c0_185 = arith.constant 0 : index
    %c0_186 = arith.constant 0 : index
    %c0_187 = arith.constant 0 : index
    %633 = vector.load %arg6[%c0_185, %c0_186, %c0_187] : memref<2x32x128xf32, #tpu.memory_space<vmem>>, vector<1x32x128xf32>
    %634 = vector.shape_cast %633 : vector<1x32x128xf32> to vector<32x128xf32>
    %cst_188 = arith.constant dense<0.000000e+00> : vector<2x128xf32>
    %635 = tpu.matmul %632, %634, %cst_188 {dimension_numbers = #tpu.dot_dimension_numbers<[1], [0], [0], [1], [0, 0, 1, 1], [], []>} : vector<2x32xf32>, vector<32x128xf32>, vector<2x128xf32> -> vector<2x128xf32>
    %cst_189 = arith.constant 1.000000e+00 : f32
    %636 = vector.broadcast %cst_189 : f32 to vector<2x1xf32>
    %637 = arith.subf %636, %527 : vector<2x1xf32>
    %638 = vector.broadcast %637 : vector<2x1xf32> to vector<2x32xf32>
    %639 = arith.mulf %620, %638 : vector<2x32xf32>
    %c1_190 = arith.constant 1 : index
    %c0_191 = arith.constant 0 : index
    %c0_192 = arith.constant 0 : index
    %640 = vector.load %arg6[%c1_190, %c0_191, %c0_192] : memref<2x32x128xf32, #tpu.memory_space<vmem>>, vector<1x32x128xf32>
    %641 = vector.shape_cast %640 : vector<1x32x128xf32> to vector<32x128xf32>
    %cst_193 = arith.constant dense<0.000000e+00> : vector<2x128xf32>
    %642 = tpu.matmul %639, %641, %cst_193 {dimension_numbers = #tpu.dot_dimension_numbers<[1], [0], [0], [1], [0, 0, 1, 1], [], []>} : vector<2x32xf32>, vector<32x128xf32>, vector<2x128xf32> -> vector<2x128xf32>
    %643 = arith.addf %635, %642 : vector<2x128xf32>
    %644 = arith.addf %537, %643 : vector<2x128xf32>
    %c3_194 = arith.constant 3 : index
    %c0_195 = arith.constant 0 : index
    %c0_196 = arith.constant 0 : index
    %645 = vector.load %arg9[%c3_194, %c0_195, %c0_196] : memref<7x2x128xf32, #tpu.memory_space<vmem>>, vector<1x2x128xf32>
    %646 = vector.shape_cast %645 : vector<1x2x128xf32> to vector<2x128xf32>
    %647 = vector.shape_cast %644 : vector<2x128xf32> to vector<1x2x128xf32>
    tpu.vector_store %arg9[%c3_194, %c0_195, %c0_196], %647 {strides = array<i32>} : memref<7x2x128xf32, #tpu.memory_space<vmem>>, vector<1x2x128xf32>,
    %c3_197 = arith.constant 3 : index
    %c0_198 = arith.constant 0 : index
    %c0_199 = arith.constant 0 : index
    %648 = vector.load %arg10[%c3_197, %c0_198, %c0_199] : memref<7x2x8xf32, #tpu.memory_space<vmem>>, vector<1x2x8xf32>
    %649 = vector.shape_cast %648 : vector<1x2x8xf32> to vector<2x8xf32>
    %650 = vector.shape_cast %630 : vector<2x8xf32> to vector<1x2x8xf32>
    tpu.vector_store %arg10[%c3_197, %c0_198, %c0_199], %650 {strides = array<i32>} : memref<7x2x8xf32, #tpu.memory_space<vmem>>, vector<1x2x8xf32>,
    %c4 = arith.constant 4 : index
    %c0_200 = arith.constant 0 : index
    %c0_201 = arith.constant 0 : index
    %651 = vector.load %arg0[%c4, %c0_200, %c0_201] : memref<7x2x128xf32, #tpu.memory_space<vmem>>, vector<1x2x128xf32>
    %652 = vector.shape_cast %651 : vector<1x2x128xf32> to vector<2x128xf32>
    %653 = arith.addf %652, %533 : vector<2x128xf32>
    %654 = vector.extract_strided_slice %653 {offsets = [0, 0], sizes = [2, 32], strides = [1, 1]} : vector<2x128xf32> to vector<2x32xf32>
    %655 = arith.negf %654 : vector<2x32xf32>
    %656 = math.exp %655 : vector<2x32xf32>
    %cst_202 = arith.constant 1.000000e+00 : f32
    %657 = vector.broadcast %cst_202 : f32 to vector<2x32xf32>
    %658 = arith.addf %657, %656 : vector<2x32xf32>
    %659 = arith.divf %657, %658 : vector<2x32xf32>
    %660 = vector.extract_strided_slice %653 {offsets = [0, 32], sizes = [2, 32], strides = [1, 1]} : vector<2x128xf32> to vector<2x32xf32>
    %661 = arith.negf %660 : vector<2x32xf32>
    %662 = math.exp %661 : vector<2x32xf32>
    %cst_203 = arith.constant 1.000000e+00 : f32
    %663 = vector.broadcast %cst_203 : f32 to vector<2x32xf32>
    %664 = arith.addf %663, %662 : vector<2x32xf32>
    %665 = arith.divf %663, %664 : vector<2x32xf32>
    %666 = vector.extract_strided_slice %653 {offsets = [0, 64], sizes = [2, 32], strides = [1, 1]} : vector<2x128xf32> to vector<2x32xf32>
    %667 = math.tanh %666 : vector<2x32xf32>
    %668 = vector.extract_strided_slice %653 {offsets = [0, 96], sizes = [2, 32], strides = [1, 1]} : vector<2x128xf32> to vector<2x32xf32>
    %669 = arith.negf %668 : vector<2x32xf32>
    %670 = math.exp %669 : vector<2x32xf32>
    %cst_204 = arith.constant 1.000000e+00 : f32
    %671 = vector.broadcast %cst_204 : f32 to vector<2x32xf32>
    %672 = arith.addf %671, %670 : vector<2x32xf32>
    %673 = arith.divf %671, %672 : vector<2x32xf32>
    %674 = arith.mulf %665, %520 : vector<2x32xf32>
    %675 = arith.mulf %659, %667 : vector<2x32xf32>
    %676 = arith.addf %674, %675 : vector<2x32xf32>
    %677 = math.tanh %676 : vector<2x32xf32>
    %678 = arith.mulf %673, %677 : vector<2x32xf32>
    %c4_205 = arith.constant 4 : index
    %c0_206 = arith.constant 0 : index
    %c0_207 = arith.constant 0 : index
    %679 = vector.load %arg1[%c4_205, %c0_206, %c0_207] : memref<7x2x128xf32, #tpu.memory_space<vmem>>, vector<1x2x128xf32>
    %680 = vector.shape_cast %679 : vector<1x2x128xf32> to vector<2x128xf32>
    %681 = vector.extract_strided_slice %680 {offsets = [0, 0], sizes = [2, 32], strides = [1, 1]} : vector<2x128xf32> to vector<2x32xf32>
    %682 = vector.extract_strided_slice %680 {offsets = [0, 32], sizes = [2, 8], strides = [1, 1]} : vector<2x128xf32> to vector<2x8xf32>
    %683 = vector.extract_strided_slice %680 {offsets = [0, 40], sizes = [2, 1], strides = [1, 1]} : vector<2x128xf32> to vector<2x1xf32>
    %c0_208 = arith.constant 0 : index
    %c0_209 = arith.constant 0 : index
    %684 = vector.load %arg4[%c0_208, %c0_209] : memref<32x384xf32, #tpu.memory_space<vmem>>, vector<32x384xf32>
    %cst_210 = arith.constant dense<0.000000e+00> : vector<2x384xf32>
    %685 = tpu.matmul %678, %684, %cst_210 {dimension_numbers = #tpu.dot_dimension_numbers<[1], [0], [0], [1], [0, 0, 1, 1], [], []>} : vector<2x32xf32>, vector<32x384xf32>, vector<2x384xf32> -> vector<2x384xf32>
    %c0_211 = arith.constant 0 : index
    %c0_212 = arith.constant 0 : index
    %686 = vector.load %arg5[%c0_211, %c0_212] : memref<1x384xf32, #tpu.memory_space<vmem>>, vector<1x384xf32>
    %687 = vector.broadcast %686 : vector<1x384xf32> to vector<2x384xf32>
    %688 = arith.addf %685, %687 : vector<2x384xf32>
    %689 = vector.extract_strided_slice %688 {offsets = [0, 0], sizes = [2, 128], strides = [1, 1]} : vector<2x384xf32> to vector<2x128xf32>
    %690 = vector.extract_strided_slice %688 {offsets = [0, 128], sizes = [2, 32], strides = [1, 1]} : vector<2x384xf32> to vector<2x32xf32>
    %691 = vector.extract_strided_slice %688 {offsets = [0, 160], sizes = [2, 32], strides = [1, 1]} : vector<2x384xf32> to vector<2x32xf32>
    %692 = vector.extract_strided_slice %688 {offsets = [0, 192], sizes = [2, 32], strides = [1, 1]} : vector<2x384xf32> to vector<2x32xf32>
    %693 = vector.extract_strided_slice %688 {offsets = [0, 256], sizes = [2, 128], strides = [1, 1]} : vector<2x384xf32> to vector<2x128xf32>
    %694 = arith.mulf %544, %682 : vector<2x8xf32>
    %cst_213 = arith.constant dense<0.000000e+00> : vector<2xf32>
    %695 = vector.multi_reduction <add>, %694, %cst_213 [1] : vector<2x8xf32> to vector<2xf32>
    %696 = vector.shape_cast %695 : vector<2xf32> to vector<2x1xf32>
    %cst_214 = arith.constant 1.000000e+00 : f32
    %697 = vector.broadcast %cst_214 : f32 to vector<2x1xf32>
    %698 = arith.subf %697, %696 : vector<2x1xf32>
    %699 = arith.mulf %698, %683 : vector<2x1xf32>
    %700 = arith.maximumf %544, %682 : vector<2x8xf32>
    %701 = vector.broadcast %0 : vector<1x32xf32> to vector<2x32xf32>
    %702 = arith.addf %701, %681 : vector<2x32xf32>
    %703 = arith.mulf %702, %702 : vector<2x32xf32>
    %cst_215 = arith.constant dense<0.000000e+00> : vector<2xf32>
    %704 = vector.multi_reduction <add>, %703, %cst_215 [1] : vector<2x32xf32> to vector<2xf32>
    %705 = vector.shape_cast %704 : vector<2xf32> to vector<2x1xf32>
    %cst_216 = arith.constant 1.000000e-30 : f32
    %706 = vector.broadcast %cst_216 : f32 to vector<2x1xf32>
    %707 = arith.addf %705, %706 : vector<2x1xf32>
    %708 = math.rsqrt %707 : vector<2x1xf32>
    %709 = vector.broadcast %708 : vector<2x1xf32> to vector<2x32xf32>
    %710 = arith.mulf %702, %709 : vector<2x32xf32>
    %711 = vector.broadcast %699 : vector<2x1xf32> to vector<2x8xf32>
    %712 = arith.mulf %682, %711 : vector<2x8xf32>
    %713 = vector.shape_cast %712 : vector<2x8xf32> to vector<2x8x1xf32>
    %714 = vector.shape_cast %710 : vector<2x32xf32> to vector<2x1x32xf32>
    %715 = vector.broadcast %713 : vector<2x8x1xf32> to vector<2x8x32xf32>
    %716 = vector.broadcast %714 : vector<2x1x32xf32> to vector<2x8x32xf32>
    %717 = arith.mulf %715, %716 : vector<2x8x32xf32>
    %718 = arith.addf %611, %717 : vector<2x8x32xf32>
    %719 = vector.broadcast %683 : vector<2x1xf32> to vector<2x8xf32>
    %720 = arith.mulf %682, %719 : vector<2x8xf32>
    %721 = vector.shape_cast %682 : vector<2x8xf32> to vector<2x8x1xf32>
    %722 = vector.broadcast %721 : vector<2x8x1xf32> to vector<2x8x32xf32>
    %723 = arith.mulf %718, %722 : vector<2x8x32xf32>
    %cst_217 = arith.constant dense<0.000000e+00> : vector<2x32xf32>
    %724 = vector.multi_reduction <add>, %723, %cst_217 [1] : vector<2x8x32xf32> to vector<2x32xf32>
    %725 = arith.mulf %724, %691 : vector<2x32xf32>
    %cst_218 = arith.constant dense<0.000000e+00> : vector<2xf32>
    %726 = vector.multi_reduction <add>, %725, %cst_218 [1] : vector<2x32xf32> to vector<2xf32>
    %727 = vector.shape_cast %726 : vector<2xf32> to vector<2x1xf32>
    %728 = arith.negf %727 : vector<2x1xf32>
    %729 = math.exp %728 : vector<2x1xf32>
    %cst_219 = arith.constant 1.000000e+00 : f32
    %730 = vector.broadcast %cst_219 : f32 to vector<2x1xf32>
    %731 = arith.addf %730, %729 : vector<2x1xf32>
    %732 = arith.divf %730, %731 : vector<2x1xf32>
    %733 = vector.shape_cast %720 : vector<2x8xf32> to vector<2x8x1xf32>
    %734 = vector.shape_cast %732 : vector<2x1xf32> to vector<2x1x1xf32>
    %735 = vector.broadcast %734 : vector<2x1x1xf32> to vector<2x8x1xf32>
    %736 = arith.mulf %733, %735 : vector<2x8x1xf32>
    %cst_220 = arith.constant 1.000000e+00 : f32
    %737 = vector.broadcast %cst_220 : f32 to vector<2x8x1xf32>
    %738 = arith.subf %737, %736 : vector<2x8x1xf32>
    %739 = vector.broadcast %738 : vector<2x8x1xf32> to vector<2x8x32xf32>
    %740 = arith.mulf %718, %739 : vector<2x8x32xf32>
    %741 = vector.shape_cast %720 : vector<2x8xf32> to vector<2x8x1xf32>
    %742 = vector.broadcast %732 : vector<2x1xf32> to vector<2x32xf32>
    %743 = arith.mulf %742, %692 : vector<2x32xf32>
    %744 = vector.shape_cast %743 : vector<2x32xf32> to vector<2x1x32xf32>
    %745 = vector.broadcast %741 : vector<2x8x1xf32> to vector<2x8x32xf32>
    %746 = vector.broadcast %744 : vector<2x1x32xf32> to vector<2x8x32xf32>
    %747 = arith.mulf %745, %746 : vector<2x8x32xf32>
    %748 = arith.addf %740, %747 : vector<2x8x32xf32>
    %749 = vector.shape_cast %682 : vector<2x8xf32> to vector<2x8x1xf32>
    %750 = vector.broadcast %749 : vector<2x8x1xf32> to vector<2x8x32xf32>
    %751 = arith.mulf %748, %750 : vector<2x8x32xf32>
    %cst_221 = arith.constant dense<0.000000e+00> : vector<2x32xf32>
    %752 = vector.multi_reduction <add>, %751, %cst_221 [1] : vector<2x8x32xf32> to vector<2x32xf32>
    %753 = arith.mulf %752, %752 : vector<2x32xf32>
    %cst_222 = arith.constant dense<0.000000e+00> : vector<2xf32>
    %754 = vector.multi_reduction <add>, %753, %cst_222 [1] : vector<2x32xf32> to vector<2xf32>
    %755 = vector.shape_cast %754 : vector<2xf32> to vector<2x1xf32>
    %cst_223 = arith.constant 1.000000e-30 : f32
    %756 = vector.broadcast %cst_223 : f32 to vector<2x1xf32>
    %757 = arith.addf %755, %756 : vector<2x1xf32>
    %758 = math.rsqrt %757 : vector<2x1xf32>
    %cst_224 = arith.constant 5.000000e-01 : f32
    %759 = vector.broadcast %cst_224 : f32 to vector<2x8xf32>
    %760 = arith.cmpf ogt, %720, %759 : vector<2x8xf32>
    %cst_225 = arith.constant 1.000000e+00 : f32
    %761 = vector.shape_cast %758 : vector<2x1xf32> to vector<2x1xf32>
    %762 = vector.broadcast %761 : vector<2x1xf32> to vector<2x8xf32>
    %763 = vector.broadcast %cst_225 : f32 to vector<2x8xf32>
    %764 = arith.select %760, %762, %763 : vector<2x8xi1>, vector<2x8xf32>
    %765 = vector.shape_cast %764 : vector<2x8xf32> to vector<2x8x1xf32>
    %766 = vector.broadcast %765 : vector<2x8x1xf32> to vector<2x8x32xf32>
    %767 = arith.mulf %748, %766 : vector<2x8x32xf32>
    %768 = vector.shape_cast %682 : vector<2x8xf32> to vector<2x8x1xf32>
    %769 = vector.broadcast %768 : vector<2x8x1xf32> to vector<2x8x32xf32>
    %770 = arith.mulf %767, %769 : vector<2x8x32xf32>
    %cst_226 = arith.constant dense<0.000000e+00> : vector<2x32xf32>
    %771 = vector.multi_reduction <add>, %770, %cst_226 [1] : vector<2x8x32xf32> to vector<2x32xf32>
    %cst_227 = arith.constant 5.000000e-01 : f32
    %772 = vector.broadcast %cst_227 : f32 to vector<2x1xf32>
    %773 = arith.cmpf ogt, %683, %772 : vector<2x1xf32>
    %774 = vector.shape_cast %773 : vector<2x1xi1> to vector<2x1xi1>
    %775 = vector.broadcast %774 : vector<2x1xi1> to vector<2x32xi1>
    %776 = arith.select %775, %771, %620 : vector<2x32xi1>, vector<2x32xf32>
    %777 = vector.shape_cast %690 : vector<2x32xf32> to vector<2x1x32xf32>
    %778 = vector.broadcast %777 : vector<2x1x32xf32> to vector<2x8x32xf32>
    %779 = arith.mulf %767, %778 : vector<2x8x32xf32>
    %cst_228 = arith.constant dense<0.000000e+00> : vector<2x8xf32>
    %780 = vector.multi_reduction <add>, %779, %cst_228 [2] : vector<2x8x32xf32> to vector<2x8xf32>
    %cst_229 = arith.constant 1.000000e+00 : f32
    %781 = vector.broadcast %cst_229 : f32 to vector<2x8xf32>
    %782 = arith.subf %780, %781 : vector<2x8xf32>
    %cst_230 = arith.constant 5.000000e-01 : f32
    %783 = vector.broadcast %cst_230 : f32 to vector<2x8xf32>
    %784 = arith.cmpf ogt, %700, %783 : vector<2x8xf32>
    %cst_231 = arith.constant 0xFF800000 : f32
    %785 = vector.broadcast %cst_231 : f32 to vector<2x8xf32>
    %786 = arith.select %784, %782, %785 : vector<2x8xi1>, vector<2x8xf32>
    %787 = vector.broadcast %683 : vector<2x1xf32> to vector<2x32xf32>
    %788 = arith.mulf %771, %787 : vector<2x32xf32>
    %c0_232 = arith.constant 0 : index
    %c0_233 = arith.constant 0 : index
    %c0_234 = arith.constant 0 : index
    %789 = vector.load %arg6[%c0_232, %c0_233, %c0_234] : memref<2x32x128xf32, #tpu.memory_space<vmem>>, vector<1x32x128xf32>
    %790 = vector.shape_cast %789 : vector<1x32x128xf32> to vector<32x128xf32>
    %cst_235 = arith.constant dense<0.000000e+00> : vector<2x128xf32>
    %791 = tpu.matmul %788, %790, %cst_235 {dimension_numbers = #tpu.dot_dimension_numbers<[1], [0], [0], [1], [0, 0, 1, 1], [], []>} : vector<2x32xf32>, vector<32x128xf32>, vector<2x128xf32> -> vector<2x128xf32>
    %cst_236 = arith.constant 1.000000e+00 : f32
    %792 = vector.broadcast %cst_236 : f32 to vector<2x1xf32>
    %793 = arith.subf %792, %683 : vector<2x1xf32>
    %794 = vector.broadcast %793 : vector<2x1xf32> to vector<2x32xf32>
    %795 = arith.mulf %776, %794 : vector<2x32xf32>
    %c1_237 = arith.constant 1 : index
    %c0_238 = arith.constant 0 : index
    %c0_239 = arith.constant 0 : index
    %796 = vector.load %arg6[%c1_237, %c0_238, %c0_239] : memref<2x32x128xf32, #tpu.memory_space<vmem>>, vector<1x32x128xf32>
    %797 = vector.shape_cast %796 : vector<1x32x128xf32> to vector<32x128xf32>
    %cst_240 = arith.constant dense<0.000000e+00> : vector<2x128xf32>
    %798 = tpu.matmul %795, %797, %cst_240 {dimension_numbers = #tpu.dot_dimension_numbers<[1], [0], [0], [1], [0, 0, 1, 1], [], []>} : vector<2x32xf32>, vector<32x128xf32>, vector<2x128xf32> -> vector<2x128xf32>
    %799 = arith.addf %791, %798 : vector<2x128xf32>
    %800 = arith.addf %693, %799 : vector<2x128xf32>
    %c4_241 = arith.constant 4 : index
    %c0_242 = arith.constant 0 : index
    %c0_243 = arith.constant 0 : index
    %801 = vector.load %arg9[%c4_241, %c0_242, %c0_243] : memref<7x2x128xf32, #tpu.memory_space<vmem>>, vector<1x2x128xf32>
    %802 = vector.shape_cast %801 : vector<1x2x128xf32> to vector<2x128xf32>
    %803 = vector.shape_cast %800 : vector<2x128xf32> to vector<1x2x128xf32>
    tpu.vector_store %arg9[%c4_241, %c0_242, %c0_243], %803 {strides = array<i32>} : memref<7x2x128xf32, #tpu.memory_space<vmem>>, vector<1x2x128xf32>,
    %c4_244 = arith.constant 4 : index
    %c0_245 = arith.constant 0 : index
    %c0_246 = arith.constant 0 : index
    %804 = vector.load %arg10[%c4_244, %c0_245, %c0_246] : memref<7x2x8xf32, #tpu.memory_space<vmem>>, vector<1x2x8xf32>
    %805 = vector.shape_cast %804 : vector<1x2x8xf32> to vector<2x8xf32>
    %806 = vector.shape_cast %786 : vector<2x8xf32> to vector<1x2x8xf32>
    tpu.vector_store %arg10[%c4_244, %c0_245, %c0_246], %806 {strides = array<i32>} : memref<7x2x8xf32, #tpu.memory_space<vmem>>, vector<1x2x8xf32>,
    %c5 = arith.constant 5 : index
    %c0_247 = arith.constant 0 : index
    %c0_248 = arith.constant 0 : index
    %807 = vector.load %arg0[%c5, %c0_247, %c0_248] : memref<7x2x128xf32, #tpu.memory_space<vmem>>, vector<1x2x128xf32>
    %808 = vector.shape_cast %807 : vector<1x2x128xf32> to vector<2x128xf32>
    %809 = arith.addf %808, %689 : vector<2x128xf32>
    %810 = vector.extract_strided_slice %809 {offsets = [0, 0], sizes = [2, 32], strides = [1, 1]} : vector<2x128xf32> to vector<2x32xf32>
    %811 = arith.negf %810 : vector<2x32xf32>
    %812 = math.exp %811 : vector<2x32xf32>
    %cst_249 = arith.constant 1.000000e+00 : f32
    %813 = vector.broadcast %cst_249 : f32 to vector<2x32xf32>
    %814 = arith.addf %813, %812 : vector<2x32xf32>
    %815 = arith.divf %813, %814 : vector<2x32xf32>
    %816 = vector.extract_strided_slice %809 {offsets = [0, 32], sizes = [2, 32], strides = [1, 1]} : vector<2x128xf32> to vector<2x32xf32>
    %817 = arith.negf %816 : vector<2x32xf32>
    %818 = math.exp %817 : vector<2x32xf32>
    %cst_250 = arith.constant 1.000000e+00 : f32
    %819 = vector.broadcast %cst_250 : f32 to vector<2x32xf32>
    %820 = arith.addf %819, %818 : vector<2x32xf32>
    %821 = arith.divf %819, %820 : vector<2x32xf32>
    %822 = vector.extract_strided_slice %809 {offsets = [0, 64], sizes = [2, 32], strides = [1, 1]} : vector<2x128xf32> to vector<2x32xf32>
    %823 = math.tanh %822 : vector<2x32xf32>
    %824 = vector.extract_strided_slice %809 {offsets = [0, 96], sizes = [2, 32], strides = [1, 1]} : vector<2x128xf32> to vector<2x32xf32>
    %825 = arith.negf %824 : vector<2x32xf32>
    %826 = math.exp %825 : vector<2x32xf32>
    %cst_251 = arith.constant 1.000000e+00 : f32
    %827 = vector.broadcast %cst_251 : f32 to vector<2x32xf32>
    %828 = arith.addf %827, %826 : vector<2x32xf32>
    %829 = arith.divf %827, %828 : vector<2x32xf32>
    %830 = arith.mulf %821, %676 : vector<2x32xf32>
    %831 = arith.mulf %815, %823 : vector<2x32xf32>
    %832 = arith.addf %830, %831 : vector<2x32xf32>
    %833 = math.tanh %832 : vector<2x32xf32>
    %834 = arith.mulf %829, %833 : vector<2x32xf32>
    %c5_252 = arith.constant 5 : index
    %c0_253 = arith.constant 0 : index
    %c0_254 = arith.constant 0 : index
    %835 = vector.load %arg1[%c5_252, %c0_253, %c0_254] : memref<7x2x128xf32, #tpu.memory_space<vmem>>, vector<1x2x128xf32>
    %836 = vector.shape_cast %835 : vector<1x2x128xf32> to vector<2x128xf32>
    %837 = vector.extract_strided_slice %836 {offsets = [0, 0], sizes = [2, 32], strides = [1, 1]} : vector<2x128xf32> to vector<2x32xf32>
    %838 = vector.extract_strided_slice %836 {offsets = [0, 32], sizes = [2, 8], strides = [1, 1]} : vector<2x128xf32> to vector<2x8xf32>
    %839 = vector.extract_strided_slice %836 {offsets = [0, 40], sizes = [2, 1], strides = [1, 1]} : vector<2x128xf32> to vector<2x1xf32>
    %c0_255 = arith.constant 0 : index
    %c0_256 = arith.constant 0 : index
    %840 = vector.load %arg4[%c0_255, %c0_256] : memref<32x384xf32, #tpu.memory_space<vmem>>, vector<32x384xf32>
    %cst_257 = arith.constant dense<0.000000e+00> : vector<2x384xf32>
    %841 = tpu.matmul %834, %840, %cst_257 {dimension_numbers = #tpu.dot_dimension_numbers<[1], [0], [0], [1], [0, 0, 1, 1], [], []>} : vector<2x32xf32>, vector<32x384xf32>, vector<2x384xf32> -> vector<2x384xf32>
    %c0_258 = arith.constant 0 : index
    %c0_259 = arith.constant 0 : index
    %842 = vector.load %arg5[%c0_258, %c0_259] : memref<1x384xf32, #tpu.memory_space<vmem>>, vector<1x384xf32>
    %843 = vector.broadcast %842 : vector<1x384xf32> to vector<2x384xf32>
    %844 = arith.addf %841, %843 : vector<2x384xf32>
    %845 = vector.extract_strided_slice %844 {offsets = [0, 0], sizes = [2, 128], strides = [1, 1]} : vector<2x384xf32> to vector<2x128xf32>
    %846 = vector.extract_strided_slice %844 {offsets = [0, 128], sizes = [2, 32], strides = [1, 1]} : vector<2x384xf32> to vector<2x32xf32>
    %847 = vector.extract_strided_slice %844 {offsets = [0, 160], sizes = [2, 32], strides = [1, 1]} : vector<2x384xf32> to vector<2x32xf32>
    %848 = vector.extract_strided_slice %844 {offsets = [0, 192], sizes = [2, 32], strides = [1, 1]} : vector<2x384xf32> to vector<2x32xf32>
    %849 = vector.extract_strided_slice %844 {offsets = [0, 256], sizes = [2, 128], strides = [1, 1]} : vector<2x384xf32> to vector<2x128xf32>
    %850 = arith.mulf %700, %838 : vector<2x8xf32>
    %cst_260 = arith.constant dense<0.000000e+00> : vector<2xf32>
    %851 = vector.multi_reduction <add>, %850, %cst_260 [1] : vector<2x8xf32> to vector<2xf32>
    %852 = vector.shape_cast %851 : vector<2xf32> to vector<2x1xf32>
    %cst_261 = arith.constant 1.000000e+00 : f32
    %853 = vector.broadcast %cst_261 : f32 to vector<2x1xf32>
    %854 = arith.subf %853, %852 : vector<2x1xf32>
    %855 = arith.mulf %854, %839 : vector<2x1xf32>
    %856 = arith.maximumf %700, %838 : vector<2x8xf32>
    %857 = vector.broadcast %0 : vector<1x32xf32> to vector<2x32xf32>
    %858 = arith.addf %857, %837 : vector<2x32xf32>
    %859 = arith.mulf %858, %858 : vector<2x32xf32>
    %cst_262 = arith.constant dense<0.000000e+00> : vector<2xf32>
    %860 = vector.multi_reduction <add>, %859, %cst_262 [1] : vector<2x32xf32> to vector<2xf32>
    %861 = vector.shape_cast %860 : vector<2xf32> to vector<2x1xf32>
    %cst_263 = arith.constant 1.000000e-30 : f32
    %862 = vector.broadcast %cst_263 : f32 to vector<2x1xf32>
    %863 = arith.addf %861, %862 : vector<2x1xf32>
    %864 = math.rsqrt %863 : vector<2x1xf32>
    %865 = vector.broadcast %864 : vector<2x1xf32> to vector<2x32xf32>
    %866 = arith.mulf %858, %865 : vector<2x32xf32>
    %867 = vector.broadcast %855 : vector<2x1xf32> to vector<2x8xf32>
    %868 = arith.mulf %838, %867 : vector<2x8xf32>
    %869 = vector.shape_cast %868 : vector<2x8xf32> to vector<2x8x1xf32>
    %870 = vector.shape_cast %866 : vector<2x32xf32> to vector<2x1x32xf32>
    %871 = vector.broadcast %869 : vector<2x8x1xf32> to vector<2x8x32xf32>
    %872 = vector.broadcast %870 : vector<2x1x32xf32> to vector<2x8x32xf32>
    %873 = arith.mulf %871, %872 : vector<2x8x32xf32>
    %874 = arith.addf %767, %873 : vector<2x8x32xf32>
    %875 = vector.broadcast %839 : vector<2x1xf32> to vector<2x8xf32>
    %876 = arith.mulf %838, %875 : vector<2x8xf32>
    %877 = vector.shape_cast %838 : vector<2x8xf32> to vector<2x8x1xf32>
    %878 = vector.broadcast %877 : vector<2x8x1xf32> to vector<2x8x32xf32>
    %879 = arith.mulf %874, %878 : vector<2x8x32xf32>
    %cst_264 = arith.constant dense<0.000000e+00> : vector<2x32xf32>
    %880 = vector.multi_reduction <add>, %879, %cst_264 [1] : vector<2x8x32xf32> to vector<2x32xf32>
    %881 = arith.mulf %880, %847 : vector<2x32xf32>
    %cst_265 = arith.constant dense<0.000000e+00> : vector<2xf32>
    %882 = vector.multi_reduction <add>, %881, %cst_265 [1] : vector<2x32xf32> to vector<2xf32>
    %883 = vector.shape_cast %882 : vector<2xf32> to vector<2x1xf32>
    %884 = arith.negf %883 : vector<2x1xf32>
    %885 = math.exp %884 : vector<2x1xf32>
    %cst_266 = arith.constant 1.000000e+00 : f32
    %886 = vector.broadcast %cst_266 : f32 to vector<2x1xf32>
    %887 = arith.addf %886, %885 : vector<2x1xf32>
    %888 = arith.divf %886, %887 : vector<2x1xf32>
    %889 = vector.shape_cast %876 : vector<2x8xf32> to vector<2x8x1xf32>
    %890 = vector.shape_cast %888 : vector<2x1xf32> to vector<2x1x1xf32>
    %891 = vector.broadcast %890 : vector<2x1x1xf32> to vector<2x8x1xf32>
    %892 = arith.mulf %889, %891 : vector<2x8x1xf32>
    %cst_267 = arith.constant 1.000000e+00 : f32
    %893 = vector.broadcast %cst_267 : f32 to vector<2x8x1xf32>
    %894 = arith.subf %893, %892 : vector<2x8x1xf32>
    %895 = vector.broadcast %894 : vector<2x8x1xf32> to vector<2x8x32xf32>
    %896 = arith.mulf %874, %895 : vector<2x8x32xf32>
    %897 = vector.shape_cast %876 : vector<2x8xf32> to vector<2x8x1xf32>
    %898 = vector.broadcast %888 : vector<2x1xf32> to vector<2x32xf32>
    %899 = arith.mulf %898, %848 : vector<2x32xf32>
    %900 = vector.shape_cast %899 : vector<2x32xf32> to vector<2x1x32xf32>
    %901 = vector.broadcast %897 : vector<2x8x1xf32> to vector<2x8x32xf32>
    %902 = vector.broadcast %900 : vector<2x1x32xf32> to vector<2x8x32xf32>
    %903 = arith.mulf %901, %902 : vector<2x8x32xf32>
    %904 = arith.addf %896, %903 : vector<2x8x32xf32>
    %905 = vector.shape_cast %838 : vector<2x8xf32> to vector<2x8x1xf32>
    %906 = vector.broadcast %905 : vector<2x8x1xf32> to vector<2x8x32xf32>
    %907 = arith.mulf %904, %906 : vector<2x8x32xf32>
    %cst_268 = arith.constant dense<0.000000e+00> : vector<2x32xf32>
    %908 = vector.multi_reduction <add>, %907, %cst_268 [1] : vector<2x8x32xf32> to vector<2x32xf32>
    %909 = arith.mulf %908, %908 : vector<2x32xf32>
    %cst_269 = arith.constant dense<0.000000e+00> : vector<2xf32>
    %910 = vector.multi_reduction <add>, %909, %cst_269 [1] : vector<2x32xf32> to vector<2xf32>
    %911 = vector.shape_cast %910 : vector<2xf32> to vector<2x1xf32>
    %cst_270 = arith.constant 1.000000e-30 : f32
    %912 = vector.broadcast %cst_270 : f32 to vector<2x1xf32>
    %913 = arith.addf %911, %912 : vector<2x1xf32>
    %914 = math.rsqrt %913 : vector<2x1xf32>
    %cst_271 = arith.constant 5.000000e-01 : f32
    %915 = vector.broadcast %cst_271 : f32 to vector<2x8xf32>
    %916 = arith.cmpf ogt, %876, %915 : vector<2x8xf32>
    %cst_272 = arith.constant 1.000000e+00 : f32
    %917 = vector.shape_cast %914 : vector<2x1xf32> to vector<2x1xf32>
    %918 = vector.broadcast %917 : vector<2x1xf32> to vector<2x8xf32>
    %919 = vector.broadcast %cst_272 : f32 to vector<2x8xf32>
    %920 = arith.select %916, %918, %919 : vector<2x8xi1>, vector<2x8xf32>
    %921 = vector.shape_cast %920 : vector<2x8xf32> to vector<2x8x1xf32>
    %922 = vector.broadcast %921 : vector<2x8x1xf32> to vector<2x8x32xf32>
    %923 = arith.mulf %904, %922 : vector<2x8x32xf32>
    %924 = vector.shape_cast %838 : vector<2x8xf32> to vector<2x8x1xf32>
    %925 = vector.broadcast %924 : vector<2x8x1xf32> to vector<2x8x32xf32>
    %926 = arith.mulf %923, %925 : vector<2x8x32xf32>
    %cst_273 = arith.constant dense<0.000000e+00> : vector<2x32xf32>
    %927 = vector.multi_reduction <add>, %926, %cst_273 [1] : vector<2x8x32xf32> to vector<2x32xf32>
    %cst_274 = arith.constant 5.000000e-01 : f32
    %928 = vector.broadcast %cst_274 : f32 to vector<2x1xf32>
    %929 = arith.cmpf ogt, %839, %928 : vector<2x1xf32>
    %930 = vector.shape_cast %929 : vector<2x1xi1> to vector<2x1xi1>
    %931 = vector.broadcast %930 : vector<2x1xi1> to vector<2x32xi1>
    %932 = arith.select %931, %927, %776 : vector<2x32xi1>, vector<2x32xf32>
    %933 = vector.shape_cast %846 : vector<2x32xf32> to vector<2x1x32xf32>
    %934 = vector.broadcast %933 : vector<2x1x32xf32> to vector<2x8x32xf32>
    %935 = arith.mulf %923, %934 : vector<2x8x32xf32>
    %cst_275 = arith.constant dense<0.000000e+00> : vector<2x8xf32>
    %936 = vector.multi_reduction <add>, %935, %cst_275 [2] : vector<2x8x32xf32> to vector<2x8xf32>
    %cst_276 = arith.constant 1.000000e+00 : f32
    %937 = vector.broadcast %cst_276 : f32 to vector<2x8xf32>
    %938 = arith.subf %936, %937 : vector<2x8xf32>
    %cst_277 = arith.constant 5.000000e-01 : f32
    %939 = vector.broadcast %cst_277 : f32 to vector<2x8xf32>
    %940 = arith.cmpf ogt, %856, %939 : vector<2x8xf32>
    %cst_278 = arith.constant 0xFF800000 : f32
    %941 = vector.broadcast %cst_278 : f32 to vector<2x8xf32>
    %942 = arith.select %940, %938, %941 : vector<2x8xi1>, vector<2x8xf32>
    %943 = vector.broadcast %839 : vector<2x1xf32> to vector<2x32xf32>
    %944 = arith.mulf %927, %943 : vector<2x32xf32>
    %c0_279 = arith.constant 0 : index
    %c0_280 = arith.constant 0 : index
    %c0_281 = arith.constant 0 : index
    %945 = vector.load %arg6[%c0_279, %c0_280, %c0_281] : memref<2x32x128xf32, #tpu.memory_space<vmem>>, vector<1x32x128xf32>
    %946 = vector.shape_cast %945 : vector<1x32x128xf32> to vector<32x128xf32>
    %cst_282 = arith.constant dense<0.000000e+00> : vector<2x128xf32>
    %947 = tpu.matmul %944, %946, %cst_282 {dimension_numbers = #tpu.dot_dimension_numbers<[1], [0], [0], [1], [0, 0, 1, 1], [], []>} : vector<2x32xf32>, vector<32x128xf32>, vector<2x128xf32> -> vector<2x128xf32>
    %cst_283 = arith.constant 1.000000e+00 : f32
    %948 = vector.broadcast %cst_283 : f32 to vector<2x1xf32>
    %949 = arith.subf %948, %839 : vector<2x1xf32>
    %950 = vector.broadcast %949 : vector<2x1xf32> to vector<2x32xf32>
    %951 = arith.mulf %932, %950 : vector<2x32xf32>
    %c1_284 = arith.constant 1 : index
    %c0_285 = arith.constant 0 : index
    %c0_286 = arith.constant 0 : index
    %952 = vector.load %arg6[%c1_284, %c0_285, %c0_286] : memref<2x32x128xf32, #tpu.memory_space<vmem>>, vector<1x32x128xf32>
    %953 = vector.shape_cast %952 : vector<1x32x128xf32> to vector<32x128xf32>
    %cst_287 = arith.constant dense<0.000000e+00> : vector<2x128xf32>
    %954 = tpu.matmul %951, %953, %cst_287 {dimension_numbers = #tpu.dot_dimension_numbers<[1], [0], [0], [1], [0, 0, 1, 1], [], []>} : vector<2x32xf32>, vector<32x128xf32>, vector<2x128xf32> -> vector<2x128xf32>
    %955 = arith.addf %947, %954 : vector<2x128xf32>
    %956 = arith.addf %849, %955 : vector<2x128xf32>
    %c5_288 = arith.constant 5 : index
    %c0_289 = arith.constant 0 : index
    %c0_290 = arith.constant 0 : index
    %957 = vector.load %arg9[%c5_288, %c0_289, %c0_290] : memref<7x2x128xf32, #tpu.memory_space<vmem>>, vector<1x2x128xf32>
    %958 = vector.shape_cast %957 : vector<1x2x128xf32> to vector<2x128xf32>
    %959 = vector.shape_cast %956 : vector<2x128xf32> to vector<1x2x128xf32>
    tpu.vector_store %arg9[%c5_288, %c0_289, %c0_290], %959 {strides = array<i32>} : memref<7x2x128xf32, #tpu.memory_space<vmem>>, vector<1x2x128xf32>,
    %c5_291 = arith.constant 5 : index
    %c0_292 = arith.constant 0 : index
    %c0_293 = arith.constant 0 : index
    %960 = vector.load %arg10[%c5_291, %c0_292, %c0_293] : memref<7x2x8xf32, #tpu.memory_space<vmem>>, vector<1x2x8xf32>
    %961 = vector.shape_cast %960 : vector<1x2x8xf32> to vector<2x8xf32>
    %962 = vector.shape_cast %942 : vector<2x8xf32> to vector<1x2x8xf32>
    tpu.vector_store %arg10[%c5_291, %c0_292, %c0_293], %962 {strides = array<i32>} : memref<7x2x8xf32, #tpu.memory_space<vmem>>, vector<1x2x8xf32>,
    %c6 = arith.constant 6 : index
    %c0_294 = arith.constant 0 : index
    %c0_295 = arith.constant 0 : index
    %963 = vector.load %arg0[%c6, %c0_294, %c0_295] : memref<7x2x128xf32, #tpu.memory_space<vmem>>, vector<1x2x128xf32>
    %964 = vector.shape_cast %963 : vector<1x2x128xf32> to vector<2x128xf32>
    %965 = arith.addf %964, %845 : vector<2x128xf32>
    %966 = vector.extract_strided_slice %965 {offsets = [0, 0], sizes = [2, 32], strides = [1, 1]} : vector<2x128xf32> to vector<2x32xf32>
    %967 = arith.negf %966 : vector<2x32xf32>
    %968 = math.exp %967 : vector<2x32xf32>
    %cst_296 = arith.constant 1.000000e+00 : f32
    %969 = vector.broadcast %cst_296 : f32 to vector<2x32xf32>
    %970 = arith.addf %969, %968 : vector<2x32xf32>
    %971 = arith.divf %969, %970 : vector<2x32xf32>
    %972 = vector.extract_strided_slice %965 {offsets = [0, 32], sizes = [2, 32], strides = [1, 1]} : vector<2x128xf32> to vector<2x32xf32>
    %973 = arith.negf %972 : vector<2x32xf32>
    %974 = math.exp %973 : vector<2x32xf32>
    %cst_297 = arith.constant 1.000000e+00 : f32
    %975 = vector.broadcast %cst_297 : f32 to vector<2x32xf32>
    %976 = arith.addf %975, %974 : vector<2x32xf32>
    %977 = arith.divf %975, %976 : vector<2x32xf32>
    %978 = vector.extract_strided_slice %965 {offsets = [0, 64], sizes = [2, 32], strides = [1, 1]} : vector<2x128xf32> to vector<2x32xf32>
    %979 = math.tanh %978 : vector<2x32xf32>
    %980 = vector.extract_strided_slice %965 {offsets = [0, 96], sizes = [2, 32], strides = [1, 1]} : vector<2x128xf32> to vector<2x32xf32>
    %981 = arith.negf %980 : vector<2x32xf32>
    %982 = math.exp %981 : vector<2x32xf32>
    %cst_298 = arith.constant 1.000000e+00 : f32
    %983 = vector.broadcast %cst_298 : f32 to vector<2x32xf32>
    %984 = arith.addf %983, %982 : vector<2x32xf32>
    %985 = arith.divf %983, %984 : vector<2x32xf32>
    %986 = arith.mulf %977, %832 : vector<2x32xf32>
    %987 = arith.mulf %971, %979 : vector<2x32xf32>
    %988 = arith.addf %986, %987 : vector<2x32xf32>
    %989 = math.tanh %988 : vector<2x32xf32>
    %990 = arith.mulf %985, %989 : vector<2x32xf32>
    %c6_299 = arith.constant 6 : index
    %c0_300 = arith.constant 0 : index
    %c0_301 = arith.constant 0 : index
    %991 = vector.load %arg1[%c6_299, %c0_300, %c0_301] : memref<7x2x128xf32, #tpu.memory_space<vmem>>, vector<1x2x128xf32>
    %992 = vector.shape_cast %991 : vector<1x2x128xf32> to vector<2x128xf32>
    %993 = vector.extract_strided_slice %992 {offsets = [0, 0], sizes = [2, 32], strides = [1, 1]} : vector<2x128xf32> to vector<2x32xf32>
    %994 = vector.extract_strided_slice %992 {offsets = [0, 32], sizes = [2, 8], strides = [1, 1]} : vector<2x128xf32> to vector<2x8xf32>
    %995 = vector.extract_strided_slice %992 {offsets = [0, 40], sizes = [2, 1], strides = [1, 1]} : vector<2x128xf32> to vector<2x1xf32>
    %c0_302 = arith.constant 0 : index
    %c0_303 = arith.constant 0 : index
    %996 = vector.load %arg4[%c0_302, %c0_303] : memref<32x384xf32, #tpu.memory_space<vmem>>, vector<32x384xf32>
    %cst_304 = arith.constant dense<0.000000e+00> : vector<2x384xf32>
    %997 = tpu.matmul %990, %996, %cst_304 {dimension_numbers = #tpu.dot_dimension_numbers<[1], [0], [0], [1], [0, 0, 1, 1], [], []>} : vector<2x32xf32>, vector<32x384xf32>, vector<2x384xf32> -> vector<2x384xf32>
    %c0_305 = arith.constant 0 : index
    %c0_306 = arith.constant 0 : index
    %998 = vector.load %arg5[%c0_305, %c0_306] : memref<1x384xf32, #tpu.memory_space<vmem>>, vector<1x384xf32>
    %999 = vector.broadcast %998 : vector<1x384xf32> to vector<2x384xf32>
    %1000 = arith.addf %997, %999 : vector<2x384xf32>
    %1001 = vector.extract_strided_slice %1000 {offsets = [0, 128], sizes = [2, 32], strides = [1, 1]} : vector<2x384xf32> to vector<2x32xf32>
    %1002 = vector.extract_strided_slice %1000 {offsets = [0, 160], sizes = [2, 32], strides = [1, 1]} : vector<2x384xf32> to vector<2x32xf32>
    %1003 = vector.extract_strided_slice %1000 {offsets = [0, 192], sizes = [2, 32], strides = [1, 1]} : vector<2x384xf32> to vector<2x32xf32>
    %1004 = vector.extract_strided_slice %1000 {offsets = [0, 256], sizes = [2, 128], strides = [1, 1]} : vector<2x384xf32> to vector<2x128xf32>
    %1005 = arith.mulf %856, %994 : vector<2x8xf32>
    %cst_307 = arith.constant dense<0.000000e+00> : vector<2xf32>
    %1006 = vector.multi_reduction <add>, %1005, %cst_307 [1] : vector<2x8xf32> to vector<2xf32>
    %1007 = vector.shape_cast %1006 : vector<2xf32> to vector<2x1xf32>
    %cst_308 = arith.constant 1.000000e+00 : f32
    %1008 = vector.broadcast %cst_308 : f32 to vector<2x1xf32>
    %1009 = arith.subf %1008, %1007 : vector<2x1xf32>
    %1010 = arith.mulf %1009, %995 : vector<2x1xf32>
    %1011 = arith.maximumf %856, %994 : vector<2x8xf32>
    %1012 = vector.broadcast %0 : vector<1x32xf32> to vector<2x32xf32>
    %1013 = arith.addf %1012, %993 : vector<2x32xf32>
    %1014 = arith.mulf %1013, %1013 : vector<2x32xf32>
    %cst_309 = arith.constant dense<0.000000e+00> : vector<2xf32>
    %1015 = vector.multi_reduction <add>, %1014, %cst_309 [1] : vector<2x32xf32> to vector<2xf32>
    %1016 = vector.shape_cast %1015 : vector<2xf32> to vector<2x1xf32>
    %cst_310 = arith.constant 1.000000e-30 : f32
    %1017 = vector.broadcast %cst_310 : f32 to vector<2x1xf32>
    %1018 = arith.addf %1016, %1017 : vector<2x1xf32>
    %1019 = math.rsqrt %1018 : vector<2x1xf32>
    %1020 = vector.broadcast %1019 : vector<2x1xf32> to vector<2x32xf32>
    %1021 = arith.mulf %1013, %1020 : vector<2x32xf32>
    %1022 = vector.broadcast %1010 : vector<2x1xf32> to vector<2x8xf32>
    %1023 = arith.mulf %994, %1022 : vector<2x8xf32>
    %1024 = vector.shape_cast %1023 : vector<2x8xf32> to vector<2x8x1xf32>
    %1025 = vector.shape_cast %1021 : vector<2x32xf32> to vector<2x1x32xf32>
    %1026 = vector.broadcast %1024 : vector<2x8x1xf32> to vector<2x8x32xf32>
    %1027 = vector.broadcast %1025 : vector<2x1x32xf32> to vector<2x8x32xf32>
    %1028 = arith.mulf %1026, %1027 : vector<2x8x32xf32>
    %1029 = arith.addf %923, %1028 : vector<2x8x32xf32>
    %1030 = vector.broadcast %995 : vector<2x1xf32> to vector<2x8xf32>
    %1031 = arith.mulf %994, %1030 : vector<2x8xf32>
    %1032 = vector.shape_cast %994 : vector<2x8xf32> to vector<2x8x1xf32>
    %1033 = vector.broadcast %1032 : vector<2x8x1xf32> to vector<2x8x32xf32>
    %1034 = arith.mulf %1029, %1033 : vector<2x8x32xf32>
    %cst_311 = arith.constant dense<0.000000e+00> : vector<2x32xf32>
    %1035 = vector.multi_reduction <add>, %1034, %cst_311 [1] : vector<2x8x32xf32> to vector<2x32xf32>
    %1036 = arith.mulf %1035, %1002 : vector<2x32xf32>
    %cst_312 = arith.constant dense<0.000000e+00> : vector<2xf32>
    %1037 = vector.multi_reduction <add>, %1036, %cst_312 [1] : vector<2x32xf32> to vector<2xf32>
    %1038 = vector.shape_cast %1037 : vector<2xf32> to vector<2x1xf32>
    %1039 = arith.negf %1038 : vector<2x1xf32>
    %1040 = math.exp %1039 : vector<2x1xf32>
    %cst_313 = arith.constant 1.000000e+00 : f32
    %1041 = vector.broadcast %cst_313 : f32 to vector<2x1xf32>
    %1042 = arith.addf %1041, %1040 : vector<2x1xf32>
    %1043 = arith.divf %1041, %1042 : vector<2x1xf32>
    %1044 = vector.shape_cast %1031 : vector<2x8xf32> to vector<2x8x1xf32>
    %1045 = vector.shape_cast %1043 : vector<2x1xf32> to vector<2x1x1xf32>
    %1046 = vector.broadcast %1045 : vector<2x1x1xf32> to vector<2x8x1xf32>
    %1047 = arith.mulf %1044, %1046 : vector<2x8x1xf32>
    %cst_314 = arith.constant 1.000000e+00 : f32
    %1048 = vector.broadcast %cst_314 : f32 to vector<2x8x1xf32>
    %1049 = arith.subf %1048, %1047 : vector<2x8x1xf32>
    %1050 = vector.broadcast %1049 : vector<2x8x1xf32> to vector<2x8x32xf32>
    %1051 = arith.mulf %1029, %1050 : vector<2x8x32xf32>
    %1052 = vector.shape_cast %1031 : vector<2x8xf32> to vector<2x8x1xf32>
    %1053 = vector.broadcast %1043 : vector<2x1xf32> to vector<2x32xf32>
    %1054 = arith.mulf %1053, %1003 : vector<2x32xf32>
    %1055 = vector.shape_cast %1054 : vector<2x32xf32> to vector<2x1x32xf32>
    %1056 = vector.broadcast %1052 : vector<2x8x1xf32> to vector<2x8x32xf32>
    %1057 = vector.broadcast %1055 : vector<2x1x32xf32> to vector<2x8x32xf32>
    %1058 = arith.mulf %1056, %1057 : vector<2x8x32xf32>
    %1059 = arith.addf %1051, %1058 : vector<2x8x32xf32>
    %1060 = vector.shape_cast %994 : vector<2x8xf32> to vector<2x8x1xf32>
    %1061 = vector.broadcast %1060 : vector<2x8x1xf32> to vector<2x8x32xf32>
    %1062 = arith.mulf %1059, %1061 : vector<2x8x32xf32>
    %cst_315 = arith.constant dense<0.000000e+00> : vector<2x32xf32>
    %1063 = vector.multi_reduction <add>, %1062, %cst_315 [1] : vector<2x8x32xf32> to vector<2x32xf32>
    %1064 = arith.mulf %1063, %1063 : vector<2x32xf32>
    %cst_316 = arith.constant dense<0.000000e+00> : vector<2xf32>
    %1065 = vector.multi_reduction <add>, %1064, %cst_316 [1] : vector<2x32xf32> to vector<2xf32>
    %1066 = vector.shape_cast %1065 : vector<2xf32> to vector<2x1xf32>
    %cst_317 = arith.constant 1.000000e-30 : f32
    %1067 = vector.broadcast %cst_317 : f32 to vector<2x1xf32>
    %1068 = arith.addf %1066, %1067 : vector<2x1xf32>
    %1069 = math.rsqrt %1068 : vector<2x1xf32>
    %cst_318 = arith.constant 5.000000e-01 : f32
    %1070 = vector.broadcast %cst_318 : f32 to vector<2x8xf32>
    %1071 = arith.cmpf ogt, %1031, %1070 : vector<2x8xf32>
    %cst_319 = arith.constant 1.000000e+00 : f32
    %1072 = vector.shape_cast %1069 : vector<2x1xf32> to vector<2x1xf32>
    %1073 = vector.broadcast %1072 : vector<2x1xf32> to vector<2x8xf32>
    %1074 = vector.broadcast %cst_319 : f32 to vector<2x8xf32>
    %1075 = arith.select %1071, %1073, %1074 : vector<2x8xi1>, vector<2x8xf32>
    %1076 = vector.shape_cast %1075 : vector<2x8xf32> to vector<2x8x1xf32>
    %1077 = vector.broadcast %1076 : vector<2x8x1xf32> to vector<2x8x32xf32>
    %1078 = arith.mulf %1059, %1077 : vector<2x8x32xf32>
    %1079 = vector.shape_cast %994 : vector<2x8xf32> to vector<2x8x1xf32>
    %1080 = vector.broadcast %1079 : vector<2x8x1xf32> to vector<2x8x32xf32>
    %1081 = arith.mulf %1078, %1080 : vector<2x8x32xf32>
    %cst_320 = arith.constant dense<0.000000e+00> : vector<2x32xf32>
    %1082 = vector.multi_reduction <add>, %1081, %cst_320 [1] : vector<2x8x32xf32> to vector<2x32xf32>
    %cst_321 = arith.constant 5.000000e-01 : f32
    %1083 = vector.broadcast %cst_321 : f32 to vector<2x1xf32>
    %1084 = arith.cmpf ogt, %995, %1083 : vector<2x1xf32>
    %1085 = vector.shape_cast %1084 : vector<2x1xi1> to vector<2x1xi1>
    %1086 = vector.broadcast %1085 : vector<2x1xi1> to vector<2x32xi1>
    %1087 = arith.select %1086, %1082, %932 : vector<2x32xi1>, vector<2x32xf32>
    %1088 = vector.shape_cast %1001 : vector<2x32xf32> to vector<2x1x32xf32>
    %1089 = vector.broadcast %1088 : vector<2x1x32xf32> to vector<2x8x32xf32>
    %1090 = arith.mulf %1078, %1089 : vector<2x8x32xf32>
    %cst_322 = arith.constant dense<0.000000e+00> : vector<2x8xf32>
    %1091 = vector.multi_reduction <add>, %1090, %cst_322 [2] : vector<2x8x32xf32> to vector<2x8xf32>
    %cst_323 = arith.constant 1.000000e+00 : f32
    %1092 = vector.broadcast %cst_323 : f32 to vector<2x8xf32>
    %1093 = arith.subf %1091, %1092 : vector<2x8xf32>
    %cst_324 = arith.constant 5.000000e-01 : f32
    %1094 = vector.broadcast %cst_324 : f32 to vector<2x8xf32>
    %1095 = arith.cmpf ogt, %1011, %1094 : vector<2x8xf32>
    %cst_325 = arith.constant 0xFF800000 : f32
    %1096 = vector.broadcast %cst_325 : f32 to vector<2x8xf32>
    %1097 = arith.select %1095, %1093, %1096 : vector<2x8xi1>, vector<2x8xf32>
    %1098 = vector.broadcast %995 : vector<2x1xf32> to vector<2x32xf32>
    %1099 = arith.mulf %1082, %1098 : vector<2x32xf32>
    %c0_326 = arith.constant 0 : index
    %c0_327 = arith.constant 0 : index
    %c0_328 = arith.constant 0 : index
    %1100 = vector.load %arg6[%c0_326, %c0_327, %c0_328] : memref<2x32x128xf32, #tpu.memory_space<vmem>>, vector<1x32x128xf32>
    %1101 = vector.shape_cast %1100 : vector<1x32x128xf32> to vector<32x128xf32>
    %cst_329 = arith.constant dense<0.000000e+00> : vector<2x128xf32>
    %1102 = tpu.matmul %1099, %1101, %cst_329 {dimension_numbers = #tpu.dot_dimension_numbers<[1], [0], [0], [1], [0, 0, 1, 1], [], []>} : vector<2x32xf32>, vector<32x128xf32>, vector<2x128xf32> -> vector<2x128xf32>
    %cst_330 = arith.constant 1.000000e+00 : f32
    %1103 = vector.broadcast %cst_330 : f32 to vector<2x1xf32>
    %1104 = arith.subf %1103, %995 : vector<2x1xf32>
    %1105 = vector.broadcast %1104 : vector<2x1xf32> to vector<2x32xf32>
    %1106 = arith.mulf %1087, %1105 : vector<2x32xf32>
    %c1_331 = arith.constant 1 : index
    %c0_332 = arith.constant 0 : index
    %c0_333 = arith.constant 0 : index
    %1107 = vector.load %arg6[%c1_331, %c0_332, %c0_333] : memref<2x32x128xf32, #tpu.memory_space<vmem>>, vector<1x32x128xf32>
    %1108 = vector.shape_cast %1107 : vector<1x32x128xf32> to vector<32x128xf32>
    %cst_334 = arith.constant dense<0.000000e+00> : vector<2x128xf32>
    %1109 = tpu.matmul %1106, %1108, %cst_334 {dimension_numbers = #tpu.dot_dimension_numbers<[1], [0], [0], [1], [0, 0, 1, 1], [], []>} : vector<2x32xf32>, vector<32x128xf32>, vector<2x128xf32> -> vector<2x128xf32>
    %1110 = arith.addf %1102, %1109 : vector<2x128xf32>
    %1111 = arith.addf %1004, %1110 : vector<2x128xf32>
    %c6_335 = arith.constant 6 : index
    %c0_336 = arith.constant 0 : index
    %c0_337 = arith.constant 0 : index
    %1112 = vector.load %arg9[%c6_335, %c0_336, %c0_337] : memref<7x2x128xf32, #tpu.memory_space<vmem>>, vector<1x2x128xf32>
    %1113 = vector.shape_cast %1112 : vector<1x2x128xf32> to vector<2x128xf32>
    %1114 = vector.shape_cast %1111 : vector<2x128xf32> to vector<1x2x128xf32>
    tpu.vector_store %arg9[%c6_335, %c0_336, %c0_337], %1114 {strides = array<i32>} : memref<7x2x128xf32, #tpu.memory_space<vmem>>, vector<1x2x128xf32>,
    %c6_338 = arith.constant 6 : index
    %c0_339 = arith.constant 0 : index
    %c0_340 = arith.constant 0 : index
    %1115 = vector.load %arg10[%c6_338, %c0_339, %c0_340] : memref<7x2x8xf32, #tpu.memory_space<vmem>>, vector<1x2x8xf32>
    %1116 = vector.shape_cast %1115 : vector<1x2x8xf32> to vector<2x8xf32>
    %1117 = vector.shape_cast %1097 : vector<2x8xf32> to vector<1x2x8xf32>
    tpu.vector_store %arg10[%c6_338, %c0_339, %c0_340], %1117 {strides = array<i32>} : memref<7x2x8xf32, #tpu.memory_space<vmem>>, vector<1x2x8xf32>,
    %c0_341 = arith.constant 0 : index
    %c0_342 = arith.constant 0 : index
    %1118 = vector.load %arg11[%c0_341, %c0_342] : memref<2x32xf32, #tpu.memory_space<vmem>>, vector<2x32xf32>
    tpu.vector_store %arg11[%c0_341, %c0_342], %990 {strides = array<i32>} : memref<2x32xf32, #tpu.memory_space<vmem>>, vector<2x32xf32>,
    return
  }
}

</mosaic_0001>

<bundles_post_ra>
// kernel: entity_nlm_forward.1
= control target key start
LH: loop header
LB: loop body
LE: loop exit
PB: predicated region body
PF: predicated region fallthrough
CT: control target
= control target key end

     0   :  { %17 = vsyncpa [#allocation3], 0  ;;  %s5397_s0 = inlined_call_operand.vmem [shape: f32[7,2,128], index: 0, kind: input, shape index: {}]   ;;  %s5398_s1 = inlined_call_operand.vmem [shape: f32[7,2,128], index: 1, kind: input, shape index: {}]   ;;  %s5399_s2 = inlined_call_operand.vmem [shape: f32[2,32], index: 2, kind: input, shape index: {}]   ;;  %s5400_s3 = inlined_call_operand.vmem [shape: f32[2,32], index: 3, kind: input, shape index: {}]   ;;  %s5401_s4 = inlined_call_operand.vmem [shape: f32[32,384], index: 4, kind: input, shape index: {}]   ;;  %s5402_s5 = inlined_call_operand.vmem [shape: f32[1,384], index: 5, kind: input, shape index: {}]   ;;  %s5403_s6 = inlined_call_operand.vmem [shape: f32[2,32,128], index: 6, kind: input, shape index: {}]   ;;  %s5404_s7 = inlined_call_operand.vmem [shape: f32[1,32], index: 7, kind: input, shape index: {}]   ;;  %s5405_s8 = inlined_call_operand.vmem [shape: f32[1,32], index: 8, kind: input, shape index: {}]   ;;  %s5406_s9 = inlined_call_operand.vmem [shape: f32[7,2,128], index: 9, kind: output, shape index: {0}]   ;;  %s5407_s10 = inlined_call_operand.hbm [shape: f32[7,2,8], index: 10, kind: output, shape index: {1}]   ;;  %s5408_s11 = inlined_call_operand.hbm [shape: f32[2,32], index: 11, kind: output, shape index: {2}]  }
   0x1   :  { %v3891_v0 = vld [vmem:[%s5401_s4 + $0x48] sm:$0xff]  ;;  %v3896_v1 = vld [vmem:[%s5401_s4 + $0x30] sm:$0xff]  ;;  %v3903_v2 = vld [vmem:[%s5401_s4 + $0x18] sm:$0xff] }
   0x2   :  { %120 = vmatpush.msra.mxu0 %v3891_v0  ;;  %197 = vmatpush.msra.mxu1 %v3891_v0 }
   0x3   :  { %18 = vsyncpa [#allocation5], 0  ;;  %v3910_v3 = vld [vmem:[%s5401_s4] sm:$0xff]  ;;  %vm104_vm0 = vcmask 261120   ;;  %s3819_s29 = smov 64   ;;  %s3820_s12 = smov 32  }
   0x4   :  { %121 = vmatpush.msra.mxu0 %v3896_v1  ;;  %198 = vmatpush.msra.mxu1 %v3896_v1  ;;  %v90_v4 = vld [vmem:[%s5399_s2] sm:$0x3]  ;;  %v102_v30 = vld [vmem:[%s5401_s4 + $0x50] sm:$0xff]  ;;  %v3939_v31 = vld [vmem:[%s5401_s4 + $0x58] sm:$0xff]  ;;  %s3821_s15 = smov 96   ;;  %vm250_vm10 = vcmask 58368  }
   0x5   :  { %v128_v5 = vld [vmem:[%s5397_s0] sm:$0x3]  ;;  %v99_v32 = vld [vmem:[%s5401_s4 + $0x38] sm:$0xff]  ;;  %217 = vmatpush.msra.mxu2 %v102_v30  ;;  %237 = vmatpush.msra.mxu3 %v3939_v31  ;;  %v3956_v35 = vld [vmem:[%s5401_s4 + $0x28] sm:$0xff]  ;;  %vm39_vm11 = vcmask 253952   ;;  %vm262_vm12 = vcmask 254976  }
   0x6   :  { %122 = vmatpush.msra.mxu0 %v3903_v2  ;;  %199 = vmatpush.msra.mxu1 %v3903_v2  ;;  %v91_v9 = vld [vmem:[%s5400_s3] sm:$0x3]  ;;  %v93_v36 = vld [vmem:[%s5401_s4 + $0x8] sm:$0xff]  ;;  %v3965_v37 = vld [vmem:[%s5401_s4 + $0x10] sm:$0xff]  ;;  %s3460_s30 = sshll.u32 %s5408_s11, 4  ;;  %s3826_s11 = smov [#allocation2]   ;;  %s3461_s30 = int_to_ptr.hbm [resolvable:$true] %s3460_s30 }
   0x7   :  { %v3948_v33 = vld [vmem:[%s5401_s4 + $0x40] sm:$0xff]  ;;  %218 = vmatpush.msra.mxu2 %v99_v32  ;;  %s3444_s3 = sshll.u32 %s3826_s11, 4  ;;  %s3446_s14 = sshll.u32 %s5407_s10, 4  ;;  %s3445_s3 = int_to_ptr.vmem [resolvable:$true] %s3444_s3  ;;  %s3447_s14 = int_to_ptr.hbm [resolvable:$true] %s3446_s14 }
   0x8   :  { %123 = vmatpush.msra.mxu0 %v3910_v3  ;;  %200 = vmatpush.msra.mxu1 %v3910_v3  ;;  %v96_v34 = vld [vmem:[%s5401_s4 + $0x20] sm:$0xff]  ;;  %s3827_s16 = smov 2  }
   0x9   :  { %3477 = vmatmul.msk.f32.vlgmr.msra.gmra.mxu0 %vm104_vm0, %v90_v4  ;;  %238 = vmatpush.msra.mxu3 %v3948_v33  ;;  %v3984_v41 = vld [vmem:[%s5402_s5] sm:$0x7]  ;;  %v71_v4 = vlaneseq }
   0xa   :  { %219 = vmatpush.msra.mxu2 %v96_v34  ;;  %v174_v42 = vperm.slane %v3984_v41, 0  ;;  %v3491_v44 = vld [vmem:[%s5397_s0 + $0x2] sm:$0x3]  ;;  %v3994_v51 = vld [vmem:[%s5398_s1] sm:$0x3] }
   0xb   :  { %239 = vmatpush.msra.mxu3 %v3956_v35 }
   0xc   :  { %220 = vmatpush.msra.mxu2 %v93_v36 }
   0xd   :  { %240 = vmatpush.msra.mxu3 %v3965_v37 }
   0xe   :  { %679 = vmatpush.msrb.mxu2 %v3891_v0 }
   0xf   :  { %699 = vmatpush.msrb.mxu3 %v102_v30  ;;  %v175_v30 = vperm.slane %v3984_v41, 1 }
  0x10   :  { %680 = vmatpush.msrb.mxu2 %v3896_v1 }
  0x11   :  { %700 = vmatpush.msrb.mxu3 %v99_v32 }
  0x12   :  { %681 = vmatpush.msrb.mxu2 %v3903_v2 }
  0x13   :  { %701 = vmatpush.msrb.mxu3 %v96_v34 }
  0x14   :  { %682 = vmatpush.msrb.mxu2 %v3910_v3 }
  0x15   :  { %702 = vmatpush.msrb.mxu3 %v93_v36 }
  0x86   :  { %v125_v6 = vpop.f32.mrf.mxu0 }
  0x87   :  { %v129_v7 = vadd.f32 %v128_v5, %v125_v6  ;;  %v4004_v5 = vand.u32 127, %v71_v4 }
  0x89   :  { %3639 = vtanh.f32 %v129_v7  ;;  %v3478_v10 = vmul.f32 -1.442695, %v129_v7  ;;  %vm73_vm9 = vcmp.eq.s32.totalorder %v4004_v5, 0  ;;  %v3822_v7 = vmov 0.0  }
  0x8b   :  { %3641 = vpow2.f32 %v3478_v10 }
  0x8f   :  { %v3640_v8 = vpop.eup %3639 }
  0x90   :  { %156 = vrot.lane.b32.xlu0 %v3640_v8, %s3819_s29  ;;  %v4009_v8 = vsel %vm73_vm9, 1.0, %v3822_v7 }
  0x91   :  { %v3642_v11 = vpop.eup %3641 }
  0x92   :  { %v133_v12 = vadd.f32 1.0, %v3642_v11 }
  0x94   :  { %3643 = vrcp.f32 %v133_v12  ;;  %v145_v18 = vand.u32 2147483648, %v133_v12  ;;  %vm139_vm2 = vweird.f32 %v133_v12  ;;  %v143_v19 = vand.u32 2147483647, %v133_v12 }
  0x96   :  { %v146_v21 = vor.u32 1.1754944e-38, %v145_v18  ;;  %vm144_vm4 = vcmp.eq.f32.partialorder %v143_v19, 8.507059e+37 }
  0x98   :  { %151 = vrot.lane.b32.xlu0 %v91_v9, %s3820_s12 }
  0x9a   :  { %v3644_v13 = vpop.eup %3643 }
  0x9b   :  { %v135_v14 = vmul.f32 %v3644_v13, %v133_v12  ;;  %vm140_vm1 = vweird.f32 %v3644_v13 }
  0x9c   :  { %vm141_vm3 = vmor %vm139_vm2, %vm140_vm1 }
  0x9d   :  { %v136_v15 = vsub.f32 1.0, %v135_v14  ;;  %v4019_v14 = vld [vmem:[%s5404_s7] sm:$0x1] }
  0x9f   :  { %v137_v16 = vmul.f32 %v3644_v13, %v136_v15  ;;  %v38_v15 = vmul.f32 %v4019_v14, %v4019_v14 }
  0xa1   :  { %v138_v17 = vadd.f32 %v3644_v13, %v137_v16  ;;  %v40_v16 = vsel %vm39_vm11, %v38_v15, 0.0 }
  0xa3   :  { %v142_v20 = vsel %vm141_vm3, %v3644_v13, %v138_v17  ;;  %v3823_v13 = vmov 40  }
  0xa4   :  { %v147_v23 = vsel %vm144_vm4, %v146_v21, %v142_v20  ;;  %3595 = vset.pattern.permute.xlu0 %v3823_v13  ;;  %v4027_v20 = vld [vmem:[%s5404_s7] ss:$0 sm:$0xff] }
  0xa5   :  { %v4031_v21 = vadd.f32 %v4027_v20, %v3994_v51 }
 0x102   :  { %v157_v22 = vpop.permute.xlu0 %156 }
 0x103   :  { %v159_v24 = vmul.f32 %v157_v22, %v147_v23  ;;  %v77_v22 = vshrl.u32 %v71_v4, 7 }
 0x105   :  { %161 = vrot.lane.b32.xlu1 %v159_v24, %s3820_s12  ;;  %3596 = vset.pattern.permute.xlu2 %v77_v22  ;;  %v4035_v24 = vadd.s32 32, %v77_v22 }
 0x107   :  { %3597 = vset.pattern.permute.xlu1 %v4035_v24 }
 0x10a   :  { %v152_v25 = vpop.permute.xlu0 %151 }
 0x10b   :  { %v154_v26 = vmul.f32 %v152_v25, %v147_v23 }
 0x177   :  { %v162_v27 = vpop.permute.xlu1 %161 }
 0x178   :  { %v3929_v28 = vadd.f32 %v162_v27, %v154_v26  ;;  %v320_v27 = vperm.slane %v3994_v51, 1 }
 0x17a   :  { %3645 = vtanh.f32 %v3929_v28 }
 0x180   :  { %v3646_v29 = vpop.eup %3645 }
 0x181   :  { %167 = vrot.lane.b32.xlu1 %v3646_v29, %s3819_s29 }
 0x1f3   :  { %v168_v38 = vpop.permute.xlu1 %167 }
 0x1f4   :  { %v170_v39 = vmul.f32 %v168_v38, %v147_v23  ;;  %v261_v23 = vmul.f32 %v4031_v21, %v4031_v21 }
 0x1f6   :  { %181 = vrot.lane.b32.xlu2 %v170_v39, %s3820_s12  ;;  %v263_v25 = vsel %vm262_vm12, %v261_v23, 0.0  ;;  %v313_v39 = vperm.slane %v3994_v51, 0 }
 0x250   :  { %v182_v40 = vpop.permute.xlu2 %181 }
 0x251   :  { %3479 = vmatmul.msk.f32.vlgmr.msra.gmra.mxu1 %vm104_vm0, %v182_v40  ;;  %3480 = vmatmul.msk.f32.vlgmr.msra.gmra.mxu2 %vm104_vm0, %v182_v40 }
 0x252   :  { %3481 = vmatmul.msk.f32.vlgmr.msra.gmra.mxu3 %vm104_vm0, %v182_v40 }
 0x253   :  { %1156 = vmatpush.msra.mxu3 %v3891_v0 }
 0x255   :  { %1157 = vmatpush.msra.mxu3 %v3896_v1 }
 0x257   :  { %1158 = vmatpush.msra.mxu3 %v3903_v2 }
 0x259   :  { %1159 = vmatpush.msra.mxu3 %v3910_v3 }
 0x2ce   :  { %v202_v43 = vpop.f32.mrf.mxu1 }
 0x2cf   :  { %v203_v45 = vadd.f32 %v202_v43, %v174_v42 }
 0x2d1   :  { %v602_v46 = vadd.f32 %v3491_v44, %v203_v45 }
 0x2d3   :  { %3647 = vtanh.f32 %v602_v46  ;;  %v3492_v48 = vmul.f32 -1.442695, %v602_v46 }
 0x2d4   :  { %v222_v36 = vpop.f32.mrf.mxu2 }
 0x2d5   :  { %3649 = vpow2.f32 %v3492_v48  ;;  %v4051_v38 = vadd.f32 %v222_v36, %v175_v30 }
 0x2d7   :  { %v344_v40 = vrot.slane %v4051_v38, 1 }
 0x2d9   :  { %v3648_v47 = vpop.eup %3647 }
 0x2da   :  { %625 = vrot.lane.b32.xlu2 %v3648_v47, %s3819_s29 }
 0x2db   :  { %v3650_v49 = vpop.eup %3649 }
 0x2dc   :  { %v606_v50 = vadd.f32 1.0, %v3650_v49 }
 0x2de   :  { %3651 = vrcp.f32 %v606_v50  ;;  %v618_v57 = vand.u32 2147483648, %v606_v50  ;;  %vm612_vm6 = vweird.f32 %v606_v50  ;;  %v616_v58 = vand.u32 2147483647, %v606_v50 }
 0x2e0   :  { %v619_v60 = vor.u32 1.1754944e-38, %v618_v57  ;;  %vm617_vm8 = vcmp.eq.f32.partialorder %v616_v58, 8.507059e+37 }
 0x2e2   :  { %246 = vrot.lane.b32.xlu2 %v3994_v51, %s3821_s15 }
 0x2e4   :  { %v3652_v52 = vpop.eup %3651 }
 0x2e5   :  { %v608_v53 = vmul.f32 %v3652_v52, %v606_v50  ;;  %vm613_vm5 = vweird.f32 %v3652_v52 }
 0x2e6   :  { %vm614_vm7 = vmor %vm612_vm6, %vm613_vm5 }
 0x2e7   :  { %v609_v54 = vsub.f32 1.0, %v608_v53 }
 0x2e9   :  { %v610_v55 = vmul.f32 %v3652_v52, %v609_v54 }
 0x2eb   :  { %v611_v56 = vadd.f32 %v3652_v52, %v610_v55 }
 0x2ed   :  { %v615_v59 = vsel %vm614_vm7, %v3652_v52, %v611_v56  ;;  %v4066_v56 = vld [vmem:[%s5402_s5] sm:$0x7]  ;;  %vm356_vm7 = vcmask 1041409  }
 0x2ee   :  { %v620_v62 = vsel %vm617_vm8, %v619_v60, %v615_v59  ;;  %v656_v58 = vperm.slane %v4066_v56, 0 }
 0x2ef   :  { %v623_v0 = vmul.f32 %v620_v62, %v3929_v28 }
 0x30b   :  { %41 = vadd.xlane.f32.xlu2 %v40_v16 }
 0x323   :  { %80 = vperm.xlu2 %3596, %v4009_v8  }
 0x32b   :  { %3598 = vset.pattern.permute.xlu2 %v4035_v24 }
 0x334   :  { %v626_v61 = vpop.permute.xlu2 %625 }
 0x335   :  { %v628_v63 = vmul.f32 %v626_v61, %v620_v62 }
 0x337   :  { %630 = vrot.lane.b32.xlu0 %v628_v63, %s3820_s12 }
 0x33c   :  { %v4007_v6 = vpop.permute.xlu2 %246 }
 0x33d   :  { %v249_v9 = vmul.f32 %v4009_v8, %v4007_v6 }
 0x33f   :  { %v251_v10 = vsel %vm250_vm10, %v249_v9, 0.0 }
 0x37e   :  { %v42_v41 = vpop.xlane.xlu2 %41 }
 0x37f   :  { %vm50_vm13 = vcmp.eq.f32.partialorder %v42_v41, inf  ;;  %v53_v49 = vand.u32 2147483648, %v42_v41  ;;  %vm52_vm14 = vcmp.eq.f32.partialorder %v42_v41, 0.0 }
 0x386   :  { %v81_v59 = vpop.permute.xlu2 %80 }
 0x3a9   :  { %v631_v1 = vpop.permute.xlu0 %630 }
 0x3aa   :  { %v4000_v2 = vadd.f32 %v631_v1, %v623_v0 }
 0x3ac   :  { %3653 = vtanh.f32 %v4000_v2 }
 0x3ad   :  { %3655 = vrsqrt.f32 %v42_v41 }
 0x3b2   :  { %v3654_v3 = vpop.eup %3653 }
 0x3b3   :  { %636 = vrot.lane.b32.xlu1 %v3654_v3, %s3819_s29  ;;  %v3656_v42 = vpop.eup %3655 }
 0x3b4   :  { %v44_v43 = vmul.f32 %v3656_v42, %v42_v41 }
 0x3b6   :  { %v45_v44 = vmul.f32 %v3656_v42, %v44_v43 }
 0x3b8   :  { %v46_v45 = vmul.f32 0.5, %v45_v44 }
 0x3ba   :  { %v47_v46 = vsub.f32 1.5, %v46_v45 }
 0x3bc   :  { %v48_v47 = vmul.f32 %v3656_v42, %v47_v46 }
 0x3be   :  { %v49_v48 = vmul.f32 %v48_v47, %v42_v41 }
 0x3c0   :  { %v51_v50 = vsel %vm50_vm13, %v42_v41, %v49_v48 }
 0x3c1   :  { %v54_v53 = vsel %vm52_vm14, %v53_v49, %v51_v50 }
 0x3c2   :  { %v55_v55 = vadd.f32 1e-20, %v54_v53 }
 0x3c4   :  { %vm61_vm15 = vweird.f32 %v55_v55  ;;  %v67_v16 = vand.u32 2147483648, %v55_v55 }
 0x3c6   :  { %v68_v23 = vor.u32 1.1754944e-38, %v67_v16 }
 0x3dd   :  { %252 = vadd.xlane.f32.xlu1 %v251_v10 }
 0x425   :  { %v637_v11 = vpop.permute.xlu1 %636 }
 0x426   :  { %v639_v12 = vmul.f32 %v637_v11, %v620_v62  ;;  %v3507_v62 = vld [vmem:[%s5397_s0 + $0x4] sm:$0x3] }
 0x428   :  { %663 = vrot.lane.b32.xlu0 %v639_v12, %s3820_s12 }
 0x450   :  { %v253_v17 = vpop.xlane.xlu1 %252 }
 0x451   :  { %v254_v18 = vsub.f32 1.0, %v253_v17 }
 0x453   :  { %v255_v19 = vmul.f32 %v254_v18, %v3994_v51  ;;  %v65_v18 = vand.u32 2147483647, %v55_v55 }
 0x455   :  { %280 = vperm.xlu0 %3595, %v255_v19   ;;  %vm66_vm6 = vcmp.eq.f32.partialorder %v65_v18, 8.507059e+37 }
 0x45d   :  { %3599 = vset.pattern.permute.xlu0 %v4035_v24 }
 0x47f   :  { %264 = vadd.xlane.f32.xlu0 %v263_v25 }
 0x493   :  { %325 = vperm.xlu0 %3599, %v320_v27  }
 0x49a   :  { %v4042_v26 = vpop.permute.xlu0 %663 }
 0x49b   :  { %3494 = vmatmul.msk.f32.vlgmr.msrb.gmra.mxu2 %vm104_vm0, %v4042_v26  ;;  %3495 = vmatmul.msk.f32.vlgmr.msrb.gmra.mxu3 %vm104_vm0, %v4042_v26 }
 0x4c7   :  { %v281_v28 = vpop.permute.xlu0 %280 }
 0x4c8   :  { %v283_v29 = vmul.f32 %v281_v28, %v3994_v51 }
 0x4ca   :  { %v284_v32 = vperm.slane %v283_v29, 0  ;;  %v291_v34 = vperm.slane %v283_v29, 1 }
 0x4cc   :  { %296 = vperm.xlu1 %3597, %v291_v34   ;;  %289 = vperm.xlu2 %3598, %v284_v32  }
 0x4d4   :  { %318 = vperm.xlu1 %3597, %v313_v39   ;;  %347 = vrot.lane.b32.xlu2 %v344_v40, %s3821_s15 }
 0x4d5   :  { %3600 = vset.pattern.permute.xlu2 %v3823_v13 }
 0x4dc   :  { %345 = vrot.lane.b32.xlu1 %v4051_v38, %s3821_s15  ;;  %309 = vperm.xlu2 %3600, %v3994_v51  }
 0x4e4   :  { %3602 = vset.pattern.permute.xlu2 %v4035_v24 }
 0x4f2   :  { %v265_v52 = vpop.xlane.xlu0 %264 }
 0x4f3   :  { %v266_v54 = vadd.f32 1e-30, %v265_v52 }
 0x4f5   :  { %3657 = vrsqrt.f32 %v266_v54  ;;  %vm273_vm2 = vweird.f32 %v266_v54 }
 0x4f6   :  { %3659 = vrcp.f32 %v55_v55 }
 0x4fb   :  { %v3658_v57 = vpop.eup %3657 }
 0x4fc   :  { %v3660_v60 = vpop.eup %3659  ;;  %v268_v63 = vmul.f32 %v3658_v57, %v266_v54  ;;  %vm274_vm3 = vweird.f32 %v3658_v57 }
 0x4fd   :  { %v57_v3 = vmul.f32 %v3660_v60, %v55_v55  ;;  %vm62_vm1 = vweird.f32 %v3660_v60  ;;  %vm275_vm5 = vmor %vm273_vm2, %vm274_vm3 }
 0x4fe   :  { %v269_v4 = vmul.f32 %v3658_v57, %v268_v63  ;;  %vm63_vm4 = vmor %vm61_vm15, %vm62_vm1 }
 0x4ff   :  { %v58_v7 = vsub.f32 1.0, %v57_v3 }
 0x500   :  { %v270_v9 = vmul.f32 0.5, %v269_v4 }
 0x501   :  { %v59_v12 = vmul.f32 %v3660_v60, %v58_v7 }
 0x502   :  { %v271_v15 = vsub.f32 1.5, %v270_v9 }
 0x503   :  { %v60_v17 = vadd.f32 %v3660_v60, %v59_v12 }
 0x504   :  { %v272_v19 = vmul.f32 %v3658_v57, %v271_v15 }
 0x505   :  { %v64_v25 = vsel %vm63_vm4, %v3660_v60, %v60_v17  ;;  %v4085_v47 = vpop.permute.xlu0 %325 }
 0x506   :  { %v276_v27 = vsel %vm275_vm5, %v3658_v57, %v272_v19  ;;  %v69_v28 = vsel %vm66_vm6, %v68_v23, %v64_v25 }
 0x507   :  { %v277_v29 = vmul.f32 %v276_v27, %v4031_v21  ;;  %v70_v32 = vmul.f32 %v69_v28, %v4019_v14 }
 0x509   :  { %v299_v36 = vrot.slane %v277_v29, 1  ;;  %v83_v41 = vperm.slane %v70_v32, 0  ;;  %v300_v43 = vperm.slane %v277_v29, 0 }
 0x50b   :  { %v301_v42 = vperm.slane %v299_v36, 0  ;;  %v85_v45 = vmul.f32 %v83_v41, %v81_v59 }
 0x51e   :  { %v684_v61 = vpop.f32.mrf.mxu2 }
 0x51f   :  { %v685_v0 = vadd.f32 %v684_v61, %v656_v58 }
 0x521   :  { %v4072_v1 = vadd.f32 %v3507_v62, %v685_v0 }
 0x523   :  { %3661 = vtanh.f32 %v4072_v1  ;;  %v3508_v17 = vmul.f32 -1.442695, %v4072_v1 }
 0x525   :  { %3663 = vpow2.f32 %v3508_v17 }
 0x526   :  { %v290_v10 = vpop.permute.xlu2 %289 }
 0x527   :  { %v304_v21 = vmul.f32 %v300_v43, %v290_v10 }
 0x529   :  { %v3662_v11 = vpop.eup %3661  ;;  %v4092_v49 = vadd.f32 %v304_v21, %v85_v45 }
 0x52a   :  { %1102 = vrot.lane.b32.xlu1 %v3662_v11, %s3819_s29 }
 0x52b   :  { %v3664_v18 = vpop.eup %3663 }
 0x52c   :  { %v1083_v19 = vadd.f32 1.0, %v3664_v18 }
 0x52e   :  { %v348_v22 = vpop.permute.xlu2 %347  ;;  %3665 = vrcp.f32 %v1083_v19  ;;  %v1095_v29 = vand.u32 2147483648, %v1083_v19  ;;  %vm1089_vm9 = vweird.f32 %v1083_v19  ;;  %v1093_v32 = vand.u32 2147483647, %v1083_v19 }
 0x530   :  { %vm1094_vm13 = vcmp.eq.f32.partialorder %v1093_v32, 8.507059e+37 }
 0x534   :  { %v3666_v23 = vpop.eup %3665 }
 0x535   :  { %v1085_v25 = vmul.f32 %v3666_v23, %v1083_v19  ;;  %vm1090_vm8 = vweird.f32 %v3666_v23  ;;  %v4125_v19 = vmax.f32 %v4009_v8, %v4007_v6 }
 0x536   :  { %v4077_v30 = vpop.permute.xlu2 %309  ;;  %vm1091_vm11 = vmor %vm1089_vm9, %vm1090_vm8  ;;  %vm495_vm8 = vcmp.gt.f32.partialorder %v3994_v51, 0.5 }
 0x537   :  { %v4082_v34 = vmul.f32 %v4077_v30, %v3994_v51  ;;  %v1086_v27 = vsub.f32 1.0, %v1085_v25 }
 0x539   :  { %v388_v39 = vperm.slane %v4082_v34, 1  ;;  %v381_v43 = vperm.slane %v4082_v34, 0  ;;  %vm461_vm6 = vcmp.gt.f32.partialorder %v4082_v34, 0.5 }
 0x53b   :  { %393 = vperm.xlu0 %3599, %v388_v39   ;;  %v1096_v39 = vor.u32 1.1754944e-38, %v1095_v29 }
 0x53e   :  { %v297_v44 = vpop.permute.xlu1 %296 }
 0x53f   :  { %v305_v46 = vmul.f32 %v301_v42, %v297_v44  ;;  %v4111_v44 = vld [vmem:[%s5398_s1 + $0x2] sm:$0x3] }
 0x541   :  { %v4087_v48 = vadd.f32 %v305_v46, %v85_v45 }
 0x543   :  { %v328_v14 = vmul.f32 %v4085_v47, %v4087_v48  ;;  %3601 = vset.pattern.permute.xlu0 %v3823_v13 }
 0x545   :  { %v336_v50 = vsel %vm104_vm0, %v328_v14, 0.0 }
 0x546   :  { %v337_v52 = vrot.slane %v336_v50, 4  ;;  %v4095_v53 = vpop.permute.xlu1 %318 }
 0x547   :  { %v327_v54 = vmul.f32 %v4095_v53, %v4092_v49 }
 0x548   :  { %v338_v55 = vadd.f32 %v337_v52, %v336_v50 }
 0x549   :  { %v329_v57 = vsel %vm104_vm0, %v327_v54, 0.0 }
 0x54a   :  { %v339_v58 = vrot.slane %v338_v55, 2  ;;  %v330_v59 = vrot.slane %v329_v57, 4 }
 0x54c   :  { %v331_v60 = vadd.f32 %v330_v59, %v329_v57  ;;  %v340_v61 = vadd.f32 %v339_v58, %v338_v55 }
 0x54e   :  { %v332_v62 = vrot.slane %v331_v60, 2  ;;  %v341_v63 = vrot.slane %v340_v61, 1  ;;  %v346_v10 = vpop.permute.xlu1 %345 }
 0x550   :  { %v333_v0 = vadd.f32 %v332_v62, %v331_v60  ;;  %v342_v3 = vadd.f32 %v341_v63, %v340_v61 }
 0x552   :  { %v334_v4 = vrot.slane %v333_v0, 1  ;;  %v352_v7 = vmul.f32 %v348_v22, %v342_v3  ;;  %v1087_v22 = vmul.f32 %v3666_v23, %v1086_v27 }
 0x554   :  { %v335_v9 = vadd.f32 %v334_v4, %v333_v0  ;;  %v355_v12 = vrot.slane %v352_v7, 7  ;;  %v1088_v28 = vadd.f32 %v3666_v23, %v1087_v22 }
 0x556   :  { %v351_v11 = vmul.f32 %v346_v10, %v335_v9  ;;  %v1092_v36 = vsel %vm1091_vm11, %v3666_v23, %v1088_v28 }
 0x557   :  { %v4103_v41 = vsel %vm1094_vm13, %v1096_v39, %v1092_v36 }
 0x558   :  { %v357_v15 = vsel %vm356_vm7, %v355_v12, %v351_v11  ;;  %v1100_v10 = vmul.f32 %v4103_v41, %v4000_v2 }
 0x559   :  { %v359_v16 = vsel %vm262_vm12, %v357_v15, 0.0 }
 0x55a   :  { %360 = vadd.xlane.f32.xlu2 %v359_v16 }
 0x59c   :  { %v1103_v1 = vpop.permute.xlu1 %1102 }
 0x59d   :  { %v1105_v42 = vmul.f32 %v1103_v1, %v4103_v41 }
 0x59f   :  { %1107 = vrot.lane.b32.xlu1 %v1105_v42, %s3820_s12 }
 0x5a7   :  { %386 = vperm.xlu1 %3597, %v381_v43  }
 0x5ad   :  { %v394_v4 = vpop.permute.xlu0 %393 }
 0x5af   :  { %728 = vrot.lane.b32.xlu1 %v4111_v44, %s3821_s15 }
 0x5cd   :  { %v361_v45 = vpop.xlane.xlu2 %360 }
 0x5ce   :  { %v3482_v46 = vmul.f32 -1.442695, %v361_v45 }
 0x5d0   :  { %3667 = vpow2.f32 %v3482_v46 }
 0x5d6   :  { %v3668_v21 = vpop.eup %3667 }
 0x5d7   :  { %v365_v14 = vadd.f32 1.0, %v3668_v21 }
 0x5d9   :  { %3669 = vrcp.f32 %v365_v14  ;;  %v377_v55 = vand.u32 2147483648, %v365_v14  ;;  %v375_v58 = vand.u32 2147483647, %v365_v14  ;;  %vm371_vm15 = vweird.f32 %v365_v14 }
 0x5db   :  { %v378_v60 = vor.u32 1.1754944e-38, %v377_v55  ;;  %vm376_vm2 = vcmp.eq.f32.partialorder %v375_v58, 8.507059e+37 }
 0x5df   :  { %v3670_v50 = vpop.eup %3669 }
 0x5e0   :  { %v367_v52 = vmul.f32 %v3670_v50, %v365_v14  ;;  %vm372_vm14 = vweird.f32 %v3670_v50 }
 0x5e1   :  { %vm373_vm1 = vmor %vm371_vm15, %vm372_vm14 }
 0x5e2   :  { %v368_v54 = vsub.f32 1.0, %v367_v52 }
 0x5e4   :  { %v369_v57 = vmul.f32 %v3670_v50, %v368_v54 }
 0x5e6   :  { %v370_v59 = vadd.f32 %v3670_v50, %v369_v57 }
 0x5e8   :  { %v374_v61 = vsel %vm373_vm1, %v3670_v50, %v370_v59 }
 0x5e9   :  { %v379_v62 = vsel %vm376_vm2, %v378_v60, %v374_v61 }
 0x5ea   :  { %v406_v63 = vmul.f32 %v379_v62, %v4051_v38  ;;  %v396_v11 = vperm.slane %v379_v62, 0  ;;  %v397_v22 = vperm.slane %v379_v62, 1 }
 0x5ec   :  { %v408_v0 = vrot.slane %v406_v63, 1  ;;  %v409_v12 = vperm.slane %v406_v63, 0  ;;  %v401_v28 = vmul.f32 %v397_v22, %v394_v4 }
 0x5ee   :  { %v410_v3 = vperm.slane %v408_v0, 0  ;;  %v403_v29 = vsub.f32 1.0, %v401_v28 }
 0x5f0   :  { %v414_v7 = vmul.f32 %v410_v3, %v394_v4  ;;  %v405_v36 = vmul.f32 %v403_v29, %v4087_v48 }
 0x5f2   :  { %419 = vrot.lane.b32.xlu1 %v414_v7, %s3819_s29 }
 0x611   :  { %v1108_v9 = vpop.permute.xlu1 %1107 }
 0x612   :  { %v4119_v15 = vadd.f32 %v1108_v9, %v1100_v10  ;;  %v4150_v10 = vadd.f32 %v4027_v20, %v4111_v44 }
 0x614   :  { %3671 = vtanh.f32 %v4119_v15 }
 0x619   :  { %v387_v16 = vpop.permute.xlu1 %386 }
 0x61a   :  { %v400_v17 = vmul.f32 %v396_v11, %v387_v16  ;;  %v413_v18 = vmul.f32 %v409_v12, %v387_v16  ;;  %v3672_v25 = vpop.eup %3671  ;;  %v739_v12 = vmul.f32 %v4150_v10, %v4150_v10 }
 0x61c   :  { %417 = vrot.lane.b32.xlu0 %v413_v18, %s3819_s29  ;;  %v402_v42 = vsub.f32 1.0, %v400_v17  ;;  %v740_v16 = vsel %vm262_vm12, %v739_v12, 0.0 }
 0x61e   :  { %v404_v45 = vmul.f32 %v402_v42, %v4092_v49 }
 0x621   :  { %v4127_v23 = vpop.permute.xlu1 %728 }
 0x622   :  { %v731_v2 = vmul.f32 %v4127_v23, %v4125_v19 }
 0x624   :  { %1113 = vrot.lane.b32.xlu0 %v3672_v25, %s3819_s29  ;;  %v732_v27 = vsel %vm250_vm10, %v731_v2, 0.0 }
 0x625   :  { %733 = vadd.xlane.f32.xlu1 %v732_v27 }
 0x664   :  { %v420_v32 = vpop.permute.xlu1 %419 }
 0x665   :  { %v4134_v39 = vadd.f32 %v420_v32, %v405_v36  ;;  %v4163_v32 = vpop.f32.mrf.mxu3 }
 0x667   :  { %v426_v6 = vmul.f32 %v4134_v39, %v4085_v47 }
 0x669   :  { %v434_v8 = vsel %vm104_vm0, %v426_v6, 0.0  ;;  %v790_v6 = vperm.slane %v4111_v44, 0 }
 0x66a   :  { %v435_v1 = vrot.slane %v434_v8, 4 }
 0x66c   :  { %v436_v43 = vadd.f32 %v435_v1, %v434_v8 }
 0x66e   :  { %v437_v14 = vrot.slane %v436_v43, 2 }
 0x670   :  { %v438_v52 = vadd.f32 %v437_v14, %v436_v43  ;;  %v657_v43 = vperm.slane %v4066_v56, 1  ;;  %v797_v56 = vperm.slane %v4111_v44, 1 }
 0x672   :  { %v439_v61 = vrot.slane %v438_v52, 1 }
 0x674   :  { %v440_v0 = vadd.f32 %v439_v61, %v438_v52 }
 0x676   :  { %v442_v9 = vmul.f32 %v440_v0, %v440_v0 }
 0x68e   :  { %v418_v46 = vpop.permute.xlu0 %417 }
 0x68f   :  { %v4140_v21 = vadd.f32 %v418_v46, %v404_v45  ;;  %v704_v45 = vpop.f32.mrf.mxu3 }
 0x690   :  { %v4168_v52 = vadd.f32 %v704_v45, %v657_v43 }
 0x691   :  { %v425_v50 = vmul.f32 %v4140_v21, %v4095_v53 }
 0x692   :  { %v5413_v34 = vrot.slane %v4168_v52, 1 }
 0x693   :  { %v427_v48 = vsel %vm104_vm0, %v425_v50, 0.0 }
 0x694   :  { %v428_v54 = vrot.slane %v427_v48, 4 }
 0x696   :  { %v429_v55 = vadd.f32 %v428_v54, %v427_v48  ;;  %v1114_v57 = vpop.permute.xlu0 %1113  ;;  %v3824_v54 = vmov 0  }
 0x697   :  { %v1116_v58 = vmul.f32 %v1114_v57, %v4103_v41  ;;  %v536_v57 = vsub.f32 1.0, %v3994_v51 }
 0x698   :  { %v430_v59 = vrot.slane %v429_v55, 2  ;;  %v734_v60 = vpop.xlane.xlu1 %733 }
 0x699   :  { %1140 = vrot.lane.b32.xlu0 %v1116_v58, %s3820_s12  ;;  %v735_v62 = vsub.f32 1.0, %v734_v60 }
 0x69a   :  { %v431_v49 = vadd.f32 %v430_v59, %v429_v55  ;;  %v496_v55 = vsel %vm495_vm8, 1, %v3824_v54 }
 0x69b   :  { %v736_v4 = vmul.f32 %v4111_v44, %v735_v62 }
 0x69c   :  { %v432_v63 = vrot.slane %v431_v49, 1 }
 0x69e   :  { %v433_v3 = vadd.f32 %v432_v63, %v431_v49 }
 0x6a0   :  { %v441_v7 = vmul.f32 %v433_v3, %v433_v3 }
 0x6a1   :  { %757 = vperm.xlu0 %3601, %v736_v4  }
 0x6a2   :  { %v445_v41 = vsel %vm356_vm7, %v442_v9, %v441_v7 }
 0x6a3   :  { %v447_v11 = vsel %vm262_vm12, %v445_v41, 0.0 }
 0x6a4   :  { %448 = vadd.xlane.f32.xlu2 %v447_v11 }
 0x6a9   :  { %3603 = vset.pattern.permute.xlu0 %v4035_v24 }
 0x6ac   :  { %741 = vadd.xlane.f32.xlu2 %v740_v16  ;;  %v535_v16 = vld [vmem:[%s5403_s6 + $0x18] sm:$0xff] }
 0x6ad   :  { %589 = vmatpush.msrb.mxu1 %v535_v16  ;;  %1064 = vmatpush.msra.mxu2 %v535_v16 }
 0x70b   :  { %v4158_v17 = vpop.permute.xlu0 %1140 }
 0x70c   :  { %3510 = vmatmul.msk.f32.vlgmr.msra.gmra.mxu3 %vm104_vm0, %v4158_v17 }
 0x713   :  { %v758_v20 = vpop.permute.xlu0 %757 }
 0x714   :  { %v760_v18 = vmul.f32 %v4111_v44, %v758_v20 }
 0x716   :  { %v768_v2 = vperm.slane %v760_v18, 1  ;;  %v761_v22 = vperm.slane %v760_v18, 0 }
 0x717   :  { %v449_v25 = vpop.xlane.xlu2 %448 }
 0x718   :  { %v450_v27 = vadd.f32 1e-30, %v449_v25  ;;  %773 = vperm.xlu0 %3603, %v768_v2  }
 0x71a   :  { %3673 = vrsqrt.f32 %v450_v27  ;;  %vm457_vm4 = vweird.f32 %v450_v27 }
 0x71f   :  { %v742_v58 = vpop.xlane.xlu2 %741 }
 0x720   :  { %v3674_v28 = vpop.eup %3673  ;;  %766 = vperm.xlu0 %3603, %v761_v22   ;;  %v743_v59 = vadd.f32 1e-30, %v742_v58  ;;  %v533_v22 = vld [vmem:[%s5403_s6 + $0x8] sm:$0xff] }
 0x721   :  { %v452_v29 = vmul.f32 %v3674_v28, %v450_v27  ;;  %vm458_vm3 = vweird.f32 %v3674_v28  ;;  %v3487_v27 = vld [vmem:[%s5403_s6 + $0x30] sm:$0xff] }
 0x722   :  { %vm459_vm5 = vmor %vm457_vm4, %vm458_vm3  ;;  %3675 = vrsqrt.f32 %v743_v59  ;;  %vm750_vm9 = vweird.f32 %v743_v59 }
 0x723   :  { %v453_v36 = vmul.f32 %v3674_v28, %v452_v29  ;;  %v3486_v29 = vld [vmem:[%s5403_s6 + $0x28] sm:$0xff] }
 0x725   :  { %v454_v8 = vmul.f32 0.5, %v453_v36  ;;  %v532_v36 = vld [vmem:[%s5403_s6] sm:$0xff] }
 0x727   :  { %v455_v1 = vsub.f32 1.5, %v454_v8 }
 0x728   :  { %795 = vperm.xlu0 %3603, %v790_v6   ;;  %v3676_v60 = vpop.eup %3675  ;;  %v3485_v6 = vld [vmem:[%s5403_s6 + $0x20] sm:$0xff] }
 0x729   :  { %v456_v42 = vmul.f32 %v3674_v28, %v455_v1  ;;  %v745_v61 = vmul.f32 %v3676_v60, %v743_v59  ;;  %vm751_vm11 = vweird.f32 %v3676_v60 }
 0x72a   :  { %vm752_vm13 = vmor %vm750_vm9, %vm751_vm11 }
 0x72b   :  { %v460_v46 = vsel %vm459_vm5, %v3674_v28, %v456_v42  ;;  %v746_v49 = vmul.f32 %v3676_v60, %v745_v61  ;;  %v4228_v42 = vld [vmem:[%s5402_s5] sm:$0x7] }
 0x72c   :  { %v462_v14 = vsel %vm461_vm6, %v460_v46, 1.0 }
 0x72d   :  { %v470_v50 = vperm.slane %v462_v14, 1  ;;  %v463_v48 = vperm.slane %v462_v14, 0  ;;  %v747_v62 = vmul.f32 0.5, %v746_v49  ;;  %v1133_v14 = vperm.slane %v4228_v42, 0 }
 0x72f   :  { %475 = vperm.xlu2 %3602, %v470_v50   ;;  %468 = vperm.xlu1 %3597, %v463_v48   ;;  %v748_v63 = vsub.f32 1.5, %v747_v62 }
 0x730   :  { %822 = vrot.lane.b32.xlu0 %v4168_v52, %s3821_s15 }
 0x731   :  { %3605 = vset.pattern.permute.xlu0 %v3823_v13  ;;  %v749_v0 = vmul.f32 %v3676_v60, %v748_v63 }
 0x733   :  { %v753_v3 = vsel %vm752_vm13, %v3676_v60, %v749_v0 }
 0x734   :  { %v754_v4 = vmul.f32 %v753_v3, %v4150_v10  ;;  %v3488_v10 = vld [vmem:[%s5403_s6 + $0x38] sm:$0xff] }
 0x735   :  { %563 = vmatpush.msrb.mxu0 %v3488_v10 }
 0x736   :  { %v776_v7 = vrot.slane %v754_v4, 1 }
 0x737   :  { %802 = vperm.xlu2 %3602, %v797_v56   ;;  %3608 = vset.pattern.permute.xlu1 %v3823_v13 }
 0x738   :  { %498 = vperm.xlu0 %3605, %v496_v55   ;;  %v778_v51 = vperm.slane %v776_v7, 0  ;;  %564 = vmatpush.msrb.mxu0 %v3487_v27 }
 0x73a   :  { %565 = vmatpush.msrb.mxu0 %v3486_v29 }
 0x73c   :  { %566 = vmatpush.msrb.mxu0 %v3485_v6 }
 0x73e   :  { %719 = vmatpush.msra.mxu0 %v3939_v31 }
 0x73f   :  { %824 = vrot.lane.b32.xlu2 %v5413_v34, %s3821_s15 }
 0x740   :  { %3604 = vset.pattern.permute.xlu2 %v3823_v13  ;;  %3607 = vset.pattern.permute.xlu0 %v4035_v24 }
 0x741   :  { %720 = vmatpush.msra.mxu0 %v3948_v33  ;;  %v777_v33 = vperm.slane %v754_v4, 0 }
 0x743   :  { %721 = vmatpush.msra.mxu0 %v3956_v35 }
 0x745   :  { %722 = vmatpush.msra.mxu0 %v3965_v37 }
 0x747   :  { %786 = vperm.xlu2 %3604, %v4111_v44  }
 0x74f   :  { %539 = vperm.xlu2 %3604, %v536_v57   ;;  %v3523_v57 = vld [vmem:[%s5397_s0 + $0x6] sm:$0x3] }
 0x757   :  { %3606 = vset.pattern.permute.xlu2 %v4035_v24 }
 0x789   :  { %v476_v9 = vpop.permute.xlu2 %475 }
 0x78a   :  { %v774_v41 = vpop.permute.xlu0 %773  ;;  %v4188_v11 = vmul.f32 %v476_v9, %v4134_v39  ;;  %v534_v39 = vld [vmem:[%s5403_s6 + $0x10] sm:$0xff] }
 0x78b   :  { %v782_v12 = vmul.f32 %v778_v51, %v774_v41  ;;  %590 = vmatpush.msrb.mxu1 %v534_v39  ;;  %1065 = vmatpush.msra.mxu2 %v534_v39 }
 0x78c   :  { %v480_v20 = vmul.f32 %v4188_v11, %v4085_v47 }
 0x78d   :  { %v4196_v18 = vadd.f32 %v782_v12, %v4188_v11  ;;  %591 = vmatpush.msrb.mxu1 %v533_v22  ;;  %1066 = vmatpush.msra.mxu2 %v533_v22  ;;  %v528_v22 = vrot.slane %v4077_v30, 1 }
 0x78e   :  { %v488_v28 = vsel %vm104_vm0, %v480_v20, 0.0 }
 0x78f   :  { %592 = vmatpush.msrb.mxu1 %v532_v36  ;;  %1067 = vmatpush.msra.mxu2 %v532_v36  ;;  %v489_v1 = vrot.slane %v488_v28, 4  ;;  %v1161_v50 = vpop.f32.mrf.mxu3 }
 0x790   :  { %v1162_v31 = vadd.f32 %v1161_v50, %v1133_v14 }
 0x791   :  { %v4201_v2 = vpop.permute.xlu2 %802  ;;  %1038 = vmatpush.msra.mxu1 %v3488_v10  ;;  %v490_v46 = vadd.f32 %v489_v1, %v488_v28 }
 0x792   :  { %v805_v25 = vmul.f32 %v4201_v2, %v4196_v18  ;;  %v767_v47 = vpop.permute.xlu0 %766  ;;  %v4249_v62 = vadd.f32 %v3523_v57, %v1162_v31 }
 0x793   :  { %1039 = vmatpush.msra.mxu1 %v3487_v27  ;;  %v491_v55 = vrot.slane %v490_v46, 2  ;;  %v781_v61 = vmul.f32 %v777_v33, %v767_v47 }
 0x794   :  { %v813_v8 = vsel %vm104_vm0, %v805_v25, 0.0  ;;  %3677 = vtanh.f32 %v4249_v62 }
 0x795   :  { %v814_v43 = vrot.slane %v813_v8, 4  ;;  %1040 = vmatpush.msra.mxu1 %v3486_v29  ;;  %v492_v37 = vadd.f32 %v491_v55, %v490_v46  ;;  %v3638_v46 = vld [vmem:[%s5405_s8] ss:$0 sm:$0xff] }
 0x797   :  { %v815_v56 = vadd.f32 %v814_v43, %v813_v8  ;;  %1041 = vmatpush.msra.mxu1 %v3485_v6  ;;  %v493_v41 = vrot.slane %v492_v37, 1 }
 0x799   :  { %v825_v45 = vpop.permute.xlu2 %824  ;;  %v816_v58 = vrot.slane %v815_v56, 2  ;;  %v494_v47 = vadd.f32 %v493_v41, %v492_v37  ;;  %v3524_v41 = vmul.f32 -1.442695, %v4249_v62 }
 0x79a   :  { %v4233_v48 = vpop.permute.xlu0 %795  ;;  %v3678_v27 = vpop.eup %3677 }
 0x79b   :  { %v817_v4 = vadd.f32 %v816_v58, %v815_v56  ;;  %v531_v43 = vmul.f32 %v528_v22, %v494_v47  ;;  %3679 = vpow2.f32 %v3524_v41 }
 0x79d   :  { %v818_v16 = vrot.slane %v817_v4, 1  ;;  %v573_v58 = vrot.slane %v531_v43, 7 }
 0x79f   :  { %v819_v28 = vadd.f32 %v818_v16, %v817_v4  ;;  %v4282_v4 = vld [vmem:[%s5401_s4 + $0x50] sm:$0xff] }
 0x7a1   :  { %v469_v59 = vpop.permute.xlu1 %468  ;;  %v4240_v60 = vpop.permute.xlu2 %786  ;;  %v829_v14 = vmul.f32 %v825_v45, %v819_v28 }
 0x7a2   :  { %v4243_v49 = vmul.f32 %v469_v59, %v4140_v21  ;;  %v4247_v35 = vmul.f32 %v4111_v44, %v4240_v60  ;;  %v823_v51 = vpop.permute.xlu0 %822  ;;  %v4273_v59 = vld [vmem:[%s5398_s1 + $0x4] sm:$0x3] }
 0x7a3   :  { %v832_v37 = vrot.slane %v829_v14, 7 }
 0x7a4   :  { %v479_v63 = vmul.f32 %v4243_v49, %v4095_v53  ;;  %v4254_v0 = vadd.f32 %v781_v61, %v4243_v49  ;;  %v857_v3 = vperm.slane %v4247_v35, 0  ;;  %v864_v12 = vperm.slane %v4247_v35, 1 }
 0x7a6   :  { %v481_v7 = vsel %vm104_vm0, %v479_v63, 0.0  ;;  %v804_v21 = vmul.f32 %v4233_v48, %v4254_v0  ;;  %862 = vperm.xlu2 %3606, %v857_v3   ;;  %869 = vperm.xlu0 %3607, %v864_v12   ;;  %v3680_v12 = vpop.eup %3679 }
 0x7a7   :  { %v482_v9 = vrot.slane %v481_v7, 4 }
 0x7a8   :  { %v806_v53 = vsel %vm104_vm0, %v804_v21, 0.0 }
 0x7a9   :  { %v483_v20 = vadd.f32 %v482_v9, %v481_v7  ;;  %v807_v10 = vrot.slane %v806_v53, 4  ;;  %v540_v55 = vpop.permute.xlu2 %539  ;;  %v4292_v7 = vld [vmem:[%s5401_s4 + $0x38] sm:$0xff]  ;;  %v4305_v9 = vld [vmem:[%s5401_s4 + $0x8] sm:$0xff] }
 0x7aa   :  { %v499_v6 = vpop.permute.xlu0 %498 }
 0x7ab   :  { %v484_v39 = vrot.slane %v483_v20, 2  ;;  %v808_v25 = vadd.f32 %v807_v10, %v806_v53  ;;  %vm500_vm14 = vcmp.eq.s32.totalorder %v499_v6, 1  ;;  %v1560_v53 = vadd.f32 1.0, %v3680_v12 }
 0x7ad   :  { %v485_v29 = vadd.f32 %v484_v39, %v483_v20  ;;  %v809_v36 = vrot.slane %v808_v25, 2  ;;  %3681 = vrcp.f32 %v1560_v53  ;;  %vm1566_vm1 = vweird.f32 %v1560_v53 }
 0x7ae   :  { %1579 = vrot.lane.b32.xlu2 %v3678_v27, %s3819_s29  ;;  %v1572_v27 = vand.u32 2147483648, %v1560_v53 }
 0x7af   :  { %v810_v8 = vadd.f32 %v809_v36, %v808_v25  ;;  %v486_v1 = vrot.slane %v485_v29, 1 }
 0x7b0   :  { %v1573_v28 = vor.u32 1.1754944e-38, %v1572_v27 }
 0x7b1   :  { %v811_v50 = vrot.slane %v810_v8, 1  ;;  %v487_v56 = vadd.f32 %v486_v1, %v485_v29  ;;  %v3755_v1 = vld [vmem:[%s5402_s5] sm:$0x7] }
 0x7b2   :  { %v176_v43 = vperm.slane %v3755_v1, 2 }
 0x7b3   :  { %v812_v31 = vadd.f32 %v811_v50, %v810_v8  ;;  %v503_v57 = vsel %vm356_vm7, %v494_v47, %v487_v56  ;;  %v530_v33 = vmul.f32 %v487_v56, %v4077_v30  ;;  %v3682_v16 = vpop.eup %3681 }
 0x7b4   :  { %v4275_v61 = vsel %vm500_vm14, %v503_v57, %v3638_v46  ;;  %v1562_v20 = vmul.f32 %v3682_v16, %v1560_v53  ;;  %vm1567_vm15 = vweird.f32 %v3682_v16  ;;  %v243_v56 = vadd.f32 %v4163_v32, %v176_v43 }
 0x7b5   :  { %v828_v63 = vmul.f32 %v823_v51, %v812_v31  ;;  %v542_v45 = vmul.f32 %v540_v55, %v4275_v61  ;;  %v574_v3 = vsel %vm356_vm7, %v573_v58, %v530_v33  ;;  %v4299_v51 = vld [vmem:[%s5401_s4 + $0x20] sm:$0xff]  ;;  %vm1568_vm2 = vmor %vm1566_vm1, %vm1567_vm15  ;;  %vm937_vm14 = vcmp.gt.f32.partialorder %v4247_v35, 0.5 }
 0x7b6   :  { %3490 = vmatmul.msk.f32.vlgmr.msrb.gmra.mxu1 %vm104_vm0, %v574_v3  ;;  %1205 = vrot.lane.b32.xlu2 %v4273_v59, %s3821_s15  ;;  %v1563_v10 = vsub.f32 1.0, %v1562_v20  ;;  %v1267_v35 = vperm.slane %v4273_v59, 0  ;;  %vm971_vm15 = vcmp.gt.f32.partialorder %v4111_v44, 0.5 }
 0x7b7   :  { %3489 = vmatmul.msk.f32.vlgmr.msrb.gmra.mxu0 %vm104_vm0, %v542_v45  ;;  %v833_v30 = vsel %vm356_vm7, %v832_v37, %v828_v63 }
 0x7b8   :  { %v835_v21 = vsel %vm262_vm12, %v833_v30, 0.0  ;;  %1176 = vmatpush.msrb.mxu0 %v4282_v4  ;;  %v1564_v39 = vmul.f32 %v3682_v16, %v1563_v10 }
 0x7b9   :  { %836 = vadd.xlane.f32.xlu1 %v835_v21 }
 0x7ba   :  { %1177 = vmatpush.msrb.mxu0 %v4292_v7  ;;  %v1565_v47 = vadd.f32 %v3682_v16, %v1564_v39 }
 0x7bc   :  { %1178 = vmatpush.msrb.mxu0 %v4299_v51  ;;  %v1569_v22 = vsel %vm1568_vm2, %v3682_v16, %v1565_v47 }
 0x7be   :  { %1179 = vmatpush.msrb.mxu0 %v4305_v9 }
 0x7bf   :  { %3496 = vmatmul.msk.f32.vlgmr.msra.gmra.mxu0 %vm104_vm0, %v4042_v26  ;;  %v1570_v26 = vand.u32 2147483647, %v1560_v53 }
 0x7c1   :  { %vm1571_vm3 = vcmp.eq.f32.partialorder %v1570_v26, 8.507059e+37  ;;  %v4335_v26 = vmax.f32 %v4125_v19, %v4127_v23 }
 0x7c2   :  { %v4316_v62 = vsel %vm1571_vm3, %v1573_v28, %v1569_v22 }
 0x7c7   :  { %3511 = vmatmul.msk.f32.vlgmr.msrb.gmra.mxu0 %vm104_vm0, %v4158_v17 }
 0x800   :  { %v4314_v25 = vpop.permute.xlu2 %862 }
 0x808   :  { %v1580_v29 = vpop.permute.xlu2 %1579 }
 0x809   :  { %v1582_v36 = vmul.f32 %v1580_v29, %v4316_v62  ;;  %v1577_v29 = vmul.f32 %v4316_v62, %v4119_v15 }
 0x80b   :  { %1584 = vrot.lane.b32.xlu1 %v1582_v36, %s3820_s12 }
 0x810   :  { %v4331_v27 = vpop.permute.xlu2 %1205 }
 0x811   :  { %v1208_v22 = vmul.f32 %v4331_v27, %v4335_v26 }
 0x813   :  { %v1209_v28 = vsel %vm250_vm10, %v1208_v22, 0.0 }
 0x818   :  { %v870_v39 = vpop.permute.xlu0 %869 }
 0x82c   :  { %v837_v6 = vpop.xlane.xlu1 %836 }
 0x82d   :  { %v3497_v8 = vmul.f32 -1.442695, %v837_v6 }
 0x82f   :  { %3683 = vpow2.f32 %v3497_v8 }
 0x833   :  { %v594_v46 = vpop.f32.mrf.mxu1 }
 0x834   :  { %v568_v14 = vpop.f32.mrf.mxu0 }
 0x835   :  { %v3684_v50 = vpop.eup %3683  ;;  %v595_v55 = vadd.f32 %v594_v46, %v568_v14 }
 0x836   :  { %v841_v31 = vadd.f32 1.0, %v3684_v50 }
 0x837   :  { %v597_v57 = vadd.f32 %v595_v55, %v243_v56 }
 0x838   :  { %3685 = vrcp.f32 %v841_v31  ;;  %v853_v63 = vand.u32 2147483648, %v841_v31  ;;  %v851_v3 = vand.u32 2147483647, %v841_v31  ;;  %vm847_vm5 = vweird.f32 %v841_v31 }
 0x839   :  { %598 = vst [vmem:[%s5406_s9] sm:$0x3] %v597_v57 }
 0x83a   :  { %v854_v21 = vor.u32 1.1754944e-38, %v853_v63  ;;  %vm852_vm8 = vcmp.eq.f32.partialorder %v851_v3, 8.507059e+37 }
 0x83e   :  { %v3686_v33 = vpop.eup %3685 }
 0x83f   :  { %v843_v58 = vmul.f32 %v3686_v33, %v841_v31  ;;  %vm848_vm4 = vweird.f32 %v3686_v33 }
 0x840   :  { %vm849_vm6 = vmor %vm847_vm5, %vm848_vm4 }
 0x841   :  { %v844_v37 = vsub.f32 1.0, %v843_v58 }
 0x843   :  { %v845_v45 = vmul.f32 %v3686_v33, %v844_v37 }
 0x845   :  { %v846_v30 = vadd.f32 %v3686_v33, %v845_v45 }
 0x847   :  { %v850_v32 = vsel %vm849_vm6, %v3686_v33, %v846_v30 }
 0x848   :  { %v855_v41 = vsel %vm852_vm8, %v854_v21, %v850_v32 }
 0x849   :  { %v882_v12 = vmul.f32 %v855_v41, %v4168_v52  ;;  %v873_v1 = vperm.slane %v855_v41, 1  ;;  %v872_v15 = vperm.slane %v855_v41, 0 }
 0x84b   :  { %v884_v53 = vrot.slane %v882_v12, 1  ;;  %v885_v16 = vperm.slane %v882_v12, 0  ;;  %v877_v23 = vmul.f32 %v873_v1, %v870_v39  ;;  %v876_v31 = vmul.f32 %v872_v15, %v4314_v25 }
 0x84d   :  { %v886_v20 = vperm.slane %v884_v53, 0  ;;  %v889_v10 = vmul.f32 %v885_v16, %v4314_v25  ;;  %v879_v43 = vsub.f32 1.0, %v877_v23  ;;  %v878_v33 = vsub.f32 1.0, %v876_v31  ;;  %v4367_v23 = vld [vmem:[%s5404_s7] ss:$0 sm:$0xff] }
 0x84f   :  { %v890_v47 = vmul.f32 %v886_v20, %v870_v39  ;;  %893 = vrot.lane.b32.xlu0 %v889_v10, %s3819_s29  ;;  %v881_v14 = vmul.f32 %v879_v43, %v4196_v18  ;;  %v880_v37 = vmul.f32 %v878_v33, %v4254_v0  ;;  %v4371_v43 = vadd.f32 %v4367_v23, %v4273_v59  ;;  %v4389_v33 = vld [vmem:[%s5401_s4 + $0x48] sm:$0xff] }
 0x850   :  { %1633 = vmatpush.msra.mxu0 %v4389_v33 }
 0x851   :  { %895 = vrot.lane.b32.xlu2 %v890_v47, %s3819_s29 }
 0x879   :  { %1210 = vadd.xlane.f32.xlu0 %v1209_v28 }
 0x87d   :  { %v1585_v36 = vpop.permute.xlu1 %1584 }
 0x87e   :  { %v4342_v6 = vadd.f32 %v1585_v36, %v1577_v29 }
 0x880   :  { %3687 = vtanh.f32 %v4342_v6 }
 0x886   :  { %v3688_v8 = vpop.eup %3687 }
 0x887   :  { %1590 = vrot.lane.b32.xlu2 %v3688_v8, %s3819_s29 }
 0x8ab   :  { %v896_v46 = vpop.permute.xlu2 %895 }
 0x8ac   :  { %v4347_v50 = vadd.f32 %v896_v46, %v881_v14  ;;  %v1216_v46 = vmul.f32 %v4371_v43, %v4371_v43 }
 0x8ae   :  { %v902_v56 = vmul.f32 %v4347_v50, %v4201_v2  ;;  %v1217_v14 = vsel %vm262_vm12, %v1216_v46, 0.0 }
 0x8b0   :  { %v910_v55 = vsel %vm104_vm0, %v902_v56, 0.0  ;;  %v4376_v56 = vpop.f32.mrf.mxu0 }
 0x8b1   :  { %v911_v57 = vrot.slane %v910_v55, 4 }
 0x8b3   :  { %v912_v58 = vadd.f32 %v911_v57, %v910_v55  ;;  %v1012_v57 = vsub.f32 1.0, %v4111_v44 }
 0x8b5   :  { %v913_v3 = vrot.slane %v912_v58, 2 }
 0x8b7   :  { %v914_v21 = vadd.f32 %v913_v3, %v912_v58  ;;  %v4401_v58 = vld [vmem:[%s5401_s4 + $0x18] sm:$0xff] }
 0x8b8   :  { %v1181_v15 = vpop.f32.mrf.mxu0 }
 0x8b9   :  { %v915_v53 = vrot.slane %v914_v21, 1 }
 0x8bb   :  { %v916_v20 = vadd.f32 %v915_v53, %v914_v21 }
 0x8bd   :  { %v918_v0 = vmul.f32 %v916_v20, %v916_v20 }
 0x8c1   :  { %v894_v63 = vpop.permute.xlu0 %893 }
 0x8c2   :  { %v4354_v45 = vadd.f32 %v894_v63, %v880_v37  ;;  %v4407_v63 = vld [vmem:[%s5401_s4] sm:$0xff] }
 0x8c4   :  { %v901_v18 = vmul.f32 %v4354_v45, %v4233_v48 }
 0x8c6   :  { %v903_v30 = vsel %vm104_vm0, %v901_v18, 0.0 }
 0x8c7   :  { %v904_v32 = vrot.slane %v903_v30, 4 }
 0x8c9   :  { %v905_v41 = vadd.f32 %v904_v32, %v903_v30 }
 0x8cb   :  { %v906_v12 = vrot.slane %v905_v41, 2 }
 0x8cd   :  { %v907_v25 = vadd.f32 %v906_v12, %v905_v41 }
 0x8cf   :  { %v908_v16 = vrot.slane %v907_v25, 1 }
 0x8d1   :  { %v909_v10 = vadd.f32 %v908_v16, %v907_v25 }
 0x8d3   :  { %v917_v39 = vmul.f32 %v909_v10, %v909_v10 }
 0x8d5   :  { %v921_v47 = vsel %vm356_vm7, %v918_v0, %v917_v39 }
 0x8d6   :  { %v923_v22 = vsel %vm262_vm12, %v921_v47, 0.0 }
 0x8d7   :  { %924 = vadd.xlane.f32.xlu2 %v923_v22  ;;  %v1274_v22 = vperm.slane %v4273_v59, 1 }
 0x8e1   :  { %v1591_v8 = vpop.permute.xlu2 %1590 }
 0x8e2   :  { %v1593_v1 = vmul.f32 %v1591_v8, %v4316_v62  ;;  %v1134_v62 = vperm.slane %v4228_v42, 1  ;;  %v4395_v42 = vld [vmem:[%s5401_s4 + $0x30] sm:$0xff] }
 0x8e3   :  { %1634 = vmatpush.msra.mxu0 %v4395_v42 }
 0x8e4   :  { %v4379_v55 = vadd.f32 %v1181_v15, %v1134_v62 }
 0x8e5   :  { %1635 = vmatpush.msra.mxu0 %v4401_v58 }
 0x8e6   :  { %v5412_v31 = vrot.slane %v4379_v55, 1 }
 0x8e7   :  { %1636 = vmatpush.msra.mxu0 %v4407_v63 }
 0x8ec   :  { %v1211_v28 = vpop.xlane.xlu0 %1210 }
 0x8ed   :  { %v1212_v29 = vsub.f32 1.0, %v1211_v28 }
 0x8ef   :  { %v1213_v36 = vmul.f32 %v4273_v59, %v1212_v29  ;;  %v972_v29 = vsel %vm971_vm15, 1, %v3824_v54 }
 0x8f1   :  { %1234 = vperm.xlu1 %3608, %v1213_v36  }
 0x8f9   :  { %1617 = vrot.lane.b32.xlu1 %v1593_v1, %s3820_s12 }
 0x923   :  { %1218 = vadd.xlane.f32.xlu1 %v1217_v14 }
 0x93c   :  { %1301 = vrot.lane.b32.xlu1 %v5412_v31, %s3821_s15 }
 0x944   :  { %1015 = vperm.xlu1 %3608, %v1012_v57  }
 0x94a   :  { %v925_v37 = vpop.xlane.xlu2 %924 }
 0x94b   :  { %v926_v3 = vadd.f32 1e-30, %v925_v37 }
 0x94c   :  { %3611 = vset.pattern.permute.xlu1 %v4035_v24 }
 0x94d   :  { %3689 = vrsqrt.f32 %v926_v3  ;;  %vm933_vm11 = vweird.f32 %v926_v3 }
 0x953   :  { %v3690_v18 = vpop.eup %3689 }
 0x954   :  { %v928_v30 = vmul.f32 %v3690_v18, %v926_v3  ;;  %vm934_vm9 = vweird.f32 %v3690_v18 }
 0x955   :  { %vm935_vm13 = vmor %vm933_vm11, %vm934_vm9 }
 0x956   :  { %v929_v21 = vmul.f32 %v3690_v18, %v928_v30 }
 0x958   :  { %v930_v32 = vmul.f32 0.5, %v929_v21 }
 0x95a   :  { %v931_v41 = vsub.f32 1.5, %v930_v32 }
 0x95c   :  { %v932_v12 = vmul.f32 %v3690_v18, %v931_v41 }
 0x95e   :  { %v936_v53 = vsel %vm935_vm13, %v3690_v18, %v932_v12 }
 0x95f   :  { %v938_v25 = vsel %vm937_vm14, %v936_v53, 1.0 }
 0x960   :  { %v946_v16 = vperm.slane %v938_v25, 1  ;;  %v939_v0 = vperm.slane %v938_v25, 0 }
 0x962   :  { %951 = vperm.xlu0 %3607, %v946_v16  }
 0x963   :  { %v1235_v20 = vpop.permute.xlu1 %1234 }
 0x964   :  { %v1237_v10 = vmul.f32 %v4273_v59, %v1235_v20 }
 0x966   :  { %v1245_v39 = vperm.slane %v1237_v10, 1  ;;  %v1238_v28 = vperm.slane %v1237_v10, 0 }
 0x968   :  { %1250 = vperm.xlu2 %3606, %v1245_v39  }
 0x96a   :  { %944 = vperm.xlu0 %3607, %v939_v0  }
 0x96b   :  { %v4413_v47 = vpop.permute.xlu1 %1617 }
 0x96c   :  { %3526 = vmatmul.msk.f32.vlgmr.msra.gmra.mxu0 %vm104_vm0, %v4413_v47 }
 0x970   :  { %1279 = vperm.xlu2 %3606, %v1274_v22  }
 0x972   :  { %1243 = vperm.xlu0 %3607, %v1238_v28  }
 0x978   :  { %1299 = vrot.lane.b32.xlu2 %v4379_v55, %s3821_s15 }
 0x979   :  { %3612 = vset.pattern.permute.xlu2 %v3823_v13 }
 0x97a   :  { %1272 = vperm.xlu0 %3607, %v1267_v35  }
 0x982   :  { %3609 = vset.pattern.permute.xlu0 %v3823_v13 }
 0x983   :  { %1263 = vperm.xlu0 %3609, %v4273_v59  }
 0x98b   :  { %974 = vperm.xlu0 %3609, %v972_v29  }
 0x993   :  { %3610 = vset.pattern.permute.xlu0 %v4035_v24 }
 0x996   :  { %v1219_v36 = vpop.xlane.xlu1 %1218 }
 0x997   :  { %v1220_v8 = vadd.f32 1e-30, %v1219_v36 }
 0x999   :  { %3691 = vrsqrt.f32 %v1220_v8  ;;  %vm1227_vm1 = vweird.f32 %v1220_v8 }
 0x99f   :  { %v3692_v1 = vpop.eup %3691 }
 0x9a0   :  { %v1222_v46 = vmul.f32 %v3692_v1, %v1220_v8  ;;  %vm1228_vm2 = vweird.f32 %v3692_v1 }
 0x9a1   :  { %vm1229_vm3 = vmor %vm1227_vm1, %vm1228_vm2 }
 0x9a2   :  { %v1223_v14 = vmul.f32 %v3692_v1, %v1222_v46 }
 0x9a4   :  { %v1224_v62 = vmul.f32 0.5, %v1223_v14 }
 0x9a6   :  { %v1225_v15 = vsub.f32 1.5, %v1224_v62  ;;  %v4462_v62 = vld [vmem:[%s5401_s4 + $0x28] sm:$0xff] }
 0x9a8   :  { %v1226_v57 = vmul.f32 %v3692_v1, %v1225_v15 }
 0x9aa   :  { %v1230_v37 = vsel %vm1229_vm3, %v3692_v1, %v1226_v57  ;;  %v4451_v1 = vld [vmem:[%s5401_s4 + $0x58] sm:$0xff] }
 0x9ab   :  { %v1231_v44 = vmul.f32 %v1230_v37, %v4371_v43  ;;  %1196 = vmatpush.msrb.mxu1 %v4451_v1 }
 0x9ad   :  { %v1253_v3 = vrot.slane %v1231_v44, 1  ;;  %v1254_v15 = vperm.slane %v1231_v44, 0 }
 0x9af   :  { %v1255_v30 = vperm.slane %v1253_v3, 0  ;;  %v4468_v3 = vld [vmem:[%s5401_s4 + $0x10] sm:$0xff] }
 0x9c2   :  { %v1251_v18 = vpop.permute.xlu2 %1250 }
 0x9c3   :  { %v1259_v32 = vmul.f32 %v1255_v30, %v1251_v18  ;;  %v1004_v30 = vrot.slane %v4240_v60, 1 }
 0x9ca   :  { %v4436_v25 = vpop.permute.xlu2 %1279 }
 0x9d4   :  { %v952_v21 = vpop.permute.xlu0 %951 }
 0x9d5   :  { %v4429_v41 = vmul.f32 %v952_v21, %v4347_v50 }
 0x9d7   :  { %v956_v12 = vmul.f32 %v4429_v41, %v4201_v2  ;;  %v4434_v53 = vadd.f32 %v1259_v32, %v4429_v41 }
 0x9d9   :  { %v964_v16 = vsel %vm104_vm0, %v956_v12, 0.0  ;;  %v1282_v43 = vmul.f32 %v4436_v25, %v4434_v53 }
 0x9da   :  { %v965_v20 = vrot.slane %v964_v16, 4 }
 0x9db   :  { %v1290_v0 = vsel %vm104_vm0, %v1282_v43, 0.0 }
 0x9dc   :  { %v966_v10 = vadd.f32 %v965_v20, %v964_v16  ;;  %v945_v39 = vpop.permute.xlu0 %944  ;;  %v1291_v35 = vrot.slane %v1290_v0, 4 }
 0x9dd   :  { %v4443_v50 = vmul.f32 %v945_v39, %v4354_v45  ;;  %v4456_v45 = vld [vmem:[%s5401_s4 + $0x40] sm:$0xff] }
 0x9de   :  { %v967_v22 = vrot.slane %v966_v10, 2  ;;  %v1292_v46 = vadd.f32 %v1291_v35, %v1290_v0  ;;  %1197 = vmatpush.msrb.mxu1 %v4456_v45 }
 0x9df   :  { %v955_v2 = vmul.f32 %v4443_v50, %v4233_v48 }
 0x9e0   :  { %v968_v28 = vadd.f32 %v967_v22, %v966_v10  ;;  %1198 = vmatpush.msrb.mxu1 %v4462_v62  ;;  %v1293_v21 = vrot.slane %v1292_v46, 2 }
 0x9e1   :  { %v957_v29 = vsel %vm104_vm0, %v955_v2, 0.0 }
 0x9e2   :  { %v969_v36 = vrot.slane %v968_v28, 1  ;;  %v958_v8 = vrot.slane %v957_v29, 4  ;;  %1199 = vmatpush.msrb.mxu1 %v4468_v3  ;;  %v1294_v10 = vadd.f32 %v1293_v21, %v1292_v46 }
 0x9e4   :  { %v959_v48 = vadd.f32 %v958_v8, %v957_v29  ;;  %v1244_v14 = vpop.permute.xlu0 %1243  ;;  %v970_v57 = vadd.f32 %v969_v36, %v968_v28  ;;  %v1295_v29 = vrot.slane %v1294_v10, 1 }
 0x9e5   :  { %v1258_v18 = vmul.f32 %v1254_v15, %v1244_v14  ;;  %v1302_v14 = vpop.permute.xlu1 %1301 }
 0x9e6   :  { %v960_v37 = vrot.slane %v959_v48, 2  ;;  %v1007_v44 = vmul.f32 %v1004_v30, %v970_v57 }
 0x9e7   :  { %v4474_v16 = vadd.f32 %v1258_v18, %v4443_v50 }
 0x9e8   :  { %v961_v32 = vadd.f32 %v960_v37, %v959_v48  ;;  %v1048_v22 = vrot.slane %v1007_v44, 7  ;;  %v1296_v48 = vadd.f32 %v1295_v29, %v1294_v10  ;;  %v4501_v29 = vld [vmem:[%s5398_s1 + $0x6] sm:$0x3] }
 0x9ea   :  { %v962_v12 = vrot.slane %v961_v32, 1  ;;  %v1306_v30 = vmul.f32 %v1302_v14, %v1296_v48  ;;  %v3539_v48 = vld [vmem:[%s5397_s0 + $0x8] sm:$0x3] }
 0x9ec   :  { %v963_v43 = vadd.f32 %v962_v12, %v961_v32  ;;  %v4476_v20 = vpop.permute.xlu0 %1272  ;;  %v1300_v12 = vpop.permute.xlu2 %1299  ;;  %v1309_v10 = vrot.slane %v1306_v30, 7 }
 0x9ed   :  { %v1281_v39 = vmul.f32 %v4476_v20, %v4474_v16 }
 0x9ee   :  { %v1006_v0 = vmul.f32 %v963_v43, %v4240_v60 }
 0x9ef   :  { %v1283_v2 = vsel %vm104_vm0, %v1281_v39, 0.0 }
 0x9f0   :  { %v1284_v28 = vrot.slane %v1283_v2, 4  ;;  %v1049_v35 = vsel %vm356_vm7, %v1048_v22, %v1006_v0  ;;  %v979_v0 = vsel %vm356_vm7, %v970_v57, %v963_v43  ;;  %v4507_v57 = vld [vmem:[%s5402_s5] sm:$0x7]  ;;  %v1638_v43 = vpop.f32.mrf.mxu0 }
 0x9f1   :  { %3505 = vmatmul.msk.f32.vlgmr.msra.gmra.mxu2 %vm104_vm0, %v1049_v35 }
 0x9f2   :  { %v1285_v36 = vadd.f32 %v1284_v28, %v1283_v2  ;;  %v1016_v2 = vpop.permute.xlu1 %1015 }
 0x9f4   :  { %v1286_v8 = vrot.slane %v1285_v36, 2 }
 0x9f5   :  { %v4484_v15 = vpop.permute.xlu0 %1263 }
 0x9f6   :  { %v1287_v46 = vadd.f32 %v1286_v8, %v1285_v36  ;;  %v4488_v37 = vmul.f32 %v4273_v59, %v4484_v15 }
 0x9f8   :  { %v1341_v60 = vperm.slane %v4488_v37, 1  ;;  %v1288_v18 = vrot.slane %v1287_v46, 1  ;;  %v1334_v21 = vperm.slane %v4488_v37, 0 }
 0x9fa   :  { %1346 = vperm.xlu1 %3611, %v1341_v60   ;;  %v1289_v32 = vadd.f32 %v1288_v18, %v1287_v46  ;;  %1339 = vperm.xlu0 %3610, %v1334_v21  }
 0x9fc   :  { %v1305_v44 = vmul.f32 %v1300_v12, %v1289_v32 }
 0x9fd   :  { %v975_v39 = vpop.permute.xlu0 %974 }
 0x9fe   :  { %vm976_vm4 = vcmp.eq.s32.totalorder %v975_v39, 1  ;;  %v1310_v22 = vsel %vm356_vm7, %v1309_v10, %v1305_v44 }
 0x9ff   :  { %v4495_v28 = vsel %vm976_vm4, %v979_v0, %v4275_v61  ;;  %v1312_v35 = vsel %vm262_vm12, %v1310_v22, 0.0  ;;  %v1610_v61 = vperm.slane %v4507_v57, 0  ;;  %vm1414_vm4 = vcmp.gt.f32.partialorder %v4488_v37, 0.5 }
 0xa00   :  { %v1018_v36 = vmul.f32 %v1016_v2, %v4495_v28  ;;  %1313 = vadd.xlane.f32.xlu2 %v1312_v35 }
 0xa01   :  { %v1639_v8 = vadd.f32 %v1638_v43, %v1610_v61 }
 0xa02   :  { %1682 = vrot.lane.b32.xlu1 %v4501_v29, %s3821_s15  ;;  %3504 = vmatmul.msk.f32.vlgmr.msra.gmra.mxu1 %vm104_vm0, %v1018_v36 }
 0xa03   :  { %1653 = vmatpush.msra.mxu1 %v4282_v4  ;;  %v2033_v4 = vadd.f32 %v3539_v48, %v1639_v8 }
 0xa05   :  { %1654 = vmatpush.msra.mxu1 %v4292_v7  ;;  %3693 = vtanh.f32 %v2033_v4 }
 0xa07   :  { %1655 = vmatpush.msra.mxu1 %v4299_v51  ;;  %v3540_v51 = vmul.f32 -1.442695, %v2033_v4 }
 0xa09   :  { %1656 = vmatpush.msra.mxu1 %v4305_v9  ;;  %3695 = vpow2.f32 %v3540_v51 }
 0xa0a   :  { %3512 = vmatmul.msk.f32.vlgmr.msrb.gmra.mxu1 %vm104_vm0, %v4158_v17 }
 0xa0b   :  { %2110 = vmatpush.msrb.mxu1 %v4389_v33  ;;  %v3694_v7 = vpop.eup %3693 }
 0xa0d   :  { %2111 = vmatpush.msrb.mxu1 %v4395_v42  ;;  %v3757_v42 = vld [vmem:[%s5402_s5] sm:$0x7] }
 0xa0f   :  { %2112 = vmatpush.msrb.mxu1 %v4401_v58  ;;  %v3696_v33 = vpop.eup %3695  ;;  %v658_v58 = vperm.slane %v3757_v42, 2 }
 0xa10   :  { %v2037_v46 = vadd.f32 1.0, %v3696_v33 }
 0xa11   :  { %2113 = vmatpush.msrb.mxu1 %v4407_v63  ;;  %v725_v30 = vadd.f32 %v4376_v56, %v658_v58 }
 0xa12   :  { %3527 = vmatmul.msk.f32.vlgmr.msra.gmra.mxu1 %vm104_vm0, %v4413_v47  ;;  %vm2043_vm13 = vweird.f32 %v2037_v46 }
 0xa18   :  { %2056 = vrot.lane.b32.xlu2 %v3694_v7, %s3819_s29 }
 0xa6c   :  { %v1347_v7 = vpop.permute.xlu1 %1346 }
 0xa73   :  { %v1314_v9 = vpop.xlane.xlu2 %1313 }
 0xa74   :  { %v3513_v17 = vmul.f32 -1.442695, %v1314_v9  ;;  %v1069_v60 = vpop.f32.mrf.mxu2 }
 0xa76   :  { %3697 = vpow2.f32 %v3513_v17 }
 0xa7c   :  { %v3698_v14 = vpop.eup %3697 }
 0xa7d   :  { %v1318_v63 = vadd.f32 1.0, %v3698_v14  ;;  %v1340_v14 = vpop.permute.xlu0 %1339 }
 0xa7f   :  { %3699 = vrcp.f32 %v1318_v63  ;;  %v1043_v18 = vpop.f32.mrf.mxu1  ;;  %v1330_v0 = vand.u32 2147483648, %v1318_v63  ;;  %v1328_v35 = vand.u32 2147483647, %v1318_v63  ;;  %vm1324_vm6 = vweird.f32 %v1318_v63 }
 0xa80   :  { %v1070_v21 = vadd.f32 %v1069_v60, %v1043_v18  ;;  %3701 = vrcp.f32 %v2037_v46  ;;  %v2049_v18 = vand.u32 2147483648, %v2037_v46 }
 0xa81   :  { %v1331_v56 = vor.u32 1.1754944e-38, %v1330_v0  ;;  %vm1329_vm9 = vcmp.eq.f32.partialorder %v1328_v35, 8.507059e+37  ;;  %v4543_v0 = vpop.permute.xlu1 %1682 }
 0xa82   :  { %v1072_v32 = vadd.f32 %v1070_v21, %v725_v30  ;;  %v2047_v30 = vand.u32 2147483647, %v2037_v46 }
 0xa84   :  { %3506 = vst [vmem:[%s5406_s9 + $0x2] sm:$0x3] %v1072_v32  ;;  %v2050_v32 = vor.u32 1.1754944e-38, %v2049_v18  ;;  %vm2048_vm15 = vcmp.eq.f32.partialorder %v2047_v30, 8.507059e+37 }
 0xa85   :  { %v3700_v12 = vpop.eup %3699 }
 0xa86   :  { %v1320_v44 = vmul.f32 %v3700_v12, %v1318_v63  ;;  %v3702_v10 = vpop.eup %3701  ;;  %vm1325_vm5 = vweird.f32 %v3700_v12 }
 0xa87   :  { %v2039_v22 = vmul.f32 %v3702_v10, %v2037_v46  ;;  %vm1326_vm8 = vmor %vm1324_vm6, %vm1325_vm5  ;;  %vm2044_vm11 = vweird.f32 %v3702_v10  ;;  %vm1448_vm5 = vcmp.gt.f32.partialorder %v4273_v59, 0.5 }
 0xa88   :  { %v1321_v39 = vsub.f32 1.0, %v1320_v44  ;;  %vm2045_vm14 = vmor %vm2043_vm13, %vm2044_vm11  ;;  %v1449_v37 = vsel %vm1448_vm5, 1, %v3824_v54 }
 0xa89   :  { %v2040_v61 = vsub.f32 1.0, %v2039_v22  ;;  %v4547_v22 = vmax.f32 %v4335_v26, %v4331_v27 }
 0xa8a   :  { %v1322_v2 = vmul.f32 %v3700_v12, %v1321_v39 }
 0xa8b   :  { %v2041_v51 = vmul.f32 %v3702_v10, %v2040_v61  ;;  %v1685_v46 = vmul.f32 %v4543_v0, %v4547_v22 }
 0xa8c   :  { %v1323_v36 = vadd.f32 %v3700_v12, %v1322_v2 }
 0xa8d   :  { %v2042_v60 = vadd.f32 %v3702_v10, %v2041_v51 }
 0xa8e   :  { %v1327_v43 = vsel %vm1326_vm8, %v3700_v12, %v1323_v36  ;;  %v2057_v12 = vpop.permute.xlu2 %2056 }
 0xa8f   :  { %v1332_v8 = vsel %vm1329_vm9, %v1331_v56, %v1327_v43  ;;  %v2046_v21 = vsel %vm2045_vm14, %v3702_v10, %v2042_v60  ;;  %v1686_v10 = vsel %vm250_vm10, %v1685_v46, 0.0 }
 0xa90   :  { %v1359_v48 = vmul.f32 %v1332_v8, %v4379_v55  ;;  %v1350_v4 = vperm.slane %v1332_v8, 1  ;;  %v4539_v44 = vsel %vm2048_vm15, %v2050_v32, %v2046_v21  ;;  %v1349_v2 = vperm.slane %v1332_v8, 0 }
 0xa91   :  { %v2059_v39 = vmul.f32 %v2057_v12, %v4539_v44 }
 0xa92   :  { %v1362_v9 = vperm.slane %v1359_v48, 0  ;;  %v1361_v17 = vrot.slane %v1359_v48, 1  ;;  %v1354_v33 = vmul.f32 %v1350_v4, %v1347_v7  ;;  %v1353_v35 = vmul.f32 %v1349_v2, %v1340_v14 }
 0xa94   :  { %v1366_v42 = vmul.f32 %v1362_v9, %v1340_v14  ;;  %v1363_v58 = vperm.slane %v1361_v17, 0  ;;  %v1355_v36 = vsub.f32 1.0, %v1353_v35  ;;  %v1356_v56 = vsub.f32 1.0, %v1354_v33 }
 0xa96   :  { %1370 = vrot.lane.b32.xlu0 %v1366_v42, %s3819_s29  ;;  %v1367_v63 = vmul.f32 %v1363_v58, %v1347_v7  ;;  %v1357_v61 = vmul.f32 %v1355_v36, %v4474_v16  ;;  %v1358_v4 = vmul.f32 %v1356_v56, %v4434_v53  ;;  %v2054_v42 = vmul.f32 %v4539_v44, %v4342_v6 }
 0xa98   :  { %1372 = vrot.lane.b32.xlu1 %v1367_v63, %s3819_s29 }
 0xaa0   :  { %2061 = vrot.lane.b32.xlu1 %v2059_v39, %s3820_s12 }
 0xac0   :  { %1687 = vadd.xlane.f32.xlu0 %v1686_v10 }
 0xb08   :  { %v1371_v43 = vpop.permute.xlu0 %1370 }
 0xb09   :  { %v4553_v48 = vadd.f32 %v1371_v43, %v1357_v61 }
 0xb0a   :  { %v1373_v7 = vpop.permute.xlu1 %1372 }
 0xb0b   :  { %v1378_v27 = vmul.f32 %v4553_v48, %v4476_v20  ;;  %v4558_v51 = vadd.f32 %v1373_v7, %v1358_v4  ;;  %v4576_v4 = vadd.f32 %v4367_v23, %v4501_v29 }
 0xb0d   :  { %v1380_v9 = vsel %vm104_vm0, %v1378_v27, 0.0  ;;  %v1379_v8 = vmul.f32 %v4558_v51, %v4436_v25  ;;  %v1693_v7 = vmul.f32 %v4576_v4, %v4576_v4 }
 0xb0e   :  { %v1381_v17 = vrot.slane %v1380_v9, 4 }
 0xb0f   :  { %v1387_v33 = vsel %vm104_vm0, %v1379_v8, 0.0  ;;  %v1694_v27 = vsel %vm262_vm12, %v1693_v7, 0.0 }
 0xb10   :  { %v1382_v16 = vadd.f32 %v1381_v17, %v1380_v9  ;;  %v1388_v14 = vrot.slane %v1387_v33, 4 }
 0xb12   :  { %v1383_v53 = vrot.slane %v1382_v16, 2  ;;  %v1389_v58 = vadd.f32 %v1388_v14, %v1387_v33  ;;  %v2062_v60 = vpop.permute.xlu1 %2061 }
 0xb13   :  { %v4566_v63 = vadd.f32 %v2062_v60, %v2054_v42 }
 0xb14   :  { %v1384_v18 = vadd.f32 %v1383_v53, %v1382_v16  ;;  %v1390_v30 = vrot.slane %v1389_v58, 2 }
 0xb15   :  { %3703 = vtanh.f32 %v4566_v63 }
 0xb16   :  { %v1391_v21 = vadd.f32 %v1390_v30, %v1389_v58  ;;  %v1385_v32 = vrot.slane %v1384_v18, 1  ;;  %v4583_v30 = vpop.f32.mrf.mxu1 }
 0xb18   :  { %v1386_v12 = vadd.f32 %v1385_v32, %v1384_v18  ;;  %v1392_v39 = vrot.slane %v1391_v21, 1  ;;  %v1751_v18 = vperm.slane %v4501_v29, 1 }
 0xb1a   :  { %v1393_v46 = vadd.f32 %v1392_v39, %v1391_v21  ;;  %v1394_v2 = vmul.f32 %v1386_v12, %v1386_v12 }
 0xb1b   :  { %v3704_v10 = vpop.eup %3703 }
 0xb1c   :  { %2067 = vrot.lane.b32.xlu0 %v3704_v10, %s3819_s29  ;;  %v1395_v35 = vmul.f32 %v1393_v46, %v1393_v46 }
 0xb1e   :  { %v1398_v6 = vsel %vm356_vm7, %v1395_v35, %v1394_v2  ;;  %v1611_v2 = vperm.slane %v4507_v57, 1 }
 0xb1f   :  { %v1400_v36 = vsel %vm262_vm12, %v1398_v6, 0.0  ;;  %v1658_v6 = vpop.f32.mrf.mxu1 }
 0xb20   :  { %1401 = vadd.xlane.f32.xlu1 %v1400_v36  ;;  %v1744_v36 = vperm.slane %v4501_v29, 0 }
 0xb33   :  { %v1688_v56 = vpop.xlane.xlu0 %1687 }
 0xb34   :  { %v1689_v61 = vsub.f32 1.0, %v1688_v56  ;;  %v4591_v56 = vadd.f32 %v1658_v6, %v1611_v2 }
 0xb36   :  { %v1690_v43 = vmul.f32 %v4501_v29, %v1689_v61  ;;  %v5411_v57 = vrot.slane %v4591_v56, 1 }
 0xb38   :  { %1711 = vperm.xlu2 %3612, %v1690_v43  }
 0xb40   :  { %3613 = vset.pattern.permute.xlu2 %v4035_v24 }
 0xb61   :  { %1695 = vadd.xlane.f32.xlu2 %v1694_v27 }
 0xb8e   :  { %v2068_v10 = vpop.permute.xlu0 %2067 }
 0xb8f   :  { %v2070_v35 = vmul.f32 %v2068_v10, %v4539_v44  ;;  %v1489_v44 = vsub.f32 1.0, %v4273_v59  ;;  %v1485_v10 = vld [vmem:[%s5403_s6] sm:$0xff] }
 0xb92   :  { %v1712_v9 = vpop.permute.xlu2 %1711 }
 0xb93   :  { %v1714_v8 = vmul.f32 %v4501_v29, %v1712_v9  ;;  %v1402_v17 = vpop.xlane.xlu1 %1401 }
 0xb94   :  { %v1403_v33 = vadd.f32 1e-30, %v1402_v17 }
 0xb95   :  { %v1722_v16 = vperm.slane %v1714_v8, 1  ;;  %v1715_v42 = vperm.slane %v1714_v8, 0 }
 0xb96   :  { %3705 = vrsqrt.f32 %v1403_v33  ;;  %vm1410_vm2 = vweird.f32 %v1403_v33 }
 0xb97   :  { %1727 = vperm.xlu0 %3610, %v1722_v16  }
 0xb9c   :  { %v3706_v14 = vpop.eup %3705 }
 0xb9d   :  { %v1405_v53 = vmul.f32 %v3706_v14, %v1403_v33  ;;  %vm1411_vm1 = vweird.f32 %v3706_v14 }
 0xb9e   :  { %vm1412_vm3 = vmor %vm1410_vm2, %vm1411_vm1 }
 0xb9f   :  { %v1406_v58 = vmul.f32 %v3706_v14, %v1405_v53  ;;  %1720 = vperm.xlu0 %3610, %v1715_v42   ;;  %v3519_v42 = vld [vmem:[%s5403_s6 + $0x38] sm:$0xff] }
 0xba0   :  { %1515 = vmatpush.msrb.mxu2 %v3519_v42 }
 0xba1   :  { %v1407_v23 = vmul.f32 0.5, %v1406_v58  ;;  %v1488_v58 = vld [vmem:[%s5403_s6 + $0x18] sm:$0xff] }
 0xba2   :  { %1541 = vmatpush.msrb.mxu3 %v1488_v58  ;;  %2018 = vmatpush.msrb.mxu0 %v1488_v58 }
 0xba3   :  { %v1408_v60 = vsub.f32 1.5, %v1407_v23  ;;  %v3518_v23 = vld [vmem:[%s5403_s6 + $0x30] sm:$0xff] }
 0xba4   :  { %1516 = vmatpush.msrb.mxu2 %v3518_v23 }
 0xba5   :  { %v1409_v21 = vmul.f32 %v3706_v14, %v1408_v60 }
 0xba7   :  { %1756 = vperm.xlu0 %3610, %v1751_v18   ;;  %v1413_v32 = vsel %vm1412_vm3, %v3706_v14, %v1409_v21  ;;  %v3517_v18 = vld [vmem:[%s5403_s6 + $0x28] sm:$0xff] }
 0xba8   :  { %v1415_v12 = vsel %vm1414_vm4, %v1413_v32, 1.0  ;;  %1517 = vmatpush.msrb.mxu2 %v3517_v18 }
 0xba9   :  { %v1423_v39 = vperm.slane %v1415_v12, 1  ;;  %v1416_v46 = vperm.slane %v1415_v12, 0  ;;  %v1486_v12 = vld [vmem:[%s5403_s6 + $0x8] sm:$0xff] }
 0xbab   :  { %1428 = vperm.xlu1 %3611, %v1423_v39   ;;  %1421 = vperm.xlu2 %3613, %v1416_v46   ;;  %v3516_v46 = vld [vmem:[%s5403_s6 + $0x20] sm:$0xff] }
 0xbac   :  { %1518 = vmatpush.msrb.mxu2 %v3516_v46 }
 0xbae   :  { %1673 = vmatpush.msra.mxu2 %v4451_v1 }
 0xbaf   :  { %2094 = vrot.lane.b32.xlu0 %v2070_v35, %s3820_s12 }
 0xbb0   :  { %3614 = vset.pattern.permute.xlu0 %v3823_v13  ;;  %1674 = vmatpush.msra.mxu2 %v4456_v45 }
 0xbb2   :  { %1675 = vmatpush.msra.mxu2 %v4462_v62 }
 0xbb3   :  { %1749 = vperm.xlu1 %3611, %v1744_v36   ;;  %1776 = vrot.lane.b32.xlu2 %v4591_v56, %s3821_s15 }
 0xbb4   :  { %3615 = vset.pattern.permute.xlu2 %v3823_v13  ;;  %1676 = vmatpush.msra.mxu2 %v4468_v3 }
 0xbb7   :  { %1740 = vperm.xlu0 %3614, %v4501_v29  }
 0xbbb   :  { %1778 = vrot.lane.b32.xlu1 %v5411_v57, %s3821_s15  ;;  %1451 = vperm.xlu2 %3615, %v1449_v37  }
 0xbbc   :  { %3618 = vset.pattern.permute.xlu1 %v3823_v13 }
 0xbbf   :  { %3616 = vset.pattern.permute.xlu0 %v4035_v24 }
 0xbc3   :  { %1492 = vperm.xlu2 %3615, %v1489_v44  }
 0xbcb   :  { %3617 = vset.pattern.permute.xlu2 %v4035_v24 }
 0xbd4   :  { %v1696_v61 = vpop.xlane.xlu2 %1695 }
 0xbd5   :  { %v1697_v43 = vadd.f32 1e-30, %v1696_v61 }
 0xbd7   :  { %3707 = vrsqrt.f32 %v1697_v43  ;;  %vm1704_vm6 = vweird.f32 %v1697_v43 }
 0xbdd   :  { %v3708_v7 = vpop.eup %3707 }
 0xbde   :  { %v1699_v27 = vmul.f32 %v3708_v7, %v1697_v43  ;;  %vm1705_vm8 = vweird.f32 %v3708_v7 }
 0xbdf   :  { %vm4607_vm9 = vmor %vm1704_vm6, %vm1705_vm8 }
 0xbe0   :  { %v1700_v9 = vmul.f32 %v3708_v7, %v1699_v27 }
 0xbe2   :  { %v1701_v8 = vmul.f32 0.5, %v1700_v9 }
 0xbe4   :  { %v1702_v17 = vsub.f32 1.5, %v1701_v8 }
 0xbe6   :  { %v1703_v14 = vmul.f32 %v3708_v7, %v1702_v17 }
 0xbe8   :  { %v1707_v60 = vsel %vm4607_vm9, %v3708_v7, %v1703_v14 }
 0xbe9   :  { %v1708_v39 = vmul.f32 %v1707_v60, %v4576_v4 }
 0xbeb   :  { %v1730_v2 = vrot.slane %v1708_v39, 1  ;;  %v1731_v61 = vperm.slane %v1708_v39, 0 }
 0xbed   :  { %v1732_v6 = vperm.slane %v1730_v2, 0 }
 0xc05   :  { %v1422_v16 = vpop.permute.xlu2 %1421 }
 0xc06   :  { %v4615_v53 = vmul.f32 %v1422_v16, %v4553_v48  ;;  %v1487_v48 = vld [vmem:[%s5403_s6 + $0x10] sm:$0xff] }
 0xc07   :  { %1542 = vmatpush.msrb.mxu3 %v1487_v48  ;;  %2019 = vmatpush.msrb.mxu0 %v1487_v48 }
 0xc08   :  { %v1432_v21 = vmul.f32 %v4615_v53, %v4476_v20 }
 0xc09   :  { %v1728_v33 = vpop.permute.xlu0 %1727  ;;  %1543 = vmatpush.msrb.mxu3 %v1486_v12  ;;  %2020 = vmatpush.msrb.mxu0 %v1486_v12 }
 0xc0a   :  { %v1434_v20 = vsel %vm104_vm0, %v1432_v21, 0.0  ;;  %v1736_v44 = vmul.f32 %v1732_v6, %v1728_v33 }
 0xc0b   :  { %1544 = vmatpush.msrb.mxu3 %v1485_v10  ;;  %2021 = vmatpush.msrb.mxu0 %v1485_v10  ;;  %v1435_v4 = vrot.slane %v1434_v20, 4 }
 0xc0d   :  { %1992 = vmatpush.msra.mxu3 %v3519_v42  ;;  %v1436_v36 = vadd.f32 %v1435_v4, %v1434_v20  ;;  %v4650_v1 = vpop.permute.xlu2 %1776  ;;  %v1481_v4 = vrot.slane %v4484_v15, 1 }
 0xc0f   :  { %1993 = vmatpush.msra.mxu3 %v3518_v23  ;;  %v1437_v45 = vrot.slane %v1436_v36, 2 }
 0xc11   :  { %v1721_v32 = vpop.permute.xlu0 %1720  ;;  %1994 = vmatpush.msra.mxu3 %v3517_v18  ;;  %v1438_v17 = vadd.f32 %v1437_v45, %v1436_v36 }
 0xc12   :  { %v1735_v7 = vmul.f32 %v1731_v61, %v1721_v32 }
 0xc13   :  { %1995 = vmatpush.msra.mxu3 %v3516_v46  ;;  %v1439_v18 = vrot.slane %v1438_v17, 1 }
 0xc14   :  { %v4668_v33 = vadd.f32 %v1735_v7, %v4615_v53 }
 0xc15   :  { %v1452_v16 = vpop.permute.xlu2 %1451  ;;  %v1440_v36 = vadd.f32 %v1439_v18, %v1438_v17  ;;  %v4706_v18 = vld [vmem:[%s5401_s4 + $0x38] sm:$0xff] }
 0xc16   :  { %vm1453_vm11 = vcmp.eq.s32.totalorder %v1452_v16, 1 }
 0xc17   :  { %v1483_v17 = vmul.f32 %v1440_v36, %v4484_v15 }
 0xc19   :  { %v4647_v35 = vpop.permute.xlu0 %1756 }
 0xc1d   :  { %v1429_v37 = vpop.permute.xlu1 %1428  ;;  %v1493_v7 = vpop.permute.xlu2 %1492 }
 0xc1e   :  { %v4653_v43 = vmul.f32 %v1429_v37, %v4558_v51 }
 0xc20   :  { %v1433_v62 = vmul.f32 %v4653_v43, %v4436_v25  ;;  %v4658_v27 = vadd.f32 %v1736_v44, %v4653_v43 }
 0xc21   :  { %v4660_v9 = vpop.permute.xlu0 %2094 }
 0xc22   :  { %v1441_v3 = vsel %vm104_vm0, %v1433_v62, 0.0  ;;  %v1759_v8 = vmul.f32 %v4647_v35, %v4658_v27  ;;  %3542 = vmatmul.msk.f32.vlgmr.msrb.gmra.mxu1 %vm104_vm0, %v4660_v9 }
 0xc23   :  { %v1442_v51 = vrot.slane %v1441_v3, 4 }
 0xc24   :  { %v1767_v25 = vsel %vm104_vm0, %v1759_v8, 0.0 }
 0xc25   :  { %v1443_v14 = vadd.f32 %v1442_v51, %v1441_v3  ;;  %v4671_v59 = vpop.permute.xlu1 %1749  ;;  %v1768_v42 = vrot.slane %v1767_v25, 4 }
 0xc26   :  { %v1758_v58 = vmul.f32 %v4671_v59, %v4668_v33 }
 0xc27   :  { %v1444_v23 = vrot.slane %v1443_v14, 2  ;;  %v1769_v60 = vadd.f32 %v1768_v42, %v1767_v25 }
 0xc28   :  { %v1760_v48 = vsel %vm104_vm0, %v1758_v58, 0.0 }
 0xc29   :  { %v1445_v21 = vadd.f32 %v1444_v23, %v1443_v14  ;;  %v1761_v32 = vrot.slane %v1760_v48, 4  ;;  %v4676_v12 = vpop.permute.xlu0 %1740  ;;  %v1770_v39 = vrot.slane %v1769_v60, 2 }
 0xc2a   :  { %v4680_v46 = vmul.f32 %v4501_v29, %v4676_v12 }
 0xc2b   :  { %v1762_v10 = vadd.f32 %v1761_v32, %v1760_v48  ;;  %v1771_v20 = vadd.f32 %v1770_v39, %v1769_v60  ;;  %v1446_v2 = vrot.slane %v1445_v21, 1  ;;  %v4694_v60 = vld [vmem:[%s5401_s4 + $0x50] sm:$0xff]  ;;  %v4714_v39 = vld [vmem:[%s5401_s4 + $0x20] sm:$0xff] }
 0xc2c   :  { %v1818_v6 = vperm.slane %v4680_v46, 1  ;;  %v1811_v37 = vperm.slane %v4680_v46, 0 }
 0xc2d   :  { %v1763_v44 = vrot.slane %v1762_v10, 2  ;;  %v1772_v61 = vrot.slane %v1771_v20, 1  ;;  %v1447_v45 = vadd.f32 %v1446_v2, %v1445_v21  ;;  %v1779_v25 = vpop.permute.xlu1 %1778 }
 0xc2e   :  { %1823 = vperm.xlu2 %3617, %v1818_v6   ;;  %1816 = vperm.xlu0 %3616, %v1811_v37  }
 0xc2f   :  { %v1764_v62 = vadd.f32 %v1763_v44, %v1762_v10  ;;  %v1773_v3 = vadd.f32 %v1772_v61, %v1771_v20  ;;  %v1456_v8 = vsel %vm356_vm7, %v1447_v45, %v1440_v36  ;;  %v1484_v51 = vmul.f32 %v1481_v4, %v1447_v45  ;;  %v4723_v20 = vld [vmem:[%s5401_s4 + $0x8] sm:$0xff] }
 0xc30   :  { %v4687_v14 = vsel %vm1453_vm11, %v1456_v8, %v4495_v28  ;;  %v4701_v28 = vld [vmem:[%s5398_s1 + $0x8] sm:$0x3]  ;;  %v3555_v36 = vld [vmem:[%s5397_s0 + $0xa] sm:$0x3]  ;;  %vm1891_vm11 = vcmp.gt.f32.partialorder %v4680_v46, 0.5 }
 0xc31   :  { %v1783_v42 = vmul.f32 %v1779_v25, %v1773_v3  ;;  %v1495_v58 = vmul.f32 %v1493_v7, %v4687_v14  ;;  %v1525_v16 = vrot.slane %v1484_v51, 7  ;;  %v1765_v23 = vrot.slane %v1764_v62, 1  ;;  %v3758_v7 = vld [vmem:[%s5402_s5] sm:$0x7] }
 0xc33   :  { %3520 = vmatmul.msk.f32.vlgmr.msrb.gmra.mxu2 %vm104_vm0, %v1495_v58  ;;  %v1526_v48 = vsel %vm356_vm7, %v1525_v16, %v1483_v17  ;;  %v1766_v15 = vadd.f32 %v1765_v23, %v1764_v62  ;;  %v1786_v21 = vrot.slane %v1783_v42, 7  ;;  %v1135_v62 = vperm.slane %v3758_v7, 2 }
 0xc34   :  { %3521 = vmatmul.msk.f32.vlgmr.msrb.gmra.mxu3 %vm104_vm0, %v1526_v48  ;;  %2130 = vmatpush.msrb.mxu2 %v4694_v60 }
 0xc35   :  { %v1782_v32 = vmul.f32 %v4650_v1, %v1766_v15  ;;  %v4735_v1 = vld [vmem:[%s5402_s5] sm:$0x7]  ;;  %v1202_v17 = vadd.f32 %v4583_v30, %v1135_v62 }
 0xc36   :  { %2159 = vrot.lane.b32.xlu2 %v4701_v28, %s3821_s15  ;;  %2131 = vmatpush.msrb.mxu2 %v4706_v18  ;;  %v2087_v4 = vperm.slane %v4735_v1, 0 }
 0xc37   :  { %v1787_v10 = vsel %vm356_vm7, %v1786_v21, %v1782_v32 }
 0xc38   :  { %v1789_v2 = vsel %vm262_vm12, %v1787_v10, 0.0  ;;  %2132 = vmatpush.msrb.mxu2 %v4714_v39 }
 0xc39   :  { %1790 = vadd.xlane.f32.xlu1 %v1789_v2 }
 0xc3a   :  { %2133 = vmatpush.msrb.mxu2 %v4723_v20 }
 0xc3b   :  { %3528 = vmatmul.msk.f32.vlgmr.msra.gmra.mxu2 %vm104_vm0, %v4413_v47 }
 0xc43   :  { %3543 = vmatmul.msk.f32.vlgmr.msrb.gmra.mxu2 %vm104_vm0, %v4660_v9 }
 0xc9f   :  { %v2115_v6 = vpop.f32.mrf.mxu1 }
 0xca0   :  { %v2116_v37 = vadd.f32 %v2115_v6, %v2087_v4  ;;  %v1817_v7 = vpop.permute.xlu0 %1816 }
 0xca2   :  { %v4741_v44 = vadd.f32 %v3555_v36, %v2116_v37  ;;  %v1824_v37 = vpop.permute.xlu2 %1823 }
 0xca4   :  { %3709 = vtanh.f32 %v4741_v44 }
 0xcaa   :  { %v3710_v47 = vpop.eup %3709 }
 0xcab   :  { %2533 = vrot.lane.b32.xlu1 %v3710_v47, %s3819_s29 }
 0xcac   :  { %v1791_v61 = vpop.xlane.xlu1 %1790 }
 0xcad   :  { %v3529_v45 = vmul.f32 -1.442695, %v1791_v61 }
 0xcaf   :  { %3711 = vpow2.f32 %v3529_v45 }
 0xcb5   :  { %v3712_v3 = vpop.eup %3711 }
 0xcb6   :  { %v1520_v8 = vpop.f32.mrf.mxu2  ;;  %v1795_v51 = vadd.f32 1.0, %v3712_v3 }
 0xcb7   :  { %v1546_v25 = vpop.f32.mrf.mxu3 }
 0xcb8   :  { %v1547_v42 = vadd.f32 %v1546_v25, %v1520_v8  ;;  %3713 = vrcp.f32 %v1795_v51  ;;  %v1807_v15 = vand.u32 2147483648, %v1795_v51  ;;  %v1805_v32 = vand.u32 2147483647, %v1795_v51 }
 0xcb9   :  { %vm1801_vm14 = vweird.f32 %v1795_v51  ;;  %v4759_v25 = vmax.f32 %v4547_v22, %v4543_v0 }
 0xcba   :  { %v1549_v58 = vadd.f32 %v1547_v42, %v1202_v17  ;;  %v1808_v2 = vor.u32 1.1754944e-38, %v1807_v15  ;;  %vm1806_vm1 = vcmp.eq.f32.partialorder %v1805_v32, 8.507059e+37 }
 0xcbc   :  { %3522 = vst [vmem:[%s5406_s9 + $0x4] sm:$0x3] %v1549_v58 }
 0xcbe   :  { %v3714_v16 = vpop.eup %3713 }
 0xcbf   :  { %v1797_v23 = vmul.f32 %v3714_v16, %v1795_v51  ;;  %vm1802_vm13 = vweird.f32 %v3714_v16  ;;  %v4755_v51 = vpop.permute.xlu2 %2159 }
 0xcc0   :  { %vm1803_vm15 = vmor %vm1801_vm14, %vm1802_vm13  ;;  %v2162_v17 = vmul.f32 %v4755_v51, %v4759_v25 }
 0xcc1   :  { %v1798_v48 = vsub.f32 1.0, %v1797_v23 }
 0xcc2   :  { %v2163_v42 = vsel %vm250_vm10, %v2162_v17, 0.0 }
 0xcc3   :  { %v1799_v21 = vmul.f32 %v3714_v16, %v1798_v48 }
 0xcc5   :  { %v1800_v10 = vadd.f32 %v3714_v16, %v1799_v21 }
 0xcc7   :  { %v1804_v4 = vsel %vm1803_vm15, %v3714_v16, %v1800_v10 }
 0xcc8   :  { %v1809_v30 = vsel %vm1806_vm1, %v1808_v2, %v1804_v4 }
 0xcc9   :  { %v1836_v6 = vmul.f32 %v1809_v30, %v4591_v56  ;;  %v1827_v36 = vperm.slane %v1809_v30, 1  ;;  %v1826_v15 = vperm.slane %v1809_v30, 0 }
 0xccb   :  { %v1839_v47 = vperm.slane %v1836_v6, 0  ;;  %v1838_v61 = vrot.slane %v1836_v6, 1  ;;  %v1831_v45 = vmul.f32 %v1827_v36, %v1824_v37  ;;  %v1830_v32 = vmul.f32 %v1826_v15, %v1817_v7 }
 0xccd   :  { %v1843_v62 = vmul.f32 %v1839_v47, %v1817_v7  ;;  %v1840_v3 = vperm.slane %v1838_v61, 0  ;;  %v1833_v58 = vsub.f32 1.0, %v1831_v45  ;;  %v1832_v2 = vsub.f32 1.0, %v1830_v32 }
 0xcce   :  { %v3556_v7 = vmul.f32 -1.442695, %v4741_v44  ;;  %v4782_v44 = vld [vmem:[%s5404_s7] ss:$0 sm:$0xff] }
 0xccf   :  { %1847 = vrot.lane.b32.xlu0 %v1843_v62, %s3819_s29  ;;  %v1844_v8 = vmul.f32 %v1840_v3, %v1824_v37  ;;  %v1835_v23 = vmul.f32 %v1833_v58, %v4658_v27  ;;  %v1834_v6 = vmul.f32 %v1832_v2, %v4668_v33 }
 0xcd0   :  { %3715 = vpow2.f32 %v3556_v7 }
 0xcd1   :  { %1849 = vrot.lane.b32.xlu2 %v1844_v8, %s3819_s29 }
 0xcf9   :  { %2164 = vadd.xlane.f32.xlu0 %v2163_v42 }
 0xd2b   :  { %v1850_v16 = vpop.permute.xlu2 %1849 }
 0xd2c   :  { %v4765_v48 = vadd.f32 %v1850_v16, %v1835_v23  ;;  %v3716_v16 = vpop.eup %3715 }
 0xd2d   :  { %v2514_v32 = vadd.f32 1.0, %v3716_v16 }
 0xd2e   :  { %v1856_v21 = vmul.f32 %v4765_v48, %v4647_v35 }
 0xd2f   :  { %3717 = vrcp.f32 %v2514_v32  ;;  %vm2520_vm3 = vweird.f32 %v2514_v32 }
 0xd30   :  { %v1864_v0 = vsel %vm104_vm0, %v1856_v21, 0.0 }
 0xd31   :  { %v1865_v10 = vrot.slane %v1864_v0, 4 }
 0xd33   :  { %v1866_v4 = vadd.f32 %v1865_v10, %v1864_v0  ;;  %v4786_v10 = vadd.f32 %v4782_v44, %v4701_v28 }
 0xd35   :  { %v1867_v47 = vrot.slane %v1866_v4, 2  ;;  %v2170_v2 = vmul.f32 %v4786_v10, %v4786_v10 }
 0xd37   :  { %v1868_v61 = vadd.f32 %v1867_v47, %v1866_v4  ;;  %v2171_v4 = vsel %vm262_vm12, %v2170_v2, 0.0 }
 0xd38   :  { %2172 = vadd.xlane.f32.xlu0 %v2171_v4 }
 0xd39   :  { %v1869_v8 = vrot.slane %v1868_v61, 1 }
 0xd3b   :  { %v1870_v33 = vadd.f32 %v1869_v8, %v1868_v61 }
 0xd3d   :  { %v1872_v15 = vmul.f32 %v1870_v33, %v1870_v33 }
 0xd41   :  { %v1848_v36 = vpop.permute.xlu0 %1847 }
 0xd42   :  { %v4771_v37 = vadd.f32 %v1848_v36, %v1834_v6  ;;  %v3718_v6 = vpop.eup %3717 }
 0xd43   :  { %v2516_v36 = vmul.f32 %v3718_v6, %v2514_v32  ;;  %vm2521_vm2 = vweird.f32 %v3718_v6 }
 0xd44   :  { %v1855_v27 = vmul.f32 %v4771_v37, %v4671_v59  ;;  %vm2522_vm4 = vmor %vm2520_vm3, %vm2521_vm2 }
 0xd45   :  { %v2517_v47 = vsub.f32 1.0, %v2516_v36 }
 0xd46   :  { %v1857_v30 = vsel %vm104_vm0, %v1855_v27, 0.0 }
 0xd47   :  { %v1858_v45 = vrot.slane %v1857_v30, 4  ;;  %v2518_v27 = vmul.f32 %v3718_v6, %v2517_v47 }
 0xd49   :  { %v1859_v62 = vadd.f32 %v1858_v45, %v1857_v30  ;;  %v2519_v45 = vadd.f32 %v3718_v6, %v2518_v27 }
 0xd4b   :  { %v1860_v3 = vrot.slane %v1859_v62, 2  ;;  %v2523_v8 = vsel %vm2522_vm4, %v3718_v6, %v2519_v45  ;;  %v4797_v6 = vpop.f32.mrf.mxu2 }
 0xd4d   :  { %v1861_v17 = vadd.f32 %v1860_v3, %v1859_v62  ;;  %v2526_v62 = vand.u32 2147483648, %v2514_v32  ;;  %v2524_v3 = vand.u32 2147483647, %v2514_v32 }
 0xd4f   :  { %v1862_v42 = vrot.slane %v1861_v17, 1  ;;  %vm2525_vm5 = vcmp.eq.f32.partialorder %v2524_v3, 8.507059e+37 }
 0xd51   :  { %v1863_v58 = vadd.f32 %v1862_v42, %v1861_v17  ;;  %v2527_v17 = vor.u32 1.1754944e-38, %v2526_v62  ;;  %v2534_v42 = vpop.permute.xlu1 %2533 }
 0xd53   :  { %v1871_v23 = vmul.f32 %v1863_v58, %v1863_v58  ;;  %v4792_v33 = vsel %vm2525_vm5, %v2527_v17, %v2523_v8  ;;  %v2135_v3 = vpop.f32.mrf.mxu2 }
 0xd54   :  { %v2536_v58 = vmul.f32 %v2534_v42, %v4792_v33  ;;  %v2531_v46 = vmul.f32 %v4792_v33, %v4566_v63  ;;  %v2221_v63 = vperm.slane %v4701_v28, 0 }
 0xd55   :  { %v1875_v21 = vsel %vm356_vm7, %v1872_v15, %v1871_v23 }
 0xd56   :  { %v1877_v0 = vsel %vm262_vm12, %v1875_v21, 0.0 }
 0xd57   :  { %1878 = vadd.xlane.f32.xlu2 %v1877_v0 }
 0xd6c   :  { %v2165_v30 = vpop.xlane.xlu0 %2164 }
 0xd6d   :  { %v2166_v61 = vsub.f32 1.0, %v2165_v30 }
 0xd6f   :  { %v2167_v7 = vmul.f32 %v4701_v28, %v2166_v61 }
 0xd71   :  { %2188 = vperm.xlu1 %3618, %v2167_v7   ;;  %v2088_v7 = vperm.slane %v4735_v1, 1  ;;  %v2228_v1 = vperm.slane %v4701_v28, 1 }
 0xd73   :  { %v4802_v17 = vadd.f32 %v2135_v3, %v2088_v7 }
 0xd79   :  { %2538 = vrot.lane.b32.xlu1 %v2536_v58, %s3820_s12 }
 0xd7a   :  { %3619 = vset.pattern.permute.xlu1 %v4035_v24 }
 0xdca   :  { %v1879_v16 = vpop.xlane.xlu2 %1878 }
 0xdcb   :  { %v1880_v23 = vadd.f32 1e-30, %v1879_v16  ;;  %v5409_v16 = vrot.slane %v4802_v17, 1 }
 0xdcd   :  { %3719 = vrsqrt.f32 %v1880_v23  ;;  %vm1887_vm8 = vweird.f32 %v1880_v23 }
 0xdd3   :  { %v3720_v15 = vpop.eup %3719 }
 0xdd4   :  { %v1882_v21 = vmul.f32 %v3720_v15, %v1880_v23  ;;  %vm1888_vm6 = vweird.f32 %v3720_v15 }
 0xdd5   :  { %vm1889_vm9 = vmor %vm1887_vm8, %vm1888_vm6 }
 0xdd6   :  { %v1883_v32 = vmul.f32 %v3720_v15, %v1882_v21  ;;  %v2173_v21 = vpop.xlane.xlu0 %2172 }
 0xdd8   :  { %v1884_v0 = vmul.f32 0.5, %v1883_v32  ;;  %v2174_v32 = vadd.f32 1e-30, %v2173_v21 }
 0xdda   :  { %v1885_v2 = vsub.f32 1.5, %v1884_v0  ;;  %vm2181_vm13 = vweird.f32 %v2174_v32 }
 0xddc   :  { %v1886_v4 = vmul.f32 %v3720_v15, %v1885_v2 }
 0xdde   :  { %v1890_v36 = vsel %vm1889_vm9, %v3720_v15, %v1886_v4  ;;  %v1966_v15 = vsub.f32 1.0, %v4501_v29 }
 0xddf   :  { %v1892_v47 = vsel %vm1891_vm11, %v1890_v36, 1.0 }
 0xde0   :  { %v1900_v27 = vperm.slane %v1892_v47, 1  ;;  %v1893_v30 = vperm.slane %v1892_v47, 0 }
 0xde2   :  { %1905 = vperm.xlu1 %3619, %v1900_v27   ;;  %1898 = vperm.xlu0 %3616, %v1893_v30  }
 0xde3   :  { %v2189_v61 = vpop.permute.xlu1 %2188 }
 0xde4   :  { %v2191_v45 = vmul.f32 %v4701_v28, %v2189_v61 }
 0xde6   :  { %v2199_v62 = vperm.slane %v2191_v45, 1  ;;  %v2192_v8 = vperm.slane %v2191_v45, 0 }
 0xde8   :  { %2204 = vperm.xlu2 %3617, %v2199_v62  }
 0xdea   :  { %2197 = vperm.xlu1 %3619, %v2192_v8   ;;  %3620 = vset.pattern.permute.xlu0 %v3823_v13 }
 0xdeb   :  { %v2539_v42 = vpop.permute.xlu1 %2538 }
 0xdec   :  { %v4807_v58 = vadd.f32 %v2539_v42, %v2531_v46 }
 0xdee   :  { %3721 = vtanh.f32 %v4807_v58 }
 0xdef   :  { %3723 = vrsqrt.f32 %v2174_v32 }
 0xdf0   :  { %2255 = vrot.lane.b32.xlu2 %v5409_v16, %s3821_s15 }
 0xdf1   :  { %3621 = vset.pattern.permute.xlu2 %v3823_v13 }
 0xdf2   :  { %2233 = vperm.xlu1 %3619, %v2228_v1  }
 0xdf4   :  { %v3722_v23 = vpop.eup %3721 }
 0xdf5   :  { %2544 = vrot.lane.b32.xlu0 %v3722_v23, %s3819_s29  ;;  %v3724_v0 = vpop.eup %3723 }
 0xdf6   :  { %v2176_v2 = vmul.f32 %v3724_v0, %v2174_v32  ;;  %vm2182_vm14 = vweird.f32 %v3724_v0 }
 0xdf7   :  { %vm2183_vm15 = vmor %vm2181_vm13, %vm2182_vm14 }
 0xdf8   :  { %v2177_v4 = vmul.f32 %v3724_v0, %v2176_v2 }
 0xdfa   :  { %2226 = vperm.xlu1 %3619, %v2221_v63   ;;  %v2178_v36 = vmul.f32 0.5, %v2177_v4 }
 0xdfc   :  { %v2179_v47 = vsub.f32 1.5, %v2178_v36 }
 0xdfd   :  { %2217 = vperm.xlu0 %3620, %v4701_v28  }
 0xdfe   :  { %v2180_v27 = vmul.f32 %v3724_v0, %v2179_v47 }
 0xe00   :  { %v2184_v29 = vsel %vm2183_vm15, %v3724_v0, %v2180_v27  ;;  %v1958_v27 = vrot.slane %v4676_v12, 1 }
 0xe01   :  { %v2185_v45 = vmul.f32 %v2184_v29, %v4786_v10 }
 0xe02   :  { %2253 = vrot.lane.b32.xlu1 %v4802_v17, %s3821_s15 }
 0xe03   :  { %3624 = vset.pattern.permute.xlu1 %v3823_v13  ;;  %v2207_v46 = vrot.slane %v2185_v45, 1 }
 0xe05   :  { %1969 = vperm.xlu0 %3620, %v1966_v15   ;;  %v2209_v21 = vperm.slane %v2207_v46, 0 }
 0xe0d   :  { %3623 = vset.pattern.permute.xlu0 %v4035_v24 }
 0xe42   :  { %v2205_v32 = vpop.permute.xlu2 %2204 }
 0xe54   :  { %v1906_v30 = vpop.permute.xlu1 %1905  ;;  %v1899_v61 = vpop.permute.xlu0 %1898 }
 0xe55   :  { %v4826_v7 = vmul.f32 %v1906_v30, %v4765_v48  ;;  %v4829_v62 = vmul.f32 %v1899_v61, %v4771_v37 }
 0xe57   :  { %v1910_v3 = vmul.f32 %v4826_v7, %v4647_v35  ;;  %v1909_v8 = vmul.f32 %v4829_v62, %v4671_v59  ;;  %v2213_v35 = vmul.f32 %v2209_v21, %v2205_v32 }
 0xe59   :  { %v1918_v42 = vsel %vm104_vm0, %v1910_v3, 0.0  ;;  %v1911_v1 = vsel %vm104_vm0, %v1909_v8, 0.0  ;;  %v4838_v59 = vadd.f32 %v2213_v35, %v4826_v7  ;;  %v2208_v3 = vperm.slane %v2185_v45, 0  ;;  %v2553_v35 = vld [vmem:[%s5401_s4 + $0x18] sm:$0xff] }
 0xe5a   :  { %v1919_v23 = vrot.slane %v1918_v42, 4  ;;  %v1912_v63 = vrot.slane %v1911_v1, 4 }
 0xe5c   :  { %v1920_v10 = vadd.f32 %v1919_v23, %v1918_v42  ;;  %v1913_v15 = vadd.f32 %v1912_v63, %v1911_v1  ;;  %v2198_v48 = vpop.permute.xlu1 %2197 }
 0xe5d   :  { %v2212_v1 = vmul.f32 %v2208_v3, %v2198_v48  ;;  %v2556_v48 = vld [vmem:[%s5401_s4 + $0x30] sm:$0xff] }
 0xe5e   :  { %v1921_v37 = vrot.slane %v1920_v10, 2  ;;  %v1914_v0 = vrot.slane %v1913_v15, 2 }
 0xe60   :  { %v1922_v2 = vadd.f32 %v1921_v37, %v1920_v10  ;;  %v1915_v4 = vadd.f32 %v1914_v0, %v1913_v15  ;;  %v2559_v0 = vld [vmem:[%s5401_s4 + $0x48] sm:$0xff] }
 0xe61   :  { %2587 = vmatpush.msra.mxu2 %v2559_v0 }
 0xe62   :  { %v1923_v36 = vrot.slane %v1922_v2, 1  ;;  %v1916_v47 = vrot.slane %v1915_v4, 1 }
 0xe63   :  { %2588 = vmatpush.msra.mxu2 %v2556_v48 }
 0xe64   :  { %v1924_v29 = vadd.f32 %v1923_v36, %v1922_v2  ;;  %v1917_v30 = vadd.f32 %v1916_v47, %v1915_v4  ;;  %v4841_v61 = vpop.permute.xlu1 %2233  ;;  %v4860_v2 = vadd.f32 %v2212_v1, %v4829_v62  ;;  %v3760_v4 = vld [vmem:[%s5398_s1 + $0x6] sm:$0x3] }
 0xe65   :  { %v2236_v8 = vmul.f32 %v4841_v61, %v4838_v59  ;;  %vm1925_vm1 = vcmp.gt.f32.partialorder %v3760_v4, 0.5  ;;  %2589 = vmatpush.msra.mxu2 %v2553_v35 }
 0xe66   :  { %v1961_v46 = vmul.f32 %v1958_v27, %v1924_v29  ;;  %v4846_v42 = vsel %vm356_vm7, %v1924_v29, %v1917_v30  ;;  %v1960_v21 = vmul.f32 %v1917_v30, %v4676_v12  ;;  %v2550_v27 = vld [vmem:[%s5401_s4] sm:$0xff]  ;;  %v1926_v30 = vsel %vm1925_vm1, 1, %v3824_v54 }
 0xe67   :  { %v2244_v23 = vsel %vm104_vm0, %v2236_v8, 0.0  ;;  %v2545_v63 = vpop.permute.xlu0 %2544  ;;  %2590 = vmatpush.msra.mxu2 %v2550_v27  ;;  %v2084_v27 = vld [vmem:[%s5401_s4 + $0x58] sm:$0xff] }
 0xe68   :  { %v2245_v10 = vrot.slane %v2244_v23, 4  ;;  %v2547_v15 = vmul.f32 %v2545_v63, %v4792_v33  ;;  %v2002_v32 = vrot.slane %v1961_v46, 7  ;;  %2150 = vmatpush.msrb.mxu3 %v2084_v27 }
 0xe6a   :  { %v2246_v37 = vadd.f32 %v2245_v10, %v2244_v23  ;;  %2571 = vrot.lane.b32.xlu2 %v2547_v15, %s3820_s12  ;;  %v2003_v45 = vsel %vm356_vm7, %v2002_v32, %v1960_v21  ;;  %v2256_v32 = vpop.permute.xlu2 %2255 }
 0xe6b   :  { %3537 = vmatmul.msk.f32.vlgmr.msrb.gmra.mxu0 %vm104_vm0, %v2003_v45 }
 0xe6c   :  { %v2247_v12 = vrot.slane %v2246_v37, 2  ;;  %v4863_v33 = vpop.permute.xlu1 %2226 }
 0xe6d   :  { %v2235_v36 = vmul.f32 %v4863_v33, %v4860_v2 }
 0xe6e   :  { %v2248_v47 = vadd.f32 %v2247_v12, %v2246_v37 }
 0xe6f   :  { %v2237_v29 = vsel %vm104_vm0, %v2235_v36, 0.0  ;;  %v4878_v3 = vpop.permute.xlu0 %2217 }
 0xe70   :  { %v2238_v8 = vrot.slane %v2237_v29, 4  ;;  %v4882_v46 = vmul.f32 %v4701_v28, %v4878_v3  ;;  %v2249_v1 = vrot.slane %v2248_v47, 1 }
 0xe72   :  { %1928 = vperm.xlu2 %3621, %v1926_v30   ;;  %v2239_v23 = vadd.f32 %v2238_v8, %v2237_v29  ;;  %v2295_v63 = vperm.slane %v4882_v46, 1  ;;  %v2250_v15 = vadd.f32 %v2249_v1, %v2248_v47  ;;  %v2288_v35 = vperm.slane %v4882_v46, 0  ;;  %v4892_v47 = vld [vmem:[%s5398_s1 + $0xa] sm:$0x3]  ;;  %v2081_v29 = vld [vmem:[%s5401_s4 + $0x40] sm:$0xff]  ;;  %v2075_v8 = vld [vmem:[%s5401_s4 + $0x10] sm:$0xff] }
 0xe73   :  { %v2078_v30 = vld [vmem:[%s5401_s4 + $0x28] sm:$0xff]  ;;  %2151 = vmatpush.msrb.mxu3 %v2081_v29  ;;  %vm2368_vm13 = vcmp.gt.f32.partialorder %v4882_v46, 0.5 }
 0xe74   :  { %v2240_v10 = vrot.slane %v2239_v23, 2  ;;  %2300 = vperm.xlu0 %3623, %v2295_v63   ;;  %v2260_v45 = vmul.f32 %v2256_v32, %v2250_v15  ;;  %v2254_v48 = vpop.permute.xlu1 %2253 }
 0xe75   :  { %2152 = vmatpush.msrb.mxu3 %v2078_v30 }
 0xe76   :  { %v2241_v21 = vadd.f32 %v2240_v10, %v2239_v23  ;;  %v2263_v28 = vrot.slane %v2260_v45, 7 }
 0xe77   :  { %2153 = vmatpush.msrb.mxu3 %v2075_v8  ;;  %v1970_v63 = vpop.permute.xlu0 %1969 }
 0xe78   :  { %v2242_v37 = vrot.slane %v2241_v21, 1 }
 0xe7a   :  { %v2243_v0 = vadd.f32 %v2242_v37, %v2241_v21  ;;  %3622 = vset.pattern.permute.xlu2 %v4035_v24 }
 0xe7c   :  { %v2259_v12 = vmul.f32 %v2254_v48, %v2243_v0 }
 0xe7e   :  { %v2264_v4 = vsel %vm356_vm7, %v2263_v28, %v2259_v12 }
 0xe7f   :  { %v2266_v36 = vsel %vm262_vm12, %v2264_v4, 0.0 }
 0xe80   :  { %2267 = vadd.xlane.f32.xlu1 %v2266_v36 }
 0xe82   :  { %2293 = vperm.xlu2 %3622, %v2288_v35  }
 0xe8a   :  { %2636 = vrot.lane.b32.xlu2 %v4892_v47, %s3821_s15 }
 0xec4   :  { %v4908_v1 = vpop.permute.xlu2 %2571 }
 0xec5   :  { %3558 = vmatmul.msk.f32.vlgmr.msra.gmra.mxu2 %vm104_vm0, %v4908_v1 }
 0xecc   :  { %v1929_v23 = vpop.permute.xlu2 %1928 }
 0xecd   :  { %vm1930_vm2 = vcmp.eq.s32.totalorder %v1929_v23, 1 }
 0xece   :  { %v4914_v10 = vsel %vm1930_vm2, %v4846_v42, %v4687_v14 }
 0xecf   :  { %v1972_v15 = vmul.f32 %v1970_v63, %v4914_v10 }
 0xed1   :  { %3536 = vmatmul.msk.f32.vlgmr.msra.gmra.mxu3 %vm104_vm0, %v1972_v15 }
 0xed2   :  { %2607 = vmatpush.msra.mxu3 %v4694_v60 }
 0xed4   :  { %2608 = vmatpush.msra.mxu3 %v4706_v18 }
 0xed6   :  { %2609 = vmatpush.msra.mxu3 %v4714_v39 }
 0xed8   :  { %2610 = vmatpush.msra.mxu3 %v4723_v20 }
 0xed9   :  { %3544 = vmatmul.msk.f32.vlgmr.msrb.gmra.mxu3 %vm104_vm0, %v4660_v9 }
 0xedc   :  { %v2294_v35 = vpop.permute.xlu2 %2293 }
 0xee1   :  { %3559 = vmatmul.msk.f32.vlgmr.msra.gmra.mxu3 %vm104_vm0, %v4908_v1 }
 0xee4   :  { %v4929_v15 = vpop.permute.xlu2 %2636 }
 0xee6   :  { %v2301_v23 = vpop.permute.xlu0 %2300 }
 0xef3   :  { %v2268_v14 = vpop.xlane.xlu1 %2267 }
 0xef4   :  { %v3545_v42 = vmul.f32 -1.442695, %v2268_v14  ;;  %v4933_v14 = vmax.f32 %v4759_v25, %v4755_v51  ;;  %v3571_v51 = vld [vmem:[%s5397_s0 + $0xc] sm:$0x3] }
 0xef6   :  { %3725 = vpow2.f32 %v3545_v42  ;;  %v2639_v42 = vmul.f32 %v4929_v15, %v4933_v14 }
 0xefc   :  { %v3726_v21 = vpop.eup %3725 }
 0xefd   :  { %v2272_v32 = vadd.f32 1.0, %v3726_v21  ;;  %v2640_v21 = vsel %vm250_vm10, %v2639_v42, 0.0 }
 0xeff   :  { %3727 = vrcp.f32 %v2272_v32  ;;  %v2284_v18 = vand.u32 2147483648, %v2272_v32  ;;  %v2282_v39 = vand.u32 2147483647, %v2272_v32  ;;  %vm2278_vm4 = vweird.f32 %v2272_v32 }
 0xf01   :  { %v2285_v9 = vor.u32 1.1754944e-38, %v2284_v18  ;;  %vm2283_vm6 = vcmp.eq.f32.partialorder %v2282_v39, 8.507059e+37 }
 0xf05   :  { %v3728_v37 = vpop.eup %3727 }
 0xf06   :  { %v2274_v60 = vmul.f32 %v3728_v37, %v2272_v32  ;;  %vm2279_vm3 = vweird.f32 %v3728_v37  ;;  %v4941_v32 = vld [vmem:[%s5402_s5] sm:$0x7] }
 0xf07   :  { %vm2280_vm5 = vmor %vm2278_vm4, %vm2279_vm3 }
 0xf08   :  { %v2275_v45 = vsub.f32 1.0, %v2274_v60 }
 0xf0a   :  { %v2276_v0 = vmul.f32 %v3728_v37, %v2275_v45 }
 0xf0c   :  { %v2277_v20 = vadd.f32 %v3728_v37, %v2276_v0  ;;  %v3761_v0 = vld [vmem:[%s5402_s5] sm:$0x7] }
 0xf0d   :  { %v1612_v39 = vperm.slane %v3761_v0, 2 }
 0xf0e   :  { %v2281_v48 = vsel %vm2280_vm5, %v3728_v37, %v2277_v20  ;;  %v2564_v37 = vperm.slane %v4941_v32, 0  ;;  %v2023_v20 = vpop.f32.mrf.mxu0 }
 0xf0f   :  { %v2286_v12 = vsel %vm2283_vm6, %v2285_v9, %v2281_v48  ;;  %v1679_v48 = vadd.f32 %v4797_v6, %v1612_v39 }
 0xf10   :  { %v2313_v28 = vmul.f32 %v2286_v12, %v4802_v17  ;;  %v2303_v4 = vperm.slane %v2286_v12, 0 }
 0xf12   :  { %v2315_v36 = vrot.slane %v2313_v28, 1  ;;  %v2316_v27 = vperm.slane %v2313_v28, 0  ;;  %v2307_v29 = vmul.f32 %v2303_v4, %v2294_v35 }
 0xf14   :  { %v2317_v30 = vperm.slane %v2315_v36, 0  ;;  %v2320_v8 = vmul.f32 %v2316_v27, %v2294_v35  ;;  %v2309_v36 = vsub.f32 1.0, %v2307_v29 }
 0xf16   :  { %v2321_v63 = vmul.f32 %v2317_v30, %v2301_v23  ;;  %2324 = vrot.lane.b32.xlu2 %v2320_v8, %s3819_s29  ;;  %v2311_v30 = vmul.f32 %v2309_v36, %v4860_v2 }
 0xf18   :  { %2326 = vrot.lane.b32.xlu0 %v2321_v63, %s3819_s29  ;;  %v2304_v63 = vperm.slane %v2286_v12, 1 }
 0xf1a   :  { %v2308_v6 = vmul.f32 %v2304_v63, %v2301_v23 }
 0xf3f   :  { %2641 = vadd.xlane.f32.xlu2 %v2640_v21 }
 0xf48   :  { %v2592_v60 = vpop.f32.mrf.mxu2 }
 0xf49   :  { %v2593_v45 = vadd.f32 %v2592_v60, %v2564_v37  ;;  %v2310_v60 = vsub.f32 1.0, %v2308_v6 }
 0xf4b   :  { %v2987_v18 = vadd.f32 %v3571_v51, %v2593_v45  ;;  %v2312_v51 = vmul.f32 %v2310_v60, %v4838_v59  ;;  %v4973_v60 = vadd.f32 %v4782_v44, %v4892_v47 }
 0xf4d   :  { %3729 = vtanh.f32 %v2987_v18 }
 0xf53   :  { %v3730_v4 = vpop.eup %3729 }
 0xf54   :  { %v1997_v9 = vpop.f32.mrf.mxu3 }
 0xf55   :  { %v2024_v28 = vadd.f32 %v2023_v20, %v1997_v9 }
 0xf57   :  { %v2026_v35 = vadd.f32 %v2024_v28, %v1679_v48  ;;  %3010 = vrot.lane.b32.xlu2 %v3730_v4, %s3819_s29 }
 0xf59   :  { %3538 = vst [vmem:[%s5406_s9 + $0x6] sm:$0x3] %v2026_v35 }
 0xf70   :  { %v2325_v27 = vpop.permute.xlu2 %2324 }
 0xf71   :  { %v4956_v8 = vadd.f32 %v2325_v27, %v2311_v30 }
 0xf73   :  { %v2332_v42 = vmul.f32 %v4956_v8, %v4863_v33 }
 0xf75   :  { %v2334_v21 = vsel %vm104_vm0, %v2332_v42, 0.0 }
 0xf76   :  { %v2335_v37 = vrot.slane %v2334_v21, 4 }
 0xf78   :  { %v2336_v45 = vadd.f32 %v2335_v37, %v2334_v21 }
 0xf7a   :  { %v2337_v29 = vrot.slane %v2336_v45, 2 }
 0xf7c   :  { %v2338_v20 = vadd.f32 %v2337_v29, %v2336_v45  ;;  %v2647_v45 = vmul.f32 %v4973_v60, %v4973_v60 }
 0xf7e   :  { %v2339_v28 = vrot.slane %v2338_v20, 1 }
 0xf80   :  { %v2340_v35 = vadd.f32 %v2339_v28, %v2338_v20 }
 0xf82   :  { %v2348_v30 = vmul.f32 %v2340_v35, %v2340_v35 }
 0xf8a   :  { %v2327_v0 = vpop.permute.xlu0 %2326 }
 0xf8b   :  { %v4962_v39 = vadd.f32 %v2327_v0, %v2312_v51  ;;  %v2648_v51 = vsel %vm262_vm12, %v2647_v45, 0.0  ;;  %v3572_v0 = vmul.f32 -1.442695, %v2987_v18 }
 0xf8d   :  { %v2333_v2 = vmul.f32 %v4962_v39, %v4841_v61  ;;  %3731 = vpow2.f32 %v3572_v0  ;;  %v2705_v0 = vperm.slane %v4892_v47, 1 }
 0xf8f   :  { %v2341_v12 = vsel %vm104_vm0, %v2333_v2, 0.0 }
 0xf90   :  { %v2342_v9 = vrot.slane %v2341_v12, 4 }
 0xf92   :  { %v2343_v48 = vadd.f32 %v2342_v9, %v2341_v12 }
 0xf93   :  { %v3732_v12 = vpop.eup %3731 }
 0xf94   :  { %v2344_v23 = vrot.slane %v2343_v48, 2  ;;  %v2991_v20 = vadd.f32 1.0, %v3732_v12  ;;  %v2698_v12 = vperm.slane %v4892_v47, 0 }
 0xf96   :  { %v2345_v4 = vadd.f32 %v2344_v23, %v2343_v48  ;;  %vm2997_vm15 = vweird.f32 %v2991_v20 }
 0xf98   :  { %v2346_v36 = vrot.slane %v2345_v4, 1 }
 0xf9a   :  { %v2347_v27 = vadd.f32 %v2346_v36, %v2345_v4 }
 0xf9c   :  { %v2349_v59 = vmul.f32 %v2347_v27, %v2347_v27 }
 0xf9e   :  { %v2352_v63 = vsel %vm356_vm7, %v2349_v59, %v2348_v30 }
 0xf9f   :  { %v2354_v42 = vsel %vm262_vm12, %v2352_v63, 0.0 }
 0xfa0   :  { %2355 = vadd.xlane.f32.xlu0 %v2354_v42 }
 0xfb2   :  { %v2642_v6 = vpop.xlane.xlu2 %2641 }
 0xfb3   :  { %v2643_v21 = vsub.f32 1.0, %v2642_v6 }
 0xfb5   :  { %v2644_v37 = vmul.f32 %v4892_v47, %v2643_v21 }
 0xfb7   :  { %2665 = vperm.xlu1 %3624, %v2644_v37   ;;  %v4980_v37 = vpop.f32.mrf.mxu3 }
 0xfbf   :  { %3625 = vset.pattern.permute.xlu1 %v4035_v24 }
 0xfe1   :  { %2649 = vadd.xlane.f32.xlu1 %v2648_v51 }
0x1013   :  { %v2356_v29 = vpop.xlane.xlu0 %2355 }
0x1014   :  { %v2357_v2 = vadd.f32 1e-30, %v2356_v29  ;;  %v3003_v29 = vand.u32 2147483648, %v2991_v20 }
0x1016   :  { %3733 = vrsqrt.f32 %v2357_v2  ;;  %vm2364_vm9 = vweird.f32 %v2357_v2 }
0x1017   :  { %3735 = vrcp.f32 %v2991_v20 }
0x101c   :  { %v3734_v9 = vpop.eup %3733 }
0x101d   :  { %v2359_v48 = vmul.f32 %v3734_v9, %v2357_v2  ;;  %vm2365_vm8 = vweird.f32 %v3734_v9  ;;  %v3736_v4 = vpop.eup %3735  ;;  %v3001_v2 = vand.u32 2147483647, %v2991_v20 }
0x101e   :  { %vm2366_vm11 = vmor %vm2364_vm9, %vm2365_vm8  ;;  %v2993_v18 = vmul.f32 %v3736_v4, %v2991_v20  ;;  %vm2998_vm14 = vweird.f32 %v3736_v4 }
0x101f   :  { %v2360_v23 = vmul.f32 %v3734_v9, %v2359_v48  ;;  %vm2999_vm1 = vmor %vm2997_vm15, %vm2998_vm14  ;;  %v2565_v48 = vperm.slane %v4941_v32, 1  ;;  %vm3002_vm2 = vcmp.eq.f32.partialorder %v3001_v2, 8.507059e+37 }
0x1020   :  { %v2994_v42 = vsub.f32 1.0, %v2993_v18 }
0x1021   :  { %v2361_v28 = vmul.f32 0.5, %v2360_v23  ;;  %v3004_v23 = vor.u32 1.1754944e-38, %v3003_v29  ;;  %v2441_v29 = vld [vmem:[%s5403_s6 + $0x10] sm:$0xff] }
0x1022   :  { %v2995_v45 = vmul.f32 %v3736_v4, %v2994_v42 }
0x1023   :  { %v2362_v44 = vsub.f32 1.5, %v2361_v28  ;;  %v3011_v28 = vpop.permute.xlu2 %3010 }
0x1024   :  { %v2996_v46 = vadd.f32 %v3736_v4, %v2995_v45 }
0x1025   :  { %v2363_v35 = vmul.f32 %v3734_v9, %v2362_v44  ;;  %v2612_v44 = vpop.f32.mrf.mxu3 }
0x1026   :  { %v4988_v18 = vadd.f32 %v2612_v44, %v2565_v48  ;;  %v2439_v48 = vld [vmem:[%s5403_s6] sm:$0xff] }
0x1027   :  { %v2367_v36 = vsel %vm2366_vm11, %v3734_v9, %v2363_v35  ;;  %v3000_v9 = vsel %vm2999_vm1, %v3736_v4, %v2996_v46  ;;  %v2442_v46 = vld [vmem:[%s5403_s6 + $0x18] sm:$0xff] }
0x1028   :  { %v2369_v27 = vsel %vm2368_vm13, %v2367_v36, 1.0  ;;  %v4985_v35 = vsel %vm3002_vm2, %v3004_v23, %v3000_v9  ;;  %v2729_v20 = vrot.slane %v4988_v18, 1  ;;  %2495 = vmatpush.msra.mxu1 %v2442_v46  ;;  %2972 = vmatpush.msrb.mxu2 %v2442_v46 }
0x1029   :  { %v2666_v30 = vpop.permute.xlu1 %2665  ;;  %v2377_v59 = vperm.slane %v2369_v27, 1  ;;  %v2370_v51 = vperm.slane %v2369_v27, 0  ;;  %v3013_v36 = vmul.f32 %v3011_v28, %v4985_v35 }
0x102a   :  { %v2668_v63 = vmul.f32 %v4892_v47, %v2666_v30  ;;  %2496 = vmatpush.msra.mxu1 %v2441_v29  ;;  %2973 = vmatpush.msrb.mxu2 %v2441_v29 }
0x102b   :  { %2382 = vperm.xlu0 %3623, %v2377_v59  }
0x102c   :  { %v2669_v6 = vperm.slane %v2668_v63, 0  ;;  %v2676_v21 = vperm.slane %v2668_v63, 1 }
0x102e   :  { %2681 = vperm.xlu2 %3622, %v2676_v21   ;;  %2674 = vperm.xlu1 %3625, %v2669_v6  }
0x1033   :  { %2375 = vperm.xlu0 %3623, %v2370_v51  }
0x1036   :  { %2710 = vperm.xlu2 %3622, %v2705_v0  }
0x103b   :  { %2703 = vperm.xlu0 %3623, %v2698_v12   ;;  %v2440_v12 = vld [vmem:[%s5403_s6 + $0x8] sm:$0xff] }
0x103c   :  { %2497 = vmatpush.msra.mxu1 %v2440_v12  ;;  %2974 = vmatpush.msrb.mxu2 %v2440_v12 }
0x103e   :  { %3015 = vrot.lane.b32.xlu2 %v3013_v36, %s3820_s12  ;;  %2498 = vmatpush.msra.mxu1 %v2439_v48 }
0x103f   :  { %3628 = vset.pattern.permute.xlu2 %v3823_v13  ;;  %2975 = vmatpush.msrb.mxu2 %v2439_v48 }
0x1043   :  { %2732 = vrot.lane.b32.xlu0 %v2729_v20, %s3821_s15 }
0x1044   :  { %3626 = vset.pattern.permute.xlu0 %v3823_v13 }
0x1046   :  { %2730 = vrot.lane.b32.xlu2 %v4988_v18, %s3821_s15 }
0x104b   :  { %2694 = vperm.xlu0 %3626, %v4892_v47  }
0x1053   :  { %3627 = vset.pattern.permute.xlu0 %v4035_v24 }
0x1054   :  { %v2650_v32 = vpop.xlane.xlu1 %2649 }
0x1055   :  { %v2651_v4 = vadd.f32 1e-30, %v2650_v32 }
0x1057   :  { %3737 = vrsqrt.f32 %v2651_v4  ;;  %vm2658_vm3 = vweird.f32 %v2651_v4 }
0x105d   :  { %v3738_v27 = vpop.eup %3737 }
0x105e   :  { %v2653_v30 = vmul.f32 %v3738_v27, %v2651_v4  ;;  %vm2659_vm4 = vweird.f32 %v3738_v27 }
0x105f   :  { %vm2660_vm5 = vmor %vm2658_vm3, %vm2659_vm4 }
0x1060   :  { %v2654_v59 = vmul.f32 %v3738_v27, %v2653_v30 }
0x1062   :  { %v2655_v63 = vmul.f32 0.5, %v2654_v59 }
0x1064   :  { %v2656_v42 = vsub.f32 1.5, %v2655_v63 }
0x1066   :  { %v2657_v21 = vmul.f32 %v3738_v27, %v2656_v42 }
0x1068   :  { %v2661_v45 = vsel %vm2660_vm5, %v3738_v27, %v2657_v21 }
0x1069   :  { %v2662_v0 = vmul.f32 %v2661_v45, %v4973_v60  ;;  %v3008_v60 = vmul.f32 %v4985_v35, %v4807_v58 }
0x106b   :  { %v2684_v2 = vrot.slane %v2662_v0, 1 }
0x106d   :  { %v2686_v28 = vperm.slane %v2684_v2, 0  ;;  %v2685_v2 = vperm.slane %v2662_v0, 0 }
0x1088   :  { %v2682_v6 = vpop.permute.xlu2 %2681 }
0x1089   :  { %v2690_v36 = vmul.f32 %v2686_v28, %v2682_v6 }
0x1090   :  { %v5001_v51 = vpop.permute.xlu2 %2710 }
0x1098   :  { %v3016_v9 = vpop.permute.xlu2 %3015 }
0x1099   :  { %v3018_v23 = vadd.f32 %v3016_v9, %v3008_v60 }
0x109b   :  { %3739 = vtanh.f32 %v3018_v23 }
0x109d   :  { %v2383_v44 = vpop.permute.xlu0 %2382 }
0x109e   :  { %v5019_v32 = vmul.f32 %v2383_v44, %v4962_v39 }
0x10a0   :  { %v2387_v58 = vmul.f32 %v5019_v32, %v4841_v61  ;;  %v5024_v4 = vadd.f32 %v2690_v36, %v5019_v32  ;;  %v2675_v46 = vpop.permute.xlu1 %2674 }
0x10a1   :  { %v3740_v27 = vpop.eup %3739  ;;  %v2689_v9 = vmul.f32 %v2685_v2, %v2675_v46 }
0x10a2   :  { %v2395_v30 = vsel %vm104_vm0, %v2387_v58, 0.0  ;;  %v2713_v59 = vmul.f32 %v5001_v51, %v5024_v4  ;;  %3021 = vrot.lane.b32.xlu1 %v3740_v27, %s3819_s29 }
0x10a3   :  { %v2396_v63 = vrot.slane %v2395_v30, 4 }
0x10a4   :  { %v2721_v42 = vsel %vm104_vm0, %v2713_v59, 0.0 }
0x10a5   :  { %v2397_v6 = vadd.f32 %v2396_v63, %v2395_v30  ;;  %v2376_v39 = vpop.permute.xlu0 %2375  ;;  %v2722_v21 = vrot.slane %v2721_v42, 4  ;;  %v2435_v63 = vrot.slane %v4878_v3, 1 }
0x10a6   :  { %v5032_v45 = vmul.f32 %v2376_v39, %v4956_v8 }
0x10a7   :  { %v2398_v61 = vrot.slane %v2397_v6, 2  ;;  %v2723_v29 = vadd.f32 %v2722_v21, %v2721_v42 }
0x10a8   :  { %v2386_v12 = vmul.f32 %v5032_v45, %v4863_v33  ;;  %v5038_v36 = vadd.f32 %v2689_v9, %v5032_v45 }
0x10a9   :  { %v2399_v60 = vadd.f32 %v2398_v61, %v2397_v6  ;;  %v2724_v23 = vrot.slane %v2723_v29, 2 }
0x10aa   :  { %v2388_v48 = vsel %vm104_vm0, %v2386_v12, 0.0 }
0x10ab   :  { %v2400_v28 = vrot.slane %v2399_v60, 1  ;;  %v2389_v44 = vrot.slane %v2388_v48, 4  ;;  %v2725_v0 = vadd.f32 %v2724_v23, %v2723_v29 }
0x10ad   :  { %v2390_v58 = vadd.f32 %v2389_v44, %v2388_v48  ;;  %v5040_v8 = vpop.permute.xlu0 %2703  ;;  %v2401_v30 = vadd.f32 %v2400_v28, %v2399_v60  ;;  %v2726_v39 = vrot.slane %v2725_v0, 1 }
0x10ae   :  { %v2712_v27 = vmul.f32 %v5040_v8, %v5038_v36 }
0x10af   :  { %v2391_v59 = vrot.slane %v2390_v58, 2  ;;  %v2438_v46 = vmul.f32 %v2435_v63, %v2401_v30  ;;  %v2727_v48 = vadd.f32 %v2726_v39, %v2725_v0 }
0x10b0   :  { %v2714_v33 = vsel %vm104_vm0, %v2712_v27, 0.0 }
0x10b1   :  { %v2392_v42 = vadd.f32 %v2391_v59, %v2390_v58  ;;  %v2715_v6 = vrot.slane %v2714_v33, 4  ;;  %v2479_v29 = vrot.slane %v2438_v46, 7  ;;  %v2731_v59 = vpop.permute.xlu2 %2730 }
0x10b3   :  { %v2393_v21 = vrot.slane %v2392_v42, 1  ;;  %v2716_v61 = vadd.f32 %v2715_v6, %v2714_v33 }
0x10b5   :  { %v2394_v2 = vadd.f32 %v2393_v21, %v2392_v42  ;;  %v2717_v12 = vrot.slane %v2716_v61, 2  ;;  %v2733_v9 = vpop.permute.xlu0 %2732 }
0x10b6   :  { %v2737_v28 = vmul.f32 %v2733_v9, %v2727_v48  ;;  %v3027_v48 = vld [vmem:[%s5401_s4 + $0x8] sm:$0xff] }
0x10b7   :  { %v2718_v44 = vadd.f32 %v2717_v12, %v2716_v61  ;;  %v2437_v16 = vmul.f32 %v2394_v2, %v4878_v3  ;;  %v5048_v60 = vsel %vm356_vm7, %v2401_v30, %v2394_v2  ;;  %v3033_v2 = vld [vmem:[%s5401_s4 + $0x50] sm:$0xff]  ;;  %v3029_v12 = vld [vmem:[%s5401_s4 + $0x20] sm:$0xff] }
0x10b8   :  { %v2740_v33 = vrot.slane %v2737_v28, 7  ;;  %3058 = vmatpush.msrb.mxu3 %v3033_v2 }
0x10b9   :  { %v2719_v23 = vrot.slane %v2718_v44, 1  ;;  %v2480_v58 = vsel %vm356_vm7, %v2479_v29, %v2437_v16 }
0x10ba   :  { %3553 = vmatmul.msk.f32.vlgmr.msra.gmra.mxu1 %vm104_vm0, %v2480_v58 }
0x10bb   :  { %v2720_v27 = vadd.f32 %v2719_v23, %v2718_v44 }
0x10bd   :  { %v5052_v63 = vpop.permute.xlu0 %2694  ;;  %v2736_v42 = vmul.f32 %v2731_v59, %v2720_v27 }
0x10be   :  { %v5056_v0 = vmul.f32 %v4892_v47, %v5052_v63  ;;  %v5067_v47 = vld [vmem:[%s5398_s1 + $0xc] sm:$0x3] }
0x10bf   :  { %v2741_v3 = vsel %vm356_vm7, %v2740_v33, %v2736_v42 }
0x10c0   :  { %v2743_v30 = vsel %vm262_vm12, %v2741_v3, 0.0  ;;  %v2765_v6 = vperm.slane %v5056_v0, 0  ;;  %v2772_v16 = vperm.slane %v5056_v0, 1  ;;  %vm2845_vm1 = vcmp.gt.f32.partialorder %v5056_v0, 0.5 }
0x10c1   :  { %2744 = vadd.xlane.f32.xlu2 %v2743_v30 }
0x10c2   :  { %2770 = vperm.xlu1 %3625, %v2765_v6   ;;  %2777 = vperm.xlu0 %3627, %v2772_v16  }
0x1114   :  { %v3022_v39 = vpop.permute.xlu1 %3021 }
0x1115   :  { %v3024_v21 = vmul.f32 %v3022_v39, %v4985_v35  ;;  %v3031_v35 = vld [vmem:[%s5401_s4 + $0x38] sm:$0xff] }
0x1116   :  { %3059 = vmatpush.msrb.mxu3 %v3031_v35 }
0x1117   :  { %3042 = vrot.lane.b32.xlu1 %v3024_v21, %s3820_s12 }
0x1118   :  { %3060 = vmatpush.msrb.mxu3 %v3029_v12 }
0x111a   :  { %3061 = vmatpush.msrb.mxu3 %v3027_v48 }
0x111f   :  { %3087 = vrot.lane.b32.xlu1 %v5067_v47, %s3821_s15 }
0x1134   :  { %v2745_v61 = vpop.xlane.xlu2 %2744  ;;  %v2771_v39 = vpop.permute.xlu1 %2770 }
0x1135   :  { %v3561_v46 = vmul.f32 -1.442695, %v2745_v61  ;;  %v2778_v12 = vpop.permute.xlu0 %2777 }
0x1137   :  { %3741 = vpow2.f32 %v3561_v46 }
0x113d   :  { %v3742_v9 = vpop.eup %3741 }
0x113e   :  { %v2749_v44 = vadd.f32 1.0, %v3742_v9 }
0x1140   :  { %3743 = vrcp.f32 %v2749_v44  ;;  %v2761_v58 = vand.u32 2147483648, %v2749_v44  ;;  %v2759_v59 = vand.u32 2147483647, %v2749_v44  ;;  %vm2755_vm8 = vweird.f32 %v2749_v44 }
0x1142   :  { %v2762_v42 = vor.u32 1.1754944e-38, %v2761_v58  ;;  %vm2760_vm11 = vcmp.eq.f32.partialorder %v2759_v59, 8.507059e+37 }
0x1146   :  { %v3744_v29 = vpop.eup %3743 }
0x1147   :  { %v2751_v23 = vmul.f32 %v3744_v29, %v2749_v44  ;;  %vm2756_vm6 = vweird.f32 %v3744_v29  ;;  %v5094_v44 = vmax.f32 %v4933_v14, %v4929_v15 }
0x1148   :  { %vm2757_vm9 = vmor %vm2755_vm8, %vm2756_vm6  ;;  %vm3330_vm6 = vcmp.gt.f32.partialorder %v5067_v47, 0.5 }
0x1149   :  { %v2752_v28 = vsub.f32 1.0, %v2751_v23 }
0x114b   :  { %v2753_v27 = vmul.f32 %v3744_v29, %v2752_v28 }
0x114d   :  { %v2754_v33 = vadd.f32 %v3744_v29, %v2753_v27 }
0x114f   :  { %v2758_v3 = vsel %vm2757_vm9, %v3744_v29, %v2754_v33 }
0x1150   :  { %v2763_v30 = vsel %vm2760_vm11, %v2762_v42, %v2758_v3 }
0x1151   :  { %v2790_v6 = vmul.f32 %v2763_v30, %v4988_v18  ;;  %v2780_v16 = vperm.slane %v2763_v30, 0  ;;  %v2781_v58 = vperm.slane %v2763_v30, 1 }
0x1153   :  { %v2792_v21 = vrot.slane %v2790_v6, 1  ;;  %v2793_v61 = vperm.slane %v2790_v6, 0  ;;  %v2784_v46 = vmul.f32 %v2780_v16, %v2771_v39  ;;  %v2785_v27 = vmul.f32 %v2781_v58, %v2778_v12 }
0x1155   :  { %v2794_v2 = vperm.slane %v2792_v21, 0  ;;  %v2797_v35 = vmul.f32 %v2793_v61, %v2771_v39  ;;  %v2786_v59 = vsub.f32 1.0, %v2784_v46  ;;  %v2787_v33 = vsub.f32 1.0, %v2785_v27 }
0x1157   :  { %v2798_v9 = vmul.f32 %v2794_v2, %v2778_v12  ;;  %2801 = vrot.lane.b32.xlu0 %v2797_v35, %s3819_s29  ;;  %v2788_v42 = vmul.f32 %v2786_v59, %v5038_v36  ;;  %v2789_v15 = vmul.f32 %v2787_v33, %v5024_v4 }
0x1159   :  { %2803 = vrot.lane.b32.xlu1 %v2798_v9, %s3819_s29 }
0x1189   :  { %v5086_v48 = vpop.permute.xlu1 %3042 }
0x118a   :  { %3437 = vst.msk [vmem:[#allocation4] sm:$0x3] %vm262_vm12, %v5086_v48  ;;  %3574 = vmatmul.msk.f32.vlgmr.msrb.gmra.mxu3 %vm104_vm0, %v5086_v48 }
0x1191   :  { %v5096_v29 = vpop.permute.xlu1 %3087 }
0x1192   :  { %v3090_v23 = vmul.f32 %v5096_v29, %v5094_v44 }
0x1194   :  { %v3091_v28 = vsel %vm250_vm10, %v3090_v23, 0.0 }
0x1195   :  { %3092 = vadd.xlane.f32.xlu0 %v3091_v28 }
0x11c9   :  { %v2802_v3 = vpop.permute.xlu0 %2801 }
0x11ca   :  { %v5102_v6 = vadd.f32 %v2802_v3, %v2788_v42 }
0x11cb   :  { %v2804_v16 = vpop.permute.xlu1 %2803 }
0x11cc   :  { %v2809_v39 = vmul.f32 %v5102_v6, %v5040_v8  ;;  %v5107_v21 = vadd.f32 %v2804_v16, %v2789_v15 }
0x11ce   :  { %v2811_v61 = vsel %vm104_vm0, %v2809_v39, 0.0  ;;  %v2810_v30 = vmul.f32 %v5107_v21, %v5001_v51 }
0x11cf   :  { %v2812_v46 = vrot.slane %v2811_v61, 4 }
0x11d0   :  { %v2818_v2 = vsel %vm104_vm0, %v2810_v30, 0.0 }
0x11d1   :  { %v2813_v36 = vadd.f32 %v2812_v46, %v2811_v61  ;;  %v2819_v35 = vrot.slane %v2818_v2, 4  ;;  %v3762_v46 = vld [vmem:[%s5404_s7] ss:$0 sm:$0xff] }
0x11d3   :  { %v2814_v12 = vrot.slane %v2813_v36, 2  ;;  %v2820_v9 = vadd.f32 %v2819_v35, %v2818_v2  ;;  %v3097_v2 = vadd.f32 %v3762_v46, %v5067_v47 }
0x11d5   :  { %v2815_v23 = vadd.f32 %v2814_v12, %v2813_v36  ;;  %v2821_v4 = vrot.slane %v2820_v9, 2  ;;  %v3098_v36 = vmul.f32 %v3097_v2, %v3097_v2 }
0x11d7   :  { %v2822_v28 = vadd.f32 %v2821_v4, %v2820_v9  ;;  %v2816_v58 = vrot.slane %v2815_v23, 1  ;;  %v3099_v35 = vsel %vm262_vm12, %v3098_v36, 0.0  ;;  %v5129_v36 = vld [vmem:[%s5402_s5] sm:$0x7] }
0x11d8   :  { %v3037_v0 = vperm.slane %v5129_v36, 1 }
0x11d9   :  { %v2817_v27 = vadd.f32 %v2816_v58, %v2815_v23  ;;  %v2823_v59 = vrot.slane %v2822_v28, 1 }
0x11db   :  { %v2824_v33 = vadd.f32 %v2823_v59, %v2822_v28  ;;  %v2825_v42 = vmul.f32 %v2817_v27, %v2817_v27  ;;  %v3156_v59 = vperm.slane %v5067_v47, 1 }
0x11dd   :  { %v2826_v3 = vmul.f32 %v2824_v33, %v2824_v33 }
0x11df   :  { %v2829_v15 = vsel %vm356_vm7, %v2826_v3, %v2825_v42 }
0x11e0   :  { %v2831_v16 = vsel %vm262_vm12, %v2829_v15, 0.0 }
0x11e1   :  { %2832 = vadd.xlane.f32.xlu1 %v2831_v16 }
0x1208   :  { %v3093_v39 = vpop.xlane.xlu0 %3092 }
0x1209   :  { %v3094_v30 = vsub.f32 1.0, %v3093_v39 }
0x120b   :  { %v3095_v61 = vmul.f32 %v5067_v47, %v3094_v30 }
0x120d   :  { %3116 = vperm.xlu2 %3628, %v3095_v61   ;;  %v3149_v61 = vperm.slane %v5067_v47, 0 }
0x1215   :  { %3629 = vset.pattern.permute.xlu2 %v4035_v24 }
0x1236   :  { %3100 = vadd.xlane.f32.xlu2 %v3099_v35  ;;  %v3063_v35 = vpop.f32.mrf.mxu3 }
0x124e   :  { %3161 = vperm.xlu2 %3629, %v3156_v59  }
0x1254   :  { %v2833_v12 = vpop.xlane.xlu1 %2832 }
0x1255   :  { %v2834_v9 = vadd.f32 1e-30, %v2833_v12  ;;  %v5132_v12 = vadd.f32 %v3063_v35, %v3037_v0 }
0x1257   :  { %3745 = vrsqrt.f32 %v2834_v9  ;;  %vm2841_vm14 = vweird.f32 %v2834_v9 }
0x125d   :  { %v3746_v23 = vpop.eup %3745 }
0x125e   :  { %v2836_v4 = vmul.f32 %v3746_v23, %v2834_v9  ;;  %vm2842_vm13 = vweird.f32 %v3746_v23 }
0x125f   :  { %vm2843_vm15 = vmor %vm2841_vm14, %vm2842_vm13 }
0x1260   :  { %v2837_v28 = vmul.f32 %v3746_v23, %v2836_v4 }
0x1262   :  { %v2838_v58 = vmul.f32 0.5, %v2837_v28 }
0x1264   :  { %v2839_v27 = vsub.f32 1.5, %v2838_v58 }
0x1266   :  { %v2840_v33 = vmul.f32 %v3746_v23, %v2839_v27 }
0x1267   :  { %v3117_v42 = vpop.permute.xlu2 %3116 }
0x1268   :  { %v2844_v3 = vsel %vm2843_vm15, %v3746_v23, %v2840_v33  ;;  %v3119_v15 = vmul.f32 %v5067_v47, %v3117_v42  ;;  %v5410_v23 = vrot.slane %v5132_v12, 1 }
0x1269   :  { %v2846_v16 = vsel %vm2845_vm1, %v2844_v3, 1.0 }
0x126a   :  { %v3127_v39 = vperm.slane %v3119_v15, 1  ;;  %v2854_v30 = vperm.slane %v2846_v16, 1  ;;  %v2847_v46 = vperm.slane %v2846_v16, 0  ;;  %v3120_v9 = vperm.slane %v3119_v15, 0 }
0x126c   :  { %3132 = vperm.xlu1 %3625, %v3127_v39   ;;  %2859 = vperm.xlu0 %3627, %v2854_v30  }
0x1274   :  { %3154 = vperm.xlu1 %3625, %v3149_v61   ;;  %2852 = vperm.xlu0 %3627, %v2847_v46  }
0x127c   :  { %3181 = vrot.lane.b32.xlu1 %v5132_v12, %s3821_s15  ;;  %3125 = vperm.xlu0 %3627, %v3120_v9  }
0x127d   :  { %3632 = vset.pattern.permute.xlu1 %v3823_v13 }
0x1284   :  { %3183 = vrot.lane.b32.xlu0 %v5410_v23, %s3821_s15 }
0x1285   :  { %3630 = vset.pattern.permute.xlu0 %v3823_v13 }
0x128c   :  { %3145 = vperm.xlu0 %3630, %v5067_v47  }
0x1294   :  { %3631 = vset.pattern.permute.xlu0 %v4035_v24 }
0x12a9   :  { %v3101_v4 = vpop.xlane.xlu2 %3100 }
0x12aa   :  { %v3102_v28 = vadd.f32 1e-30, %v3101_v4 }
0x12ac   :  { %3747 = vrsqrt.f32 %v3102_v28  ;;  %vm3109_vm2 = vweird.f32 %v3102_v28 }
0x12b1   :  { %v5147_v9 = vpop.permute.xlu2 %3161 }
0x12b2   :  { %v3748_v58 = vpop.eup %3747 }
0x12b3   :  { %v3104_v27 = vmul.f32 %v3748_v58, %v3102_v28  ;;  %vm3110_vm3 = vweird.f32 %v3748_v58 }
0x12b4   :  { %vm3111_vm4 = vmor %vm3109_vm2, %vm3110_vm3 }
0x12b5   :  { %v3105_v59 = vmul.f32 %v3748_v58, %v3104_v27 }
0x12b7   :  { %v3106_v33 = vmul.f32 0.5, %v3105_v59 }
0x12b9   :  { %v3107_v42 = vsub.f32 1.5, %v3106_v33 }
0x12bb   :  { %v3108_v3 = vmul.f32 %v3748_v58, %v3107_v42 }
0x12bd   :  { %v3112_v15 = vsel %vm3111_vm4, %v3748_v58, %v3108_v3 }
0x12be   :  { %v3113_v16 = vmul.f32 %v3112_v15, %v3097_v2 }
0x12c0   :  { %v3135_v39 = vrot.slane %v3113_v16, 1 }
0x12c2   :  { %v3137_v30 = vperm.slane %v3135_v39, 0 }
0x12de   :  { %v2860_v61 = vpop.permute.xlu0 %2859  ;;  %v3133_v46 = vpop.permute.xlu1 %3132 }
0x12df   :  { %v5145_v0 = vmul.f32 %v2860_v61, %v5107_v21  ;;  %v3141_v35 = vmul.f32 %v3137_v30, %v3133_v46 }
0x12e1   :  { %v2864_v4 = vmul.f32 %v5145_v0, %v5001_v51  ;;  %v5152_v28 = vadd.f32 %v3141_v35, %v5145_v0 }
0x12e3   :  { %v2872_v27 = vsel %vm104_vm0, %v2864_v4, 0.0  ;;  %v3164_v2 = vmul.f32 %v5147_v9, %v5152_v28  ;;  %v3136_v4 = vperm.slane %v3113_v16, 0 }
0x12e4   :  { %v2873_v58 = vrot.slane %v2872_v27, 4 }
0x12e5   :  { %v3172_v59 = vsel %vm104_vm0, %v3164_v2, 0.0 }
0x12e6   :  { %v2874_v33 = vadd.f32 %v2873_v58, %v2872_v27  ;;  %v2853_v21 = vpop.permute.xlu0 %2852  ;;  %v3173_v42 = vrot.slane %v3172_v59, 4 }
0x12e7   :  { %v5159_v3 = vmul.f32 %v2853_v21, %v5102_v6  ;;  %v2912_v21 = vrot.slane %v5052_v63, 1 }
0x12e8   :  { %v2875_v15 = vrot.slane %v2874_v33, 2  ;;  %v3174_v61 = vadd.f32 %v3173_v42, %v3172_v59 }
0x12e9   :  { %v2863_v51 = vmul.f32 %v5159_v3, %v5040_v8  ;;  %v5168_v8 = vpop.permute.xlu1 %3154 }
0x12ea   :  { %v2876_v39 = vadd.f32 %v2875_v15, %v2874_v33  ;;  %v3175_v27 = vrot.slane %v3174_v61, 2 }
0x12eb   :  { %v2865_v30 = vsel %vm104_vm0, %v2863_v51, 0.0 }
0x12ec   :  { %v2877_v46 = vrot.slane %v2876_v39, 1  ;;  %v2866_v35 = vrot.slane %v2865_v30, 4  ;;  %v3176_v33 = vadd.f32 %v3175_v27, %v3174_v61 }
0x12ee   :  { %v2867_v23 = vadd.f32 %v2866_v35, %v2865_v30  ;;  %v3126_v57 = vpop.permute.xlu0 %3125  ;;  %v2878_v58 = vadd.f32 %v2877_v46, %v2876_v39  ;;  %v3177_v30 = vrot.slane %v3176_v33, 1 }
0x12ef   :  { %v3140_v2 = vmul.f32 %v3136_v4, %v3126_v57 }
0x12f0   :  { %v2868_v31 = vrot.slane %v2867_v23, 2  ;;  %v2915_v16 = vmul.f32 %v2912_v21, %v2878_v58  ;;  %v3178_v27 = vadd.f32 %v3177_v30, %v3176_v33  ;;  %v3763_v30 = vld [vmem:[%s5398_s1 + $0x8] sm:$0x3] }
0x12f1   :  { %v5165_v6 = vadd.f32 %v3140_v2, %v5159_v3  ;;  %vm2402_vm5 = vcmp.gt.f32.partialorder %v3763_v30, 0.5 }
0x12f2   :  { %v2869_v34 = vadd.f32 %v2868_v31, %v2867_v23  ;;  %v2956_v4 = vrot.slane %v2915_v16, 7  ;;  %v3182_v16 = vpop.permute.xlu1 %3181 }
0x12f3   :  { %v3163_v59 = vmul.f32 %v5168_v8, %v5165_v6 }
0x12f4   :  { %v2870_v42 = vrot.slane %v2869_v34, 1 }
0x12f5   :  { %v3165_v15 = vsel %vm104_vm0, %v3163_v59, 0.0 }
0x12f6   :  { %v2871_v57 = vadd.f32 %v2870_v42, %v2869_v34  ;;  %v3166_v51 = vrot.slane %v3165_v15, 4  ;;  %v3184_v39 = vpop.permute.xlu0 %3183 }
0x12f7   :  { %v3188_v59 = vmul.f32 %v3184_v39, %v3178_v27 }
0x12f8   :  { %v3167_v46 = vadd.f32 %v3166_v51, %v3165_v15  ;;  %v2914_v35 = vmul.f32 %v2871_v57, %v5052_v63  ;;  %v5175_v31 = vsel %vm356_vm7, %v2878_v58, %v2871_v57 }
0x12f9   :  { %v3191_v51 = vrot.slane %v3188_v59, 7  ;;  %v2891_v59 = vperm.slane %v2729_v20, 0 }
0x12fa   :  { %v3168_v23 = vrot.slane %v3167_v46, 2  ;;  %v2957_v2 = vsel %vm356_vm7, %v2956_v4, %v2914_v35  ;;  %v3331_v35 = vsel %vm3330_vm6, 1, %v3824_v54  ;;  %v507_v4 = vperm.slane %v344_v40, 0 }
0x12fb   :  { %3569 = vmatmul.msk.f32.vlgmr.msrb.gmra.mxu2 %vm104_vm0, %v2957_v2  ;;  %vm1950_vm6 = vcmp.gt.f32.partialorder %v4759_v25, 0.5 }
0x12fc   :  { %v3169_v61 = vadd.f32 %v3168_v23, %v3167_v46  ;;  %v2403_v46 = vsel %vm2402_vm5, 1, %v3824_v54  ;;  %v511_v23 = vmul.f32 %v507_v4, %v4188_v11  ;;  %vm1473_vm5 = vcmp.gt.f32.partialorder %v4547_v22, 0.5 }
0x12fe   :  { %v3170_v21 = vrot.slane %v3169_v61, 1  ;;  %v5179_v34 = vpop.permute.xlu0 %3145  ;;  %v515_v2 = vsel %vm104_vm0, %v511_v23, 0.0 }
0x12ff   :  { %v5183_v42 = vmul.f32 %v5067_v47, %v5179_v34 }
0x1300   :  { %v3171_v63 = vadd.f32 %v3170_v21, %v3169_v61  ;;  %v2413_v61 = vperm.slane %v4802_v17, 0 }
0x1301   :  { %v3216_v58 = vperm.slane %v5183_v42, 0  ;;  %v3223_v15 = vperm.slane %v5183_v42, 1  ;;  %vm3296_vm3 = vcmp.gt.f32.partialorder %v5183_v42, 0.5 }
0x1302   :  { %v3187_v57 = vmul.f32 %v3182_v16, %v3171_v63  ;;  %v2417_v27 = vmul.f32 %v2413_v61, %v5032_v45  ;;  %v2895_v63 = vmul.f32 %v2891_v59, %v5145_v0 }
0x1303   :  { %3221 = vperm.xlu2 %3629, %v3216_v58   ;;  %3228 = vperm.xlu0 %3631, %v3223_v15  }
0x1304   :  { %v3192_v33 = vsel %vm356_vm7, %v3191_v51, %v3187_v57  ;;  %v2419_v21 = vsel %vm104_vm0, %v2417_v27, 0.0  ;;  %v2899_v16 = vsel %vm104_vm0, %v2895_v63, 0.0 }
0x1305   :  { %v3194_v39 = vsel %vm262_vm12, %v3192_v33, 0.0 }
0x1306   :  { %3195 = vadd.xlane.f32.xlu1 %v3194_v39 }
0x130b   :  { %3633 = vset.pattern.permute.xlu2 %v3823_v13  ;;  %3636 = vset.pattern.permute.xlu0 %v3823_v13 }
0x131f   :  { %2405 = vperm.xlu1 %3632, %v2403_v46  }
0x1327   :  { %3333 = vperm.xlu1 %3632, %v3331_v35  }
0x1351   :  { %516 = vadd.xlane.f32.xlu1 %v515_v2 }
0x1359   :  { %2420 = vadd.xlane.f32.xlu1 %v2419_v21 }
0x135d   :  { %v3222_v61 = vpop.permute.xlu2 %3221 }
0x1361   :  { %2900 = vadd.xlane.f32.xlu1 %v2899_v16 }
0x1375   :  { %v3229_v63 = vpop.permute.xlu0 %3228 }
0x1379   :  { %v3196_v40 = vpop.xlane.xlu1 %3195 }
0x137a   :  { %v3576_v11 = vmul.f32 -1.442695, %v3196_v40  ;;  %v2443_v40 = vsub.f32 1.0, %v3763_v30 }
0x137c   :  { %3749 = vpow2.f32 %v3576_v11  ;;  %v3551_v11 = vld [vmem:[%s5403_s6 + $0x38] sm:$0xff] }
0x137d   :  { %2469 = vmatpush.msra.mxu0 %v3551_v11  ;;  %2946 = vmatpush.msrb.mxu1 %v3551_v11 }
0x1382   :  { %v3750_v58 = vpop.eup %3749 }
0x1383   :  { %v3200_v15 = vadd.f32 1.0, %v3750_v58  ;;  %v3550_v58 = vld [vmem:[%s5403_s6 + $0x30] sm:$0xff] }
0x1384   :  { %2470 = vmatpush.msra.mxu0 %v3550_v58  ;;  %2947 = vmatpush.msrb.mxu1 %v3550_v58 }
0x1385   :  { %3751 = vrcp.f32 %v3200_v15  ;;  %v3212_v33 = vand.u32 2147483648, %v3200_v15  ;;  %v3210_v46 = vand.u32 2147483647, %v3200_v15  ;;  %vm3206_vm9 = vweird.f32 %v3200_v15 }
0x1387   :  { %v3213_v20 = vor.u32 1.1754944e-38, %v3212_v33  ;;  %vm3211_vm13 = vcmp.eq.f32.partialorder %v3210_v46, 8.507059e+37 }
0x138b   :  { %v3752_v57 = vpop.eup %3751 }
0x138c   :  { %v3202_v51 = vmul.f32 %v3752_v57, %v3200_v15  ;;  %vm3207_vm8 = vweird.f32 %v3752_v57  ;;  %v3549_v15 = vld [vmem:[%s5403_s6 + $0x28] sm:$0xff] }
0x138d   :  { %vm3208_vm11 = vmor %vm3206_vm9, %vm3207_vm8  ;;  %2471 = vmatpush.msra.mxu0 %v3549_v15  ;;  %2948 = vmatpush.msrb.mxu1 %v3549_v15  ;;  %vm2427_vm8 = vcmp.gt.f32.partialorder %v4933_v14, 0.5  ;;  %v3370_v14 = vld [vmem:[%s5403_s6 + $0x18] sm:$0xff] }
0x138e   :  { %v3203_v45 = vsub.f32 1.0, %v3202_v51  ;;  %v2558_v51 = vld [vmem:[%s5401_s4 + $0x40] sm:$0xff]  ;;  %3423 = vmatpush.msra.mxu2 %v3370_v14 }
0x1390   :  { %v3204_v39 = vmul.f32 %v3752_v57, %v3203_v45  ;;  %v2555_v45 = vld [vmem:[%s5401_s4 + $0x28] sm:$0xff] }
0x1392   :  { %v3205_v35 = vadd.f32 %v3752_v57, %v3204_v39  ;;  %v2552_v39 = vld [vmem:[%s5401_s4 + $0x10] sm:$0xff] }
0x1394   :  { %v3209_v0 = vsel %vm3208_vm11, %v3752_v57, %v3205_v35  ;;  %v2561_v57 = vld [vmem:[%s5401_s4 + $0x58] sm:$0xff] }
0x1395   :  { %v3214_v4 = vsel %vm3211_vm13, %v3213_v20, %v3209_v0  ;;  %vm2904_vm13 = vcmp.gt.f32.partialorder %v5094_v44, 0.5 }
0x1396   :  { %v3241_v23 = vmul.f32 %v3214_v4, %v5132_v12  ;;  %v3231_v30 = vperm.slane %v3214_v4, 0  ;;  %v3232_v46 = vperm.slane %v3214_v4, 1 }
0x1398   :  { %v3244_v2 = vperm.slane %v3241_v23, 0  ;;  %v3243_v27 = vrot.slane %v3241_v23, 1  ;;  %v3235_v33 = vmul.f32 %v3231_v30, %v3222_v61  ;;  %v3236_v20 = vmul.f32 %v3232_v46, %v3229_v63 }
0x139a   :  { %v3248_v21 = vmul.f32 %v3244_v2, %v3222_v61  ;;  %v3245_v59 = vperm.slane %v3243_v27, 0  ;;  %v3237_v35 = vsub.f32 1.0, %v3235_v33  ;;  %v3238_v27 = vsub.f32 1.0, %v3236_v20 }
0x139c   :  { %3252 = vrot.lane.b32.xlu2 %v3248_v21, %s3819_s29  ;;  %v3249_v16 = vmul.f32 %v3245_v59, %v3229_v63  ;;  %v3239_v0 = vmul.f32 %v3237_v35, %v5165_v6 }
0x13a4   :  { %3254 = vrot.lane.b32.xlu2 %v3249_v16, %s3819_s29  ;;  %v3240_v16 = vmul.f32 %v3238_v27, %v5152_v28 }
0x13ac   :  { %2446 = vperm.xlu2 %3633, %v2443_v40  }
0x13b4   :  { %3634 = vset.pattern.permute.xlu2 %v4035_v24  ;;  %v3548_v24 = vld [vmem:[%s5403_s6 + $0x20] sm:$0xff] }
0x13b5   :  { %2472 = vmatpush.msra.mxu0 %v3548_v24  ;;  %2949 = vmatpush.msrb.mxu1 %v3548_v24 }
0x13b7   :  { %3397 = vmatpush.msra.mxu1 %v3551_v11  ;;  %2627 = vmatpush.msrb.mxu0 %v2561_v57 }
0x13b9   :  { %3398 = vmatpush.msra.mxu1 %v3550_v58  ;;  %2628 = vmatpush.msrb.mxu0 %v2558_v51  ;;  %v2406_v58 = vpop.permute.xlu1 %2405 }
0x13ba   :  { %vm2407_vm14 = vcmp.eq.s32.totalorder %v2406_v58, 1  ;;  %v1459_v58 = vperm.slane %v4379_v55, 0 }
0x13bb   :  { %3399 = vmatpush.msra.mxu1 %v3549_v15  ;;  %2629 = vmatpush.msrb.mxu0 %v2555_v45  ;;  %v5250_v35 = vsel %vm2407_vm14, %v5048_v60, %v4914_v10 }
0x13bd   :  { %3400 = vmatpush.msra.mxu1 %v3548_v24  ;;  %2630 = vmatpush.msrb.mxu0 %v2552_v39 }
0x13f6   :  { %v3253_v23 = vpop.permute.xlu2 %3252 }
0x13f7   :  { %v5237_v2 = vadd.f32 %v3253_v23, %v3239_v0 }
0x13f9   :  { %v3260_v61 = vmul.f32 %v5237_v2, %v5168_v8 }
0x13fb   :  { %v3262_v21 = vsel %vm104_vm0, %v3260_v61, 0.0 }
0x13fc   :  { %v3263_v59 = vrot.slane %v3262_v21, 4 }
0x13fe   :  { %v3264_v40 = vadd.f32 %v3263_v59, %v3262_v21  ;;  %v3255_v11 = vpop.permute.xlu2 %3254 }
0x13ff   :  { %v5243_v4 = vadd.f32 %v3255_v11, %v3240_v16 }
0x1400   :  { %v3265_v63 = vrot.slane %v3264_v40, 2 }
0x1401   :  { %v3261_v6 = vmul.f32 %v5243_v4, %v5147_v9 }
0x1402   :  { %v3266_v24 = vadd.f32 %v3265_v63, %v3264_v40  ;;  %v506_v40 = vperm.slane %v4051_v38, 0  ;;  %v1463_v38 = vmul.f32 %v1459_v58, %v4615_v53  ;;  %v5418_v53 = vrot.slane %v4591_v56, 1 }
0x1403   :  { %v3269_v15 = vsel %vm104_vm0, %v3261_v6, 0.0 }
0x1404   :  { %v3270_v30 = vrot.slane %v3269_v15, 4  ;;  %v3267_v20 = vrot.slane %v3266_v24, 1 }
0x1406   :  { %v3271_v33 = vadd.f32 %v3270_v30, %v3269_v15  ;;  %v2447_v46 = vpop.permute.xlu2 %2446  ;;  %v3268_v61 = vadd.f32 %v3267_v20, %v3266_v24 }
0x1407   :  { %v2449_v28 = vmul.f32 %v2447_v46, %v5250_v35 }
0x1408   :  { %v3272_v0 = vrot.slane %v3271_v33, 2  ;;  %v3276_v59 = vmul.f32 %v3268_v61, %v3268_v61 }
0x1409   :  { %3552 = vmatmul.msk.f32.vlgmr.msra.gmra.mxu0 %vm104_vm0, %v2449_v28 }
0x140a   :  { %v3273_v23 = vadd.f32 %v3272_v0, %v3271_v33  ;;  %3078 = vmatpush.msra.mxu0 %v2561_v57  ;;  %v510_v57 = vmul.f32 %v506_v40, %v4243_v49  ;;  %v1465_v49 = vsel %vm104_vm0, %v1463_v38, 0.0  ;;  %v1937_v33 = vperm.slane %v5418_v53, 0 }
0x140c   :  { %v3274_v27 = vrot.slane %v3273_v23, 1  ;;  %3079 = vmatpush.msra.mxu0 %v2558_v51  ;;  %v512_v51 = vsel %vm104_vm0, %v510_v57, 0.0  ;;  %v1941_v46 = vmul.f32 %v1937_v33, %v4826_v7 }
0x140e   :  { %v3275_v21 = vadd.f32 %v3274_v27, %v3273_v23  ;;  %3080 = vmatpush.msra.mxu0 %v2555_v45  ;;  %v5416_v45 = vrot.slane %v4168_v52, 1  ;;  %v2500_v27 = vpop.f32.mrf.mxu1 }
0x1410   :  { %v3277_v16 = vmul.f32 %v3275_v21, %v3275_v21  ;;  %3081 = vmatpush.msra.mxu0 %v2552_v39  ;;  %v983_v39 = vperm.slane %v5416_v45, 0 }
0x1411   :  { %3560 = vmatmul.msk.f32.vlgmr.msrb.gmra.mxu0 %vm104_vm0, %v4908_v1 }
0x1412   :  { %v3280_v10 = vsel %vm356_vm7, %v3277_v16, %v3276_v59  ;;  %v987_v1 = vmul.f32 %v983_v39, %v4429_v41  ;;  %v1936_v41 = vperm.slane %v4591_v56, 0  ;;  %v3764_v56 = vld [vmem:[%s5402_s5] sm:$0x7] }
0x1413   :  { %v3282_v60 = vsel %vm262_vm12, %v3280_v10, 0.0  ;;  %v2089_v23 = vperm.slane %v3764_v56, 2  ;;  %vm520_vm12 = vcmp.gt.f32.partialorder %v4125_v19, 0.5 }
0x1414   :  { %3283 = vadd.xlane.f32.xlu0 %v3282_v60  ;;  %v991_v11 = vsel %vm104_vm0, %v987_v1, 0.0  ;;  %v1940_v24 = vmul.f32 %v1936_v41, %v4829_v62  ;;  %v5285_v62 = vpop.permute.xlu1 %3333 }
0x1415   :  { %v2156_v61 = vadd.f32 %v4980_v37, %v2089_v23  ;;  %vm3335_vm11 = vcmp.eq.s32.totalorder %v5285_v62, 1 }
0x1416   :  { %v1942_v30 = vsel %vm104_vm0, %v1940_v24, 0.0 }
0x1419   :  { %3575 = vmatmul.msk.f32.vlgmr.msra.gmra.mxu0 %vm104_vm0, %v5086_v48  ;;  %v5417_v48 = vrot.slane %v4379_v55, 1  ;;  %v1945_v55 = vsel %vm104_vm0, %v1941_v46, 0.0 }
0x141b   :  { %v1460_v63 = vperm.slane %v5417_v48, 0 }
0x141c   :  { %513 = vadd.xlane.f32.xlu0 %v512_v51 }
0x141d   :  { %v1464_v6 = vmul.f32 %v1460_v63, %v4653_v43  ;;  %v5419_v43 = vrot.slane %v4802_v17, 1 }
0x141f   :  { %v1468_v15 = vsel %vm104_vm0, %v1464_v6, 0.0  ;;  %v2414_v28 = vperm.slane %v5419_v43, 0 }
0x1421   :  { %v2418_v20 = vmul.f32 %v2414_v28, %v5019_v32  ;;  %v517_v32 = vpop.xlane.xlu1 %516 }
0x1422   :  { %v3484_v10 = vadd.f32 -1.0, %v517_v32 }
0x1423   :  { %v2422_v0 = vsel %vm104_vm0, %v2418_v20, 0.0 }
0x1424   :  { %992 = vadd.xlane.f32.xlu0 %v991_v11  ;;  %v524_v45 = vperm.slane %v3484_v10, %v4004_v5 }
0x142c   :  { %1466 = vadd.xlane.f32.xlu0 %v1465_v49 }
0x1434   :  { %1469 = vadd.xlane.f32.xlu0 %v1468_v15 }
0x143c   :  { %1943 = vadd.xlane.f32.xlu0 %v1942_v30 }
0x1444   :  { %1946 = vadd.xlane.f32.xlu0 %v1945_v55  ;;  %v3765_v55 = vld [vmem:[%s5398_s1 + $0xa] sm:$0x3] }
0x1445   :  { %vm2879_vm4 = vcmp.gt.f32.partialorder %v3765_v55, 0.5 }
0x1446   :  { %v2880_v28 = vsel %vm2879_vm4, 1, %v3824_v54 }
0x144c   :  { %2423 = vadd.xlane.f32.xlu0 %v2422_v0  ;;  %v2920_v0 = vsub.f32 1.0, %v3765_v55 }
0x1486   :  { %v2474_v7 = vpop.f32.mrf.mxu0 }
0x1487   :  { %v2501_v21 = vadd.f32 %v2500_v27, %v2474_v7  ;;  %v3284_v59 = vpop.xlane.xlu0 %3283 }
0x1488   :  { %v3285_v17 = vadd.f32 1e-30, %v3284_v59 }
0x1489   :  { %v2503_v16 = vadd.f32 %v2501_v21, %v2156_v61  ;;  %v2421_v61 = vpop.xlane.xlu1 %2420  ;;  %v3371_v21 = vsub.f32 1.0, %v5067_v47  ;;  %v982_v47 = vperm.slane %v4168_v52, 0  ;;  %v3369_v52 = vld [vmem:[%s5403_s6 + $0x10] sm:$0xff] }
0x148a   :  { %3753 = vrsqrt.f32 %v3285_v17  ;;  %vm3292_vm1 = vweird.f32 %v3285_v17  ;;  %3424 = vmatpush.msra.mxu2 %v3369_v52 }
0x148b   :  { %3554 = vst [vmem:[%s5406_s9 + $0x8] sm:$0x3] %v2503_v16 }
0x148f   :  { %v514_v60 = vpop.xlane.xlu0 %513 }
0x1490   :  { %v3754_v40 = vpop.eup %3753  ;;  %v3483_v57 = vadd.f32 -1.0, %v514_v60 }
0x1491   :  { %v3287_v51 = vmul.f32 %v3754_v40, %v3285_v17  ;;  %vm3293_vm15 = vweird.f32 %v3754_v40 }
0x1492   :  { %v523_v39 = vperm.slane %v3483_v57, %v4004_v5  ;;  %vm3294_vm2 = vmor %vm3292_vm1, %vm3293_vm15 }
0x1493   :  { %v3288_v37 = vmul.f32 %v3754_v40, %v3287_v51  ;;  %v2890_v51 = vperm.slane %v4988_v18, 0  ;;  %v3367_v18 = vld [vmem:[%s5403_s6] sm:$0xff] }
0x1494   :  { %v525_v1 = vsel %vm356_vm7, %v524_v45, %v523_v39 }
0x1495   :  { %v3289_v11 = vmul.f32 0.5, %v3288_v37  ;;  %v527_v58 = vsel %vm520_vm12, %v525_v1, -inf  ;;  %v2894_v45 = vmul.f32 %v2890_v51, %v5159_v3  ;;  %v5420_v37 = vrot.slane %v5132_v12, 1 }
0x1496   :  { %599 = vst.msk [vmem:[#allocation2] sm:$0x3] %vm250_vm10, %v527_v58 }
0x1497   :  { %v3290_v38 = vsub.f32 1.5, %v3289_v11  ;;  %v5299_v49 = vpop.xlane.xlu0 %992  ;;  %v2896_v39 = vsel %vm104_vm0, %v2894_v45, 0.0  ;;  %v3342_v1 = vperm.slane %v5420_v37, 0 }
0x1499   :  { %v3291_v48 = vmul.f32 %v3754_v40, %v3290_v38 }
0x149b   :  { %v3295_v63 = vsel %vm3294_vm2, %v3754_v40, %v3291_v48  ;;  %v986_v40 = vmul.f32 %v982_v47, %v4443_v50  ;;  %v3368_v50 = vld [vmem:[%s5403_s6 + $0x8] sm:$0xff]  ;;  %s3825_s6 = smov [#allocation4]  }
0x149c   :  { %v3297_v6 = vsel %vm3296_vm3, %v3295_v63, 1.0  ;;  %3425 = vmatpush.msra.mxu2 %v3368_v50  ;;  %s3458_s28 = sshll.u32 %s3825_s6, 4  ;;  %v3096_v50 = vmax.f32 %v5094_v44, %v5096_v29  ;;  %v2632_v44 = vpop.f32.mrf.mxu0  ;;  %v3766_v29 = vld [vmem:[%s5402_s5] sm:$0x7]  ;;  %s3459_s28 = int_to_ptr.vmem [resolvable:$true] %s3458_s28 }
0x149d   :  { %v3305_v15 = vperm.slane %v3297_v6, 1  ;;  %v3298_v41 = vperm.slane %v3297_v6, 0  ;;  %v988_v57 = vsel %vm104_vm0, %v986_v40, 0.0  ;;  %3463 = dma.vmem_to_hbm [thread:$0]  %s3459_s28, 32, %s3461_s30, [#allocation5]  }
0x149e   :  { %3426 = vmatpush.msra.mxu2 %v3367_v18  ;;  %vm3355_vm14 = vcmp.gt.f32.partialorder %v3096_v50, 0.5 }
0x149f   :  { %3310 = vperm.xlu2 %3634, %v3305_v15   ;;  %v1467_v19 = vpop.xlane.xlu0 %1466 }
0x14a0   :  { %v3514_v24 = vadd.f32 -1.0, %v1467_v19 }
0x14a2   :  { %v1476_v33 = vperm.slane %v3514_v24, %v4004_v5 }
0x14a7   :  { %3303 = vperm.xlu2 %3634, %v3298_v41   ;;  %v1470_v30 = vpop.xlane.xlu0 %1469  ;;  %v3341_v41 = vperm.slane %v5132_v12, 0  ;;  %v3363_v12 = vrot.slane %v5179_v34, 1 }
0x14a8   :  { %v3515_v53 = vadd.f32 -1.0, %v1470_v30 }
0x14aa   :  { %v1477_v46 = vperm.slane %v3515_v53, %v4004_v5 }
0x14ac   :  { %v1478_v42 = vsel %vm356_vm7, %v1477_v46, %v1476_v33 }
0x14ad   :  { %v1480_v43 = vsel %vm1473_vm5, %v1478_v42, -inf }
0x14ae   :  { %1553 = vst.msk [vmem:[#allocation2 + $0x4] sm:$0x3] %vm250_vm10, %v1480_v43 }
0x14af   :  { %3635 = vset.pattern.permute.xlu2 %v3823_v13  ;;  %v1944_v20 = vpop.xlane.xlu0 %1943  ;;  %v3546_v13 = vadd.f32 -1.0, %v2421_v61 }
0x14b0   :  { %2882 = vperm.xlu2 %3635, %v2880_v28   ;;  %v3530_v56 = vadd.f32 -1.0, %v1944_v20 }
0x14b1   :  { %v2430_v32 = vperm.slane %v3546_v13, %v4004_v5 }
0x14b2   :  { %v1953_v7 = vperm.slane %v3530_v56, %v4004_v5 }
0x14b7   :  { %v1947_v23 = vpop.xlane.xlu0 %1946 }
0x14b8   :  { %v3531_v27 = vadd.f32 -1.0, %v1947_v23  ;;  %2923 = vperm.xlu2 %3635, %v2920_v0  }
0x14ba   :  { %v1954_v22 = vperm.slane %v3531_v27, %v4004_v5 }
0x14bc   :  { %v1955_v54 = vsel %vm356_vm7, %v1954_v22, %v1953_v7 }
0x14bd   :  { %v1957_v59 = vsel %vm1950_vm6, %v1955_v54, -inf }
0x14be   :  { %2030 = vst.msk [vmem:[#allocation2 + $0x6] sm:$0x3] %vm250_vm10, %v1957_v59 }
0x14bf   :  { %v2424_v17 = vpop.xlane.xlu0 %2423 }
0x14c0   :  { %v3547_v16 = vadd.f32 -1.0, %v2424_v17  ;;  %3374 = vperm.xlu2 %3635, %v3371_v21  }
0x14c2   :  { %v2431_v10 = vperm.slane %v3547_v16, %v4004_v5 }
0x14c4   :  { %v2432_v60 = vsel %vm356_vm7, %v2431_v10, %v2430_v32  ;;  %v2901_v10 = vpop.xlane.xlu1 %2900 }
0x14c5   :  { %v2434_v25 = vsel %vm2427_vm8, %v2432_v60, -inf  ;;  %v3563_v47 = vadd.f32 -1.0, %v2901_v10 }
0x14c6   :  { %2507 = vst.msk [vmem:[#allocation2 + $0x8] sm:$0x3] %vm250_vm10, %v2434_v25 }
0x14c7   :  { %v2908_v51 = vperm.slane %v3563_v47, %v4004_v5 }
0x14e9   :  { %989 = vadd.xlane.f32.xlu2 %v988_v57 }
0x14f1   :  { %2897 = vadd.xlane.f32.xlu2 %v2896_v39 }
0x14f9   :  { %v3311_v3 = vpop.permute.xlu2 %3310 }
0x14fa   :  { %v3313_v11 = vmul.f32 %v3311_v3, %v5243_v4 }
0x14fc   :  { %v3315_v58 = vmul.f32 %v3313_v11, %v5147_v9  ;;  %v3346_v38 = vmul.f32 %v3342_v1, %v3313_v11 }
0x14fe   :  { %v3323_v48 = vsel %vm104_vm0, %v3315_v58, 0.0  ;;  %v3350_v63 = vsel %vm104_vm0, %v3346_v38, 0.0  ;;  %v2566_v58 = vperm.slane %v3766_v29, 2  ;;  %v2977_v38 = vpop.f32.mrf.mxu2 }
0x14ff   :  { %v3324_v6 = vrot.slane %v3323_v48, 4  ;;  %3351 = vadd.xlane.f32.xlu2 %v3350_v63 }
0x1501   :  { %v3325_v15 = vadd.f32 %v3324_v6, %v3323_v48  ;;  %v3304_v19 = vpop.permute.xlu2 %3303  ;;  %v2633_v48 = vadd.f32 %v2632_v44, %v2566_v58 }
0x1502   :  { %v3312_v24 = vmul.f32 %v3304_v19, %v5237_v2  ;;  %v3083_v19 = vpop.f32.mrf.mxu0 }
0x1503   :  { %v3326_v30 = vrot.slane %v3325_v15, 2 }
0x1504   :  { %v3314_v53 = vmul.f32 %v3312_v24, %v5168_v8  ;;  %v3345_v33 = vmul.f32 %v3341_v41, %v3312_v24 }
0x1505   :  { %v3327_v4 = vadd.f32 %v3326_v30, %v3325_v15  ;;  %v3038_v15 = vperm.slane %v5129_v36, 2 }
0x1506   :  { %v3316_v9 = vsel %vm104_vm0, %v3314_v53, 0.0  ;;  %v3347_v46 = vsel %vm104_vm0, %v3345_v33, 0.0 }
0x1507   :  { %v3328_v55 = vrot.slane %v3327_v4, 1  ;;  %v3317_v42 = vrot.slane %v3316_v9, 4  ;;  %3348 = vadd.xlane.f32.xlu0 %v3347_v46  ;;  %v3084_v30 = vadd.f32 %v3083_v19, %v3038_v15 }
0x1509   :  { %v3318_v43 = vadd.f32 %v3317_v42, %v3316_v9  ;;  %v3329_v20 = vadd.f32 %v3328_v55, %v3327_v4 }
0x150a   :  { %v2883_v28 = vpop.permute.xlu2 %2882 }
0x150b   :  { %v3319_v0 = vrot.slane %v3318_v43, 2  ;;  %vm2884_vm9 = vcmp.eq.s32.totalorder %v2883_v28, 1  ;;  %v3366_v23 = vmul.f32 %v3363_v12, %v3329_v20 }
0x150c   :  { %v2889_v7 = vsel %vm2884_vm9, %v5175_v31, %v5250_v35  ;;  %v3499_v31 = vadd.f32 -1.0, %v5299_v49 }
0x150d   :  { %v3320_v56 = vadd.f32 %v3319_v0, %v3318_v43  ;;  %v3407_v54 = vrot.slane %v3366_v23, 7 }
0x150e   :  { %v1000_v62 = vperm.slane %v3499_v31, %v4004_v5 }
0x150f   :  { %v3321_v2 = vrot.slane %v3320_v56, 1 }
0x1511   :  { %v3322_v8 = vadd.f32 %v3321_v2, %v3320_v56 }
0x1512   :  { %v2924_v27 = vpop.permute.xlu2 %2923 }
0x1513   :  { %v2926_v22 = vmul.f32 %v2924_v27, %v2889_v7  ;;  %v3365_v61 = vmul.f32 %v3322_v8, %v5179_v34  ;;  %v3338_v21 = vsel %vm356_vm7, %v3329_v20, %v3322_v8 }
0x1514   :  { %v3340_v59 = vsel %vm3335_vm11, %v3338_v21, %v2889_v7 }
0x1515   :  { %3568 = vmatmul.msk.f32.vlgmr.msrb.gmra.mxu1 %vm104_vm0, %v2926_v22  ;;  %v3408_v13 = vsel %vm356_vm7, %v3407_v54, %v3365_v61 }
0x1516   :  { %3584 = vmatmul.msk.f32.vlgmr.msra.gmra.mxu2 %vm104_vm0, %v3408_v13 }
0x151a   :  { %v3375_v17 = vpop.permute.xlu2 %3374 }
0x151b   :  { %v3377_v16 = vmul.f32 %v3375_v17, %v3340_v59 }
0x151d   :  { %3583 = vmatmul.msk.f32.vlgmr.msra.gmra.mxu1 %vm104_vm0, %v3377_v16  ;;  %vm996_vm0 = vcmp.gt.f32.partialorder %v4335_v26, 0.5 }
0x155c   :  { %v990_v34 = vpop.xlane.xlu2 %989 }
0x155d   :  { %v3498_v35 = vadd.f32 -1.0, %v990_v34 }
0x155f   :  { %v999_v32 = vperm.slane %v3498_v35, %v4004_v5 }
0x1561   :  { %v1001_v60 = vsel %vm356_vm7, %v1000_v62, %v999_v32 }
0x1562   :  { %v1003_v25 = vsel %vm996_vm0, %v1001_v60, -inf }
0x1563   :  { %1076 = vst.msk [vmem:[#allocation2 + $0x2] sm:$0x3] %vm250_vm10, %v1003_v25 }
0x1564   :  { %v2898_v40 = vpop.xlane.xlu2 %2897 }
0x1565   :  { %v3562_v57 = vadd.f32 -1.0, %v2898_v40 }
0x1567   :  { %v2907_v49 = vperm.slane %v3562_v57, %v4004_v5 }
0x1569   :  { %v2909_v45 = vsel %vm356_vm7, %v2908_v51, %v2907_v49 }
0x156a   :  { %v2911_v14 = vsel %vm2904_vm13, %v2909_v45, -inf }
0x156b   :  { %2984 = vst.msk [vmem:[#allocation2 + $0xa] sm:$0x3] %vm250_vm10, %v2911_v14 }
0x1572   :  { %v3352_v26 = vpop.xlane.xlu2 %3351 }
0x1573   :  { %v3578_v39 = vadd.f32 -1.0, %v3352_v26 }
0x1575   :  { %v3359_v3 = vperm.slane %v3578_v39, %v4004_v5 }
0x157a   :  { %v3349_v52 = vpop.xlane.xlu0 %3348 }
0x157b   :  { %v3577_v18 = vadd.f32 -1.0, %v3349_v52 }
0x157d   :  { %v3358_v37 = vperm.slane %v3577_v18, %v4004_v5 }
0x157f   :  { %v3360_v1 = vsel %vm356_vm7, %v3359_v3, %v3358_v37 }
0x1580   :  { %v3362_v11 = vsel %vm3355_vm14, %v3360_v1, -inf }
0x1581   :  { %3435 = vst.msk [vmem:[#allocation2 + $0xc] sm:$0x3] %vm250_vm10, %v3362_v11 }
0x1582   :  { %3452 = dma.vmem_to_hbm [thread:$0]  %s3445_s3, 224, %s3447_s14, [#allocation3], %s3820_s12, %s3820_s12, %s3827_s16  }
0x1592   :  { %v2951_v5 = vpop.f32.mrf.mxu1 }
0x1593   :  { %v2978_v63 = vadd.f32 %v2977_v38, %v2951_v5 }
0x1595   :  { %v2980_v6 = vadd.f32 %v2978_v63, %v2633_v48 }
0x1597   :  { %3570 = vst [vmem:[%s5406_s9 + $0xa] sm:$0x3] %v2980_v6 }
0x1599   :  { %v3428_v41 = vpop.f32.mrf.mxu2 }
0x159a   :  { %v3402_v24 = vpop.f32.mrf.mxu1 }
0x159b   :  { %v3429_v53 = vadd.f32 %v3428_v41, %v3402_v24 }
0x159d   :  { %v3431_v33 = vadd.f32 %v3429_v53, %v3084_v30 }
0x159f   :  { %3585 = vst [vmem:[%s5406_s9 + $0xc] sm:$0x3] %v3431_v33 }
0x15a0   :  { %3815 = dma.done.wait [#allocation3], 224  }
0x15a1   :  { %3816 = vsyncadd [#allocation3], 4294967072 }
0x15a2   :  { %3817 = dma.done.wait [#allocation5], 32  }
0x15a3   :  { %3818 = vsyncadd [#allocation5], 4294967264 }
0x15a4   :  { %3474 = vsyncpa [#allocation3], 1 }
0x15a5   :  { %3475 = vsyncpa [#allocation5], 1 }

</bundles_post_ra>
